<compile_context>
chip_gen: v7x
topology: tpu7x:2x2x1
jax: 0.10.0
libtpu: 0.0.40
codegen_flags: <defaults>
</compile_context>

<pallas_src>
import functools

import jax
import jax.numpy as jnp
from jax.experimental import pallas as pl
from jax.experimental.pallas import tpu as pltpu


# ------------------------------ small helpers --------------------------------

def _round_up(x, m):
    return (x + m - 1) // m * m


def _pick_tile_m(m, k, n, vmem_budget=8 * 1024 * 1024):
    """Row-tile size: as big as possible (<=1024 rows) while the double-buffered
    bf16 A tile + f32 output tile + resident W/bias stay well under budget."""
    tm = min(_round_up(m, 8), 1024)
    while tm > 8 and 2 * (tm * k * 2 + tm * n * 4) + (k * n * 2 + n * 4) > vmem_budget:
        tm //= 2
    return max(_round_up(tm, 8), 8)


# ------------------------------ Pallas kernels --------------------------------

def _mm_kernel(a_ref, w_ref, b_ref, *out_refs, act, m_total, tm, with_stats):
    """out = act(A @ W + b); optionally also emit per-tile (sum, sum_sq) over rows
    of the activated output (BatchNorm statistics fused into the epilogue)."""
    o_ref = out_refs[0]
    acc = jnp.dot(a_ref[...], w_ref[...], preferred_element_type=jnp.float32)
    acc = acc + b_ref[...]                                   # (1, N) broadcast, f32
    if act == "relu":
        acc = jnp.maximum(acc, 0.0)
    elif act == "sigmoid":
        acc = 1.0 / (1.0 + jnp.exp(-acc))
    o_ref[...] = acc.astype(o_ref.dtype)
    if with_stats:
        s_ref = out_refs[1]
        x = acc
        if m_total % tm != 0:                                # mask zero-padded rows
            rid = pl.program_id(0) * tm + jax.lax.broadcasted_iota(
                jnp.int32, acc.shape, 0)
            x = jnp.where(rid < m_total, acc, 0.0)
        stats = jnp.concatenate(
            [jnp.sum(x, axis=0, keepdims=True),
             jnp.sum(x * x, axis=0, keepdims=True)], axis=0)  # (2, N)
        s_ref[...] = stats[None]                              # (1, 2, N)


def _bn_apply_kernel(x_ref, s_ref, t_ref, o_ref):
    """y = x * scale + shift (per channel), f32 math, narrow-dtype storage."""
    o_ref[...] = (x_ref[...].astype(jnp.float32) * s_ref[...]
                  + t_ref[...]).astype(o_ref.dtype)


def fused_matmul(a, w, b, *, act="none", out_dtype=jnp.float32,
                 compute_stats=False):
    """Row-tiled, pipelined matmul: bf16 operands, f32 MXU accumulation,
    fused bias + activation (+ optional BN sum/sumsq epilogue)."""
    m, k = a.shape
    n = w.shape[1]
    tm = _pick_tile_m(m, k, n)
    m_pad = _round_up(m, tm)
    if m_pad != m:
        a = jnp.pad(a, ((0, m_pad - m), (0, 0)))
    num_tiles = m_pad // tm

    a = a.astype(jnp.bfloat16)
    w = w.astype(jnp.bfloat16)
    b2 = b.reshape(1, n).astype(jnp.float32)

    kernel = functools.partial(_mm_kernel, act=act, m_total=m, tm=tm,
                               with_stats=compute_stats)
    y_shape = jax.ShapeDtypeStruct((m_pad, n), out_dtype)
    y_spec = pl.BlockSpec((tm, n), lambda i: (i, 0))
    if compute_stats:
        out_shape = (y_shape, jax.ShapeDtypeStruct((num_tiles, 2, n), jnp.float32))
        out_specs = (y_spec, pl.BlockSpec((1, 2, n), lambda i: (i, 0, 0)))
    else:
        out_shape, out_specs = y_shape, y_spec

    res = pl.pallas_call(
        kernel,
        out_shape=out_shape,
        grid=(num_tiles,),
        in_specs=[pl.BlockSpec((tm, k), lambda i: (i, 0)),
                  pl.BlockSpec((k, n), lambda i: (0, 0)),
                  pl.BlockSpec((1, n), lambda i: (0, 0))],
        out_specs=out_specs,
        compiler_params=pltpu.CompilerParams(
            dimension_semantics=("parallel",),
            vmem_limit_bytes=32 * 1024 * 1024),
    )(a, w, b2)

    if compute_stats:
        y, stats = res
        return y[:m], stats.sum(axis=0)       # (m, n), (2, n)
    return res[:m]


def bn_apply(x, scale, shift, out_dtype=jnp.bfloat16):
    """Tiled per-channel affine normalize: y = x*scale + shift."""
    m, n = x.shape
    tm = min(_round_up(m, 8), 1024)
    m_pad = _round_up(m, tm)
    if m_pad != m:
        x = jnp.pad(x, ((0, m_pad - m), (0, 0)))
    y = pl.pallas_call(
        _bn_apply_kernel,
        out_shape=jax.ShapeDtypeStruct((m_pad, n), out_dtype),
        grid=(m_pad // tm,),
        in_specs=[pl.BlockSpec((tm, n), lambda i: (i, 0)),
                  pl.BlockSpec((1, n), lambda i: (0, 0)),
                  pl.BlockSpec((1, n), lambda i: (0, 0))],
        out_specs=pl.BlockSpec((tm, n), lambda i: (i, 0)),
        compiler_params=pltpu.CompilerParams(
            dimension_semantics=("parallel",),
            vmem_limit_bytes=32 * 1024 * 1024),
    )(x, scale.reshape(1, n).astype(jnp.float32),
      shift.reshape(1, n).astype(jnp.float32))
    return y[:m]


# ----------------- polyphase ConvTranspose weight / patch layout --------------

def _build_w_k4s2p1(w_t):
    """PyTorch ConvTranspose2d weight (Cin, Cout, 4, 4) -> (9*Cin, 4*Cout).
    Row blocks: 3x3 patch offsets (dy, dx) row-major over the 1-padded input;
    column blocks: output phases (ry, rx) row-major.  Tap used is
    (ky, kx) = (ry + 3 - 2*dy, rx + 3 - 2*dx) when it exists, else zero."""
    cin, cout = w_t.shape[0], w_t.shape[1]
    zero = jnp.zeros((cin, cout), w_t.dtype)
    rows = []
    for dy in range(3):
        for dx in range(3):
            cols = []
            for ry in range(2):
                for rx in range(2):
                    ky, kx = ry + 3 - 2 * dy, rx + 3 - 2 * dx
                    ok = 0 <= ky <= 3 and 0 <= kx <= 3
                    cols.append(w_t[:, :, ky, kx] if ok else zero)
            rows.append(jnp.concatenate(cols, axis=1))
    return jnp.concatenate(rows, axis=0)


def _build_w_k3s2p1(w_t):
    """(Cin, Cout, 3, 3) -> (4*Cin, 4*Cout) for the final ConvT(k=3,s=2,p=1).
    Patch offsets (dy, dx) in {0,1}^2 (input padded right/bottom by 1);
    tap (ky, kx) = (ry + 1 - 2*dy, rx + 1 - 2*dx) when it exists, else zero."""
    cin, cout = w_t.shape[0], w_t.shape[1]
    zero = jnp.zeros((cin, cout), w_t.dtype)
    rows = []
    for dy in range(2):
        for dx in range(2):
            cols = []
            for ry in range(2):
                for rx in range(2):
                    ky, kx = ry + 1 - 2 * dy, rx + 1 - 2 * dx
                    ok = 0 <= ky <= 2 and 0 <= kx <= 2
                    cols.append(w_t[:, :, ky, kx] if ok else zero)
            rows.append(jnp.concatenate(cols, axis=1))
    return jnp.concatenate(rows, axis=0)


def _patches_k4(x):
    """(B,H,W,Cin) -> (B*H*W, 9*Cin): dense 3x3 neighborhood of the 1-padded
    input (no dilation zeros), offsets (dy, dx) row-major."""
    B, H, W, C = x.shape
    xp = jnp.pad(x, ((0, 0), (1, 1), (1, 1), (0, 0)))
    cols = [xp[:, dy:dy + H, dx:dx + W, :] for dy in range(3) for dx in range(3)]
    return jnp.concatenate(cols, axis=-1).reshape(B * H * W, 9 * C)


def _patches_k3(x):
    """(B,H,W,Cin) -> (B*H*W, 4*Cin): 2x2 neighborhood, right/bottom padded."""
    B, H, W, C = x.shape
    xp = jnp.pad(x, ((0, 0), (0, 1), (0, 1), (0, 0)))
    cols = [xp[:, dy:dy + H, dx:dx + W, :] for dy in range(2) for dx in range(2)]
    return jnp.concatenate(cols, axis=-1).reshape(B * H * W, 4 * C)


def _interleave_phases(y, B, H, W, C):
    """(B*H*W, 4*C) phase layout -> (B, 2H, 2W, C) spatial layout."""
    y = y.reshape(B, H, W, 2, 2, C)
    y = jnp.transpose(y, (0, 1, 3, 2, 4, 5))
    return y.reshape(B, 2 * H, 2 * W, C)


def _unpool2x(x, fill_c):
    """2x 'MaxUnpool'-style upsample: value at the top-left of each 2x2 window,
    per-channel constant `fill_c` elsewhere."""
    B, H, W, C = x.shape
    f = jnp.broadcast_to(fill_c.astype(x.dtype), (B, H, W, C))
    xr = jnp.stack([x, f], axis=3).reshape(B, H, 2 * W, C)
    fr = jnp.broadcast_to(fill_c.astype(x.dtype), (B, H, 2 * W, C))
    return jnp.stack([xr, fr], axis=2).reshape(B, 2 * H, 2 * W, C)


# ------------------------------ parameters ------------------------------------

def init_raw_params(key, img_size, latent_dim, dim):
    fs0, fs1 = img_size[0] // 16, img_size[1] // 16
    C = img_size[2]
    chans = [8 * dim, 4 * dim, 2 * dim, dim]
    ks = jax.random.split(key, 10)
    p = {}
    p["lin_w"] = 0.05 * jax.random.normal(
        ks[0], (latent_dim, 8 * dim * fs0 * fs1), jnp.float32)
    p["lin_b"] = 0.05 * jax.random.normal(ks[1], (8 * dim * fs0 * fs1,), jnp.float32)
    for i in range(3):
        cin, cout = chans[i], chans[i + 1]
        p[f"ct{i}_w"] = 0.05 * jax.random.normal(
            ks[2 + 2 * i], (cin, cout, 4, 4), jnp.float32)   # PyTorch ConvT layout
        p[f"ct{i}_b"] = 0.05 * jax.random.normal(ks[3 + 2 * i], (cout,), jnp.float32)
        p[f"bn{i}_g"] = jnp.ones((cout,), jnp.float32)
        p[f"bn{i}_b"] = jnp.zeros((cout,), jnp.float32)
    p["ct3_w"] = 0.05 * jax.random.normal(ks[8], (dim, C, 3, 3), jnp.float32)
    p["ct3_b"] = 0.05 * jax.random.normal(ks[9], (C,), jnp.float32)
    return p


def prepare_params(raw):
    """Hoisted, one-time weight layout transforms (kept out of the forward)."""
    p = {"lin_w": raw["lin_w"].astype(jnp.bfloat16),
         "lin_b": raw["lin_b"].astype(jnp.float32)}
    for i in range(3):
        p[f"ct{i}_w"] = _build_w_k4s2p1(raw[f"ct{i}_w"]).astype(jnp.bfloat16)
        p[f"ct{i}_b"] = jnp.tile(raw[f"ct{i}_b"], 4).astype(jnp.float32)
        p[f"bn{i}_g"] = raw[f"bn{i}_g"]
        p[f"bn{i}_b"] = raw[f"bn{i}_b"]
    p["ct3_w"] = _build_w_k3s2p1(raw["ct3_w"]).astype(jnp.bfloat16)
    p["ct3_b"] = jnp.tile(raw["ct3_b"], 4).astype(jnp.float32)
    return p


# ------------------------------- forward pass ---------------------------------

def decoder_forward(params, z, *, img_size, dim):
    fs0, fs1 = img_size[0] // 16, img_size[1] // 16
    B = z.shape[0]
    eps = 1e-5

    # latent_to_features: Linear + ReLU  (Pallas matmul, lane-dense N)
    x = fused_matmul(z, params["lin_w"], params["lin_b"], act="relu",
                     out_dtype=jnp.bfloat16)
    # torch .view(-1, 8*dim, fs0, fs1) (NCHW) -> internal NHWC
    x = x.reshape(B, 8 * dim, fs0, fs1).transpose(0, 2, 3, 1)

    # three ConvT(4,2,1) blocks; blocks 1 & 2 also have MaxUnpool2d(2)
    for i in range(3):
        Bq, H, W, _ = x.shape
        wbig = params[f"ct{i}_w"]
        cout = wbig.shape[1] // 4
        pm = _patches_k4(x)                                    # (B*H*W, 9*Cin) bf16
        y, st = fused_matmul(pm, wbig, params[f"ct{i}_b"], act="relu",
                             out_dtype=jnp.bfloat16, compute_stats=True)
        m = Bq * H * W
        # BN statistics over the BN input tensor (the unpool only inserts zeros,
        # so only the element count changes: x4 phases, x4 more for unpool).
        count = 4 * m if i == 0 else 16 * m
        s = st[0].reshape(4, cout).sum(axis=0)
        sq = st[1].reshape(4, cout).sum(axis=0)
        mean = s / count
        var = sq / count - mean * mean                          # biased, like torch
        scale = params[f"bn{i}_g"] / jnp.sqrt(var + eps)
        shift = params[f"bn{i}_b"] - mean * scale
        y = bn_apply(y, jnp.tile(scale, 4), jnp.tile(shift, 4))  # compact phase layout
        x = _interleave_phases(y, Bq, H, W, cout)               # conv output (B,2H,2W,C)
        if i > 0:
            # TODO(synk): nn.MaxUnpool2d inside nn.Sequential receives no `indices`
            # tensor and cannot run in PyTorch as written; we realize it as a 2x
            # zero-insertion unpool (indices == top-left of each window).  The
            # inserted value is BN(ReLU(0)) = `shift`, since ReLU/BN follow the
            # unpool in the reference ordering.
            x = _unpool2x(x, shift)

    # final ConvTranspose2d(dim, C, 3, 2, 1) + Sigmoid
    Bq, H, W, _ = x.shape
    C = params["ct3_w"].shape[1] // 4
    pm = _patches_k3(x)
    y = fused_matmul(pm, params["ct3_w"], params["ct3_b"], act="sigmoid",
                     out_dtype=jnp.float32)
    out = _interleave_phases(y, Bq, H, W, C)[:, :2 * H - 1, :2 * W - 1, :]
    return out.transpose(0, 3, 1, 2)                            # NCHW like PyTorch


# ----------------------------------- main --------------------------------------

if __name__ == "__main__":
    img_size = (32, 32, 3)   # (H, W, C); H, W divisible by 16
    latent_dim = 16
    dim = 4
    batch = 2

    key = jax.random.PRNGKey(0)
    pkey, zkey = jax.random.split(key)
    raw = init_raw_params(pkey, img_size, latent_dim, dim)
    params = prepare_params(raw)
    z = jax.random.normal(zkey, (batch, latent_dim), jnp.float32)

    fwd = jax.jit(functools.partial(decoder_forward, img_size=img_size, dim=dim))
    out = jax.block_until_ready(fwd(params, z))

    # fs=H/16 -> ConvT x2 -> (ConvT x2, Unpool x2) x2 -> ConvT(k3,s2,p1): 4H-1
    oh, ow = 4 * img_size[0] - 1, 4 * img_size[1] - 1
    assert out.shape == (batch, img_size[2], oh, ow), out.shape
    assert bool(jnp.all(jnp.isfinite(out)))
    assert bool(jnp.all((out >= 0.0) & (out <= 1.0)))   # sigmoid output range
    print("KERNEL_OK")
</pallas_src>

<mosaic_0001>
module attributes {stable_mosaic.version = 11 : i64} {
  func.func @_mm_kernel(%arg0: i32, %arg1: memref<8x16xbf16, #tpu.memory_space<vmem>>, %arg2: memref<16x128xbf16, #tpu.memory_space<vmem>>, %arg3: memref<1x128xf32, #tpu.memory_space<vmem>>, %arg4: memref<8x128xbf16, #tpu.memory_space<vmem>>) attributes {dimension_semantics = [#tpu.dimension_semantics<parallel>], iteration_bounds = array<i64: 1>, scalar_prefetch = 0 : i64, scratch_operands = 0 : i64, tpu.core_type = #tpu.core_type<tc>, window_params = [{transform_indices = @transform_0, window_bounds = array<i64: 8, 16>}, {pipeline_mode = #tpu.pipeline_mode<synchronous>, transform_indices = @transform_1, window_bounds = array<i64: 16, 128>}, {pipeline_mode = #tpu.pipeline_mode<synchronous>, transform_indices = @transform_2, window_bounds = array<i64: 1, 128>}, {transform_indices = @transform_3, window_bounds = array<i64: 8, 128>}]} {
    %c0 = arith.constant 0 : index
    %c0_0 = arith.constant 0 : index
    %0 = vector.load %arg1[%c0, %c0_0] : memref<8x16xbf16, #tpu.memory_space<vmem>>, vector<8x16xbf16>
    %c0_1 = arith.constant 0 : index
    %c0_2 = arith.constant 0 : index
    %1 = vector.load %arg2[%c0_1, %c0_2] : memref<16x128xbf16, #tpu.memory_space<vmem>>, vector<16x128xbf16>
    %cst = arith.constant dense<0.000000e+00> : vector<8x128xf32>
    %2 = tpu.matmul %0, %1, %cst {dimension_numbers = #tpu.dot_dimension_numbers<[1], [0], [0], [1], [0, 0, 1, 1], [], []>} : vector<8x16xbf16>, vector<16x128xbf16>, vector<8x128xf32> -> vector<8x128xf32>
    %c0_3 = arith.constant 0 : index
    %c0_4 = arith.constant 0 : index
    %3 = vector.load %arg3[%c0_3, %c0_4] : memref<1x128xf32, #tpu.memory_space<vmem>>, vector<1x128xf32>
    %4 = vector.broadcast %3 : vector<1x128xf32> to vector<8x128xf32>
    %5 = arith.addf %2, %4 : vector<8x128xf32>
    %cst_5 = arith.constant 0.000000e+00 : f32
    %6 = vector.broadcast %cst_5 : f32 to vector<8x128xf32>
    %7 = arith.maximumf %5, %6 : vector<8x128xf32>
    %8 = arith.truncf %7 : vector<8x128xf32> to vector<8x128xbf16>
    %c0_6 = arith.constant 0 : index
    %c0_7 = arith.constant 0 : index
    %9 = vector.load %arg4[%c0_6, %c0_7] : memref<8x128xbf16, #tpu.memory_space<vmem>>, vector<8x128xbf16>
    tpu.vector_store %arg4[%c0_6, %c0_7], %8 {strides = array<i32>} : memref<8x128xbf16, #tpu.memory_space<vmem>>, vector<8x128xbf16>,
    return
  }
  func.func @transform_0(%arg0: i32) -> (i32, i32) {
    %c0_i32 = arith.constant 0 : i32
    %c0_i32_0 = arith.constant 0 : i32
    return %arg0, %c0_i32 : i32, i32
  }
  func.func @transform_1(%arg0: i32) -> (i32, i32) {
    %c0_i32 = arith.constant 0 : i32
    %c0_i32_0 = arith.constant 0 : i32
    %c0_i32_1 = arith.constant 0 : i32
    return %c0_i32, %c0_i32_0 : i32, i32
  }
  func.func @transform_2(%arg0: i32) -> (i32, i32) {
    %c0_i32 = arith.constant 0 : i32
    %c0_i32_0 = arith.constant 0 : i32
    %c0_i32_1 = arith.constant 0 : i32
    return %c0_i32, %c0_i32_0 : i32, i32
  }
  func.func @transform_3(%arg0: i32) -> (i32, i32) {
    %c0_i32 = arith.constant 0 : i32
    %c0_i32_0 = arith.constant 0 : i32
    return %arg0, %c0_i32 : i32, i32
  }
}

module attributes {stable_mosaic.version = 11 : i64} {
  func.func @_mm_kernel(%arg0: i32, %arg1: memref<8x288xbf16, #tpu.memory_space<vmem>>, %arg2: memref<288x64xbf16, #tpu.memory_space<vmem>>, %arg3: memref<1x64xf32, #tpu.memory_space<vmem>>, %arg4: memref<8x64xbf16, #tpu.memory_space<vmem>>, %arg5: memref<1x2x64xf32, #tpu.memory_space<vmem>>) attributes {dimension_semantics = [#tpu.dimension_semantics<parallel>], iteration_bounds = array<i64: 1>, scalar_prefetch = 0 : i64, scratch_operands = 0 : i64, tpu.core_type = #tpu.core_type<tc>, window_params = [{transform_indices = @transform_0, window_bounds = array<i64: 8, 288>}, {pipeline_mode = #tpu.pipeline_mode<synchronous>, transform_indices = @transform_1, window_bounds = array<i64: 288, 64>}, {pipeline_mode = #tpu.pipeline_mode<synchronous>, transform_indices = @transform_2, window_bounds = array<i64: 1, 64>}, {transform_indices = @transform_3, window_bounds = array<i64: 8, 64>}, {transform_indices = @transform_4, window_bounds = array<i64: 1, 2, 64>}]} {
    %c0 = arith.constant 0 : index
    %c0_0 = arith.constant 0 : index
    %0 = vector.load %arg1[%c0, %c0_0] : memref<8x288xbf16, #tpu.memory_space<vmem>>, vector<8x288xbf16>
    %c0_1 = arith.constant 0 : index
    %c0_2 = arith.constant 0 : index
    %1 = vector.load %arg2[%c0_1, %c0_2] : memref<288x64xbf16, #tpu.memory_space<vmem>>, vector<288x64xbf16>
    %cst = arith.constant dense<0.000000e+00> : vector<8x64xf32>
    %2 = tpu.matmul %0, %1, %cst {dimension_numbers = #tpu.dot_dimension_numbers<[1], [0], [0], [1], [0, 0, 1, 1], [], []>} : vector<8x288xbf16>, vector<288x64xbf16>, vector<8x64xf32> -> vector<8x64xf32>
    %c0_3 = arith.constant 0 : index
    %c0_4 = arith.constant 0 : index
    %3 = vector.load %arg3[%c0_3, %c0_4] : memref<1x64xf32, #tpu.memory_space<vmem>>, vector<1x64xf32>
    %4 = vector.broadcast %3 : vector<1x64xf32> to vector<8x64xf32>
    %5 = arith.addf %2, %4 : vector<8x64xf32>
    %cst_5 = arith.constant 0.000000e+00 : f32
    %6 = vector.broadcast %cst_5 : f32 to vector<8x64xf32>
    %7 = arith.maximumf %5, %6 : vector<8x64xf32>
    %8 = arith.truncf %7 : vector<8x64xf32> to vector<8x64xbf16>
    %c0_6 = arith.constant 0 : index
    %c0_7 = arith.constant 0 : index
    %9 = vector.load %arg4[%c0_6, %c0_7] : memref<8x64xbf16, #tpu.memory_space<vmem>>, vector<8x64xbf16>
    tpu.vector_store %arg4[%c0_6, %c0_7], %8 {strides = array<i32>} : memref<8x64xbf16, #tpu.memory_space<vmem>>, vector<8x64xbf16>,
    %cst_8 = arith.constant dense<0.000000e+00> : vector<64xf32>
    %10 = vector.multi_reduction <add>, %7, %cst_8 [0] : vector<8x64xf32> to vector<64xf32>
    %11 = vector.shape_cast %10 : vector<64xf32> to vector<1x64xf32>
    %12 = arith.mulf %7, %7 : vector<8x64xf32>
    %cst_9 = arith.constant dense<0.000000e+00> : vector<64xf32>
    %13 = vector.multi_reduction <add>, %12, %cst_9 [0] : vector<8x64xf32> to vector<64xf32>
    %14 = vector.shape_cast %13 : vector<64xf32> to vector<1x64xf32>
    %15 = tpu.concatenate %11, %14 in 0 : vector<1x64xf32>, vector<1x64xf32> -> vector<2x64xf32>
    %16 = vector.shape_cast %15 : vector<2x64xf32> to vector<1x2x64xf32>
    %c0_10 = arith.constant 0 : index
    %c0_11 = arith.constant 0 : index
    %c0_12 = arith.constant 0 : index
    %17 = vector.load %arg5[%c0_10, %c0_11, %c0_12] : memref<1x2x64xf32, #tpu.memory_space<vmem>>, vector<1x2x64xf32>
    tpu.vector_store %arg5[%c0_10, %c0_11, %c0_12], %16 {strides = array<i32>} : memref<1x2x64xf32, #tpu.memory_space<vmem>>, vector<1x2x64xf32>,
    return
  }
  func.func @transform_0(%arg0: i32) -> (i32, i32) {
    %c0_i32 = arith.constant 0 : i32
    %c0_i32_0 = arith.constant 0 : i32
    return %arg0, %c0_i32 : i32, i32
  }
  func.func @transform_1(%arg0: i32) -> (i32, i32) {
    %c0_i32 = arith.constant 0 : i32
    %c0_i32_0 = arith.constant 0 : i32
    %c0_i32_1 = arith.constant 0 : i32
    return %c0_i32, %c0_i32_0 : i32, i32
  }
  func.func @transform_2(%arg0: i32) -> (i32, i32) {
    %c0_i32 = arith.constant 0 : i32
    %c0_i32_0 = arith.constant 0 : i32
    %c0_i32_1 = arith.constant 0 : i32
    return %c0_i32, %c0_i32_0 : i32, i32
  }
  func.func @transform_3(%arg0: i32) -> (i32, i32) {
    %c0_i32 = arith.constant 0 : i32
    %c0_i32_0 = arith.constant 0 : i32
    return %arg0, %c0_i32 : i32, i32
  }
  func.func @transform_4(%arg0: i32) -> (i32, i32, i32) {
    %c0_i32 = arith.constant 0 : i32
    %c0_i32_0 = arith.constant 0 : i32
    %c0_i32_1 = arith.constant 0 : i32
    return %arg0, %c0_i32, %c0_i32_0 : i32, i32, i32
  }
}

module attributes {stable_mosaic.version = 11 : i64} {
  func.func @_bn_apply_kernel(%arg0: i32, %arg1: memref<8x64xbf16, #tpu.memory_space<vmem>>, %arg2: memref<1x64xf32, #tpu.memory_space<vmem>>, %arg3: memref<1x64xf32, #tpu.memory_space<vmem>>, %arg4: memref<8x64xbf16, #tpu.memory_space<vmem>>) attributes {dimension_semantics = [#tpu.dimension_semantics<parallel>], iteration_bounds = array<i64: 1>, scalar_prefetch = 0 : i64, scratch_operands = 0 : i64, tpu.core_type = #tpu.core_type<tc>, window_params = [{transform_indices = @transform_0, window_bounds = array<i64: 8, 64>}, {pipeline_mode = #tpu.pipeline_mode<synchronous>, transform_indices = @transform_1, window_bounds = array<i64: 1, 64>}, {pipeline_mode = #tpu.pipeline_mode<synchronous>, transform_indices = @transform_2, window_bounds = array<i64: 1, 64>}, {transform_indices = @transform_3, window_bounds = array<i64: 8, 64>}]} {
    %c0 = arith.constant 0 : index
    %c0_0 = arith.constant 0 : index
    %0 = vector.load %arg1[%c0, %c0_0] : memref<8x64xbf16, #tpu.memory_space<vmem>>, vector<8x64xbf16>
    %1 = arith.extf %0 : vector<8x64xbf16> to vector<8x64xf32>
    %c0_1 = arith.constant 0 : index
    %c0_2 = arith.constant 0 : index
    %2 = vector.load %arg2[%c0_1, %c0_2] : memref<1x64xf32, #tpu.memory_space<vmem>>, vector<1x64xf32>
    %3 = vector.broadcast %2 : vector<1x64xf32> to vector<8x64xf32>
    %4 = arith.mulf %1, %3 : vector<8x64xf32>
    %c0_3 = arith.constant 0 : index
    %c0_4 = arith.constant 0 : index
    %5 = vector.load %arg3[%c0_3, %c0_4] : memref<1x64xf32, #tpu.memory_space<vmem>>, vector<1x64xf32>
    %6 = vector.broadcast %5 : vector<1x64xf32> to vector<8x64xf32>
    %7 = arith.addf %4, %6 : vector<8x64xf32>
    %8 = arith.truncf %7 : vector<8x64xf32> to vector<8x64xbf16>
    %c0_5 = arith.constant 0 : index
    %c0_6 = arith.constant 0 : index
    %9 = vector.load %arg4[%c0_5, %c0_6] : memref<8x64xbf16, #tpu.memory_space<vmem>>, vector<8x64xbf16>
    tpu.vector_store %arg4[%c0_5, %c0_6], %8 {strides = array<i32>} : memref<8x64xbf16, #tpu.memory_space<vmem>>, vector<8x64xbf16>,
    return
  }
  func.func @transform_0(%arg0: i32) -> (i32, i32) {
    %c0_i32 = arith.constant 0 : i32
    %c0_i32_0 = arith.constant 0 : i32
    return %arg0, %c0_i32 : i32, i32
  }
  func.func @transform_1(%arg0: i32) -> (i32, i32) {
    %c0_i32 = arith.constant 0 : i32
    %c0_i32_0 = arith.constant 0 : i32
    %c0_i32_1 = arith.constant 0 : i32
    return %c0_i32, %c0_i32_0 : i32, i32
  }
  func.func @transform_2(%arg0: i32) -> (i32, i32) {
    %c0_i32 = arith.constant 0 : i32
    %c0_i32_0 = arith.constant 0 : i32
    %c0_i32_1 = arith.constant 0 : i32
    return %c0_i32, %c0_i32_0 : i32, i32
  }
  func.func @transform_3(%arg0: i32) -> (i32, i32) {
    %c0_i32 = arith.constant 0 : i32
    %c0_i32_0 = arith.constant 0 : i32
    return %arg0, %c0_i32 : i32, i32
  }
}

module attributes {stable_mosaic.version = 11 : i64} {
  func.func @_mm_kernel(%arg0: i32, %arg1: memref<32x144xbf16, #tpu.memory_space<vmem>>, %arg2: memref<144x32xbf16, #tpu.memory_space<vmem>>, %arg3: memref<1x32xf32, #tpu.memory_space<vmem>>, %arg4: memref<32x32xbf16, #tpu.memory_space<vmem>>, %arg5: memref<1x2x32xf32, #tpu.memory_space<vmem>>) attributes {dimension_semantics = [#tpu.dimension_semantics<parallel>], iteration_bounds = array<i64: 1>, scalar_prefetch = 0 : i64, scratch_operands = 0 : i64, tpu.core_type = #tpu.core_type<tc>, window_params = [{transform_indices = @transform_0, window_bounds = array<i64: 32, 144>}, {pipeline_mode = #tpu.pipeline_mode<synchronous>, transform_indices = @transform_1, window_bounds = array<i64: 144, 32>}, {pipeline_mode = #tpu.pipeline_mode<synchronous>, transform_indices = @transform_2, window_bounds = array<i64: 1, 32>}, {transform_indices = @transform_3, window_bounds = array<i64: 32, 32>}, {transform_indices = @transform_4, window_bounds = array<i64: 1, 2, 32>}]} {
    %c0 = arith.constant 0 : index
    %c0_0 = arith.constant 0 : index
    %0 = vector.load %arg1[%c0, %c0_0] : memref<32x144xbf16, #tpu.memory_space<vmem>>, vector<32x144xbf16>
    %c0_1 = arith.constant 0 : index
    %c0_2 = arith.constant 0 : index
    %1 = vector.load %arg2[%c0_1, %c0_2] : memref<144x32xbf16, #tpu.memory_space<vmem>>, vector<144x32xbf16>
    %cst = arith.constant dense<0.000000e+00> : vector<32x32xf32>
    %2 = tpu.matmul %0, %1, %cst {dimension_numbers = #tpu.dot_dimension_numbers<[1], [0], [0], [1], [0, 0, 1, 1], [], []>} : vector<32x144xbf16>, vector<144x32xbf16>, vector<32x32xf32> -> vector<32x32xf32>
    %c0_3 = arith.constant 0 : index
    %c0_4 = arith.constant 0 : index
    %3 = vector.load %arg3[%c0_3, %c0_4] : memref<1x32xf32, #tpu.memory_space<vmem>>, vector<1x32xf32>
    %4 = vector.broadcast %3 : vector<1x32xf32> to vector<32x32xf32>
    %5 = arith.addf %2, %4 : vector<32x32xf32>
    %cst_5 = arith.constant 0.000000e+00 : f32
    %6 = vector.broadcast %cst_5 : f32 to vector<32x32xf32>
    %7 = arith.maximumf %5, %6 : vector<32x32xf32>
    %8 = arith.truncf %7 : vector<32x32xf32> to vector<32x32xbf16>
    %c0_6 = arith.constant 0 : index
    %c0_7 = arith.constant 0 : index
    %9 = vector.load %arg4[%c0_6, %c0_7] : memref<32x32xbf16, #tpu.memory_space<vmem>>, vector<32x32xbf16>
    tpu.vector_store %arg4[%c0_6, %c0_7], %8 {strides = array<i32>} : memref<32x32xbf16, #tpu.memory_space<vmem>>, vector<32x32xbf16>,
    %cst_8 = arith.constant dense<0.000000e+00> : vector<32xf32>
    %10 = vector.multi_reduction <add>, %7, %cst_8 [0] : vector<32x32xf32> to vector<32xf32>
    %11 = vector.shape_cast %10 : vector<32xf32> to vector<1x32xf32>
    %12 = arith.mulf %7, %7 : vector<32x32xf32>
    %cst_9 = arith.constant dense<0.000000e+00> : vector<32xf32>
    %13 = vector.multi_reduction <add>, %12, %cst_9 [0] : vector<32x32xf32> to vector<32xf32>
    %14 = vector.shape_cast %13 : vector<32xf32> to vector<1x32xf32>
    %15 = tpu.concatenate %11, %14 in 0 : vector<1x32xf32>, vector<1x32xf32> -> vector<2x32xf32>
    %16 = vector.shape_cast %15 : vector<2x32xf32> to vector<1x2x32xf32>
    %c0_10 = arith.constant 0 : index
    %c0_11 = arith.constant 0 : index
    %c0_12 = arith.constant 0 : index
    %17 = vector.load %arg5[%c0_10, %c0_11, %c0_12] : memref<1x2x32xf32, #tpu.memory_space<vmem>>, vector<1x2x32xf32>
    tpu.vector_store %arg5[%c0_10, %c0_11, %c0_12], %16 {strides = array<i32>} : memref<1x2x32xf32, #tpu.memory_space<vmem>>, vector<1x2x32xf32>,
    return
  }
  func.func @transform_0(%arg0: i32) -> (i32, i32) {
    %c0_i32 = arith.constant 0 : i32
    %c0_i32_0 = arith.constant 0 : i32
    return %arg0, %c0_i32 : i32, i32
  }
  func.func @transform_1(%arg0: i32) -> (i32, i32) {
    %c0_i32 = arith.constant 0 : i32
    %c0_i32_0 = arith.constant 0 : i32
    %c0_i32_1 = arith.constant 0 : i32
    return %c0_i32, %c0_i32_0 : i32, i32
  }
  func.func @transform_2(%arg0: i32) -> (i32, i32) {
    %c0_i32 = arith.constant 0 : i32
    %c0_i32_0 = arith.constant 0 : i32
    %c0_i32_1 = arith.constant 0 : i32
    return %c0_i32, %c0_i32_0 : i32, i32
  }
  func.func @transform_3(%arg0: i32) -> (i32, i32) {
    %c0_i32 = arith.constant 0 : i32
    %c0_i32_0 = arith.constant 0 : i32
    return %arg0, %c0_i32 : i32, i32
  }
  func.func @transform_4(%arg0: i32) -> (i32, i32, i32) {
    %c0_i32 = arith.constant 0 : i32
    %c0_i32_0 = arith.constant 0 : i32
    %c0_i32_1 = arith.constant 0 : i32
    return %arg0, %c0_i32, %c0_i32_0 : i32, i32, i32
  }
}

module attributes {stable_mosaic.version = 11 : i64} {
  func.func @_bn_apply_kernel(%arg0: i32, %arg1: memref<32x32xbf16, #tpu.memory_space<vmem>>, %arg2: memref<1x32xf32, #tpu.memory_space<vmem>>, %arg3: memref<1x32xf32, #tpu.memory_space<vmem>>, %arg4: memref<32x32xbf16, #tpu.memory_space<vmem>>) attributes {dimension_semantics = [#tpu.dimension_semantics<parallel>], iteration_bounds = array<i64: 1>, scalar_prefetch = 0 : i64, scratch_operands = 0 : i64, tpu.core_type = #tpu.core_type<tc>, window_params = [{transform_indices = @transform_0, window_bounds = array<i64: 32, 32>}, {pipeline_mode = #tpu.pipeline_mode<synchronous>, transform_indices = @transform_1, window_bounds = array<i64: 1, 32>}, {pipeline_mode = #tpu.pipeline_mode<synchronous>, transform_indices = @transform_2, window_bounds = array<i64: 1, 32>}, {transform_indices = @transform_3, window_bounds = array<i64: 32, 32>}]} {
    %c0 = arith.constant 0 : index
    %c0_0 = arith.constant 0 : index
    %0 = vector.load %arg1[%c0, %c0_0] : memref<32x32xbf16, #tpu.memory_space<vmem>>, vector<32x32xbf16>
    %1 = arith.extf %0 : vector<32x32xbf16> to vector<32x32xf32>
    %c0_1 = arith.constant 0 : index
    %c0_2 = arith.constant 0 : index
    %2 = vector.load %arg2[%c0_1, %c0_2] : memref<1x32xf32, #tpu.memory_space<vmem>>, vector<1x32xf32>
    %3 = vector.broadcast %2 : vector<1x32xf32> to vector<32x32xf32>
    %4 = arith.mulf %1, %3 : vector<32x32xf32>
    %c0_3 = arith.constant 0 : index
    %c0_4 = arith.constant 0 : index
    %5 = vector.load %arg3[%c0_3, %c0_4] : memref<1x32xf32, #tpu.memory_space<vmem>>, vector<1x32xf32>
    %6 = vector.broadcast %5 : vector<1x32xf32> to vector<32x32xf32>
    %7 = arith.addf %4, %6 : vector<32x32xf32>
    %8 = arith.truncf %7 : vector<32x32xf32> to vector<32x32xbf16>
    %c0_5 = arith.constant 0 : index
    %c0_6 = arith.constant 0 : index
    %9 = vector.load %arg4[%c0_5, %c0_6] : memref<32x32xbf16, #tpu.memory_space<vmem>>, vector<32x32xbf16>
    tpu.vector_store %arg4[%c0_5, %c0_6], %8 {strides = array<i32>} : memref<32x32xbf16, #tpu.memory_space<vmem>>, vector<32x32xbf16>,
    return
  }
  func.func @transform_0(%arg0: i32) -> (i32, i32) {
    %c0_i32 = arith.constant 0 : i32
    %c0_i32_0 = arith.constant 0 : i32
    return %arg0, %c0_i32 : i32, i32
  }
  func.func @transform_1(%arg0: i32) -> (i32, i32) {
    %c0_i32 = arith.constant 0 : i32
    %c0_i32_0 = arith.constant 0 : i32
    %c0_i32_1 = arith.constant 0 : i32
    return %c0_i32, %c0_i32_0 : i32, i32
  }
  func.func @transform_2(%arg0: i32) -> (i32, i32) {
    %c0_i32 = arith.constant 0 : i32
    %c0_i32_0 = arith.constant 0 : i32
    %c0_i32_1 = arith.constant 0 : i32
    return %c0_i32, %c0_i32_0 : i32, i32
  }
  func.func @transform_3(%arg0: i32) -> (i32, i32) {
    %c0_i32 = arith.constant 0 : i32
    %c0_i32_0 = arith.constant 0 : i32
    return %arg0, %c0_i32 : i32, i32
  }
}

module attributes {stable_mosaic.version = 11 : i64} {
  func.func @_mm_kernel(%arg0: i32, %arg1: memref<512x72xbf16, #tpu.memory_space<vmem>>, %arg2: memref<72x16xbf16, #tpu.memory_space<vmem>>, %arg3: memref<1x16xf32, #tpu.memory_space<vmem>>, %arg4: memref<512x16xbf16, #tpu.memory_space<vmem>>, %arg5: memref<1x2x16xf32, #tpu.memory_space<vmem>>) attributes {dimension_semantics = [#tpu.dimension_semantics<parallel>], iteration_bounds = array<i64: 1>, scalar_prefetch = 0 : i64, scratch_operands = 0 : i64, tpu.core_type = #tpu.core_type<tc>, window_params = [{transform_indices = @transform_0, window_bounds = array<i64: 512, 72>}, {pipeline_mode = #tpu.pipeline_mode<synchronous>, transform_indices = @transform_1, window_bounds = array<i64: 72, 16>}, {pipeline_mode = #tpu.pipeline_mode<synchronous>, transform_indices = @transform_2, window_bounds = array<i64: 1, 16>}, {transform_indices = @transform_3, window_bounds = array<i64: 512, 16>}, {transform_indices = @transform_4, window_bounds = array<i64: 1, 2, 16>}]} {
    %c0 = arith.constant 0 : index
    %c0_0 = arith.constant 0 : index
    %0 = vector.load %arg1[%c0, %c0_0] : memref<512x72xbf16, #tpu.memory_space<vmem>>, vector<512x72xbf16>
    %c0_1 = arith.constant 0 : index
    %c0_2 = arith.constant 0 : index
    %1 = vector.load %arg2[%c0_1, %c0_2] : memref<72x16xbf16, #tpu.memory_space<vmem>>, vector<72x16xbf16>
    %cst = arith.constant dense<0.000000e+00> : vector<512x16xf32>
    %2 = tpu.matmul %0, %1, %cst {dimension_numbers = #tpu.dot_dimension_numbers<[1], [0], [0], [1], [0, 0, 1, 1], [], []>} : vector<512x72xbf16>, vector<72x16xbf16>, vector<512x16xf32> -> vector<512x16xf32>
    %c0_3 = arith.constant 0 : index
    %c0_4 = arith.constant 0 : index
    %3 = vector.load %arg3[%c0_3, %c0_4] : memref<1x16xf32, #tpu.memory_space<vmem>>, vector<1x16xf32>
    %4 = vector.broadcast %3 : vector<1x16xf32> to vector<512x16xf32>
    %5 = arith.addf %2, %4 : vector<512x16xf32>
    %cst_5 = arith.constant 0.000000e+00 : f32
    %6 = vector.broadcast %cst_5 : f32 to vector<512x16xf32>
    %7 = arith.maximumf %5, %6 : vector<512x16xf32>
    %8 = arith.truncf %7 : vector<512x16xf32> to vector<512x16xbf16>
    %c0_6 = arith.constant 0 : index
    %c0_7 = arith.constant 0 : index
    %9 = vector.load %arg4[%c0_6, %c0_7] : memref<512x16xbf16, #tpu.memory_space<vmem>>, vector<512x16xbf16>
    tpu.vector_store %arg4[%c0_6, %c0_7], %8 {strides = array<i32>} : memref<512x16xbf16, #tpu.memory_space<vmem>>, vector<512x16xbf16>,
    %cst_8 = arith.constant dense<0.000000e+00> : vector<16xf32>
    %10 = vector.multi_reduction <add>, %7, %cst_8 [0] : vector<512x16xf32> to vector<16xf32>
    %11 = vector.shape_cast %10 : vector<16xf32> to vector<1x16xf32>
    %12 = arith.mulf %7, %7 : vector<512x16xf32>
    %cst_9 = arith.constant dense<0.000000e+00> : vector<16xf32>
    %13 = vector.multi_reduction <add>, %12, %cst_9 [0] : vector<512x16xf32> to vector<16xf32>
    %14 = vector.shape_cast %13 : vector<16xf32> to vector<1x16xf32>
    %15 = tpu.concatenate %11, %14 in 0 : vector<1x16xf32>, vector<1x16xf32> -> vector<2x16xf32>
    %16 = vector.shape_cast %15 : vector<2x16xf32> to vector<1x2x16xf32>
    %c0_10 = arith.constant 0 : index
    %c0_11 = arith.constant 0 : index
    %c0_12 = arith.constant 0 : index
    %17 = vector.load %arg5[%c0_10, %c0_11, %c0_12] : memref<1x2x16xf32, #tpu.memory_space<vmem>>, vector<1x2x16xf32>
    tpu.vector_store %arg5[%c0_10, %c0_11, %c0_12], %16 {strides = array<i32>} : memref<1x2x16xf32, #tpu.memory_space<vmem>>, vector<1x2x16xf32>,
    return
  }
  func.func @transform_0(%arg0: i32) -> (i32, i32) {
    %c0_i32 = arith.constant 0 : i32
    %c0_i32_0 = arith.constant 0 : i32
    return %arg0, %c0_i32 : i32, i32
  }
  func.func @transform_1(%arg0: i32) -> (i32, i32) {
    %c0_i32 = arith.constant 0 : i32
    %c0_i32_0 = arith.constant 0 : i32
    %c0_i32_1 = arith.constant 0 : i32
    return %c0_i32, %c0_i32_0 : i32, i32
  }
  func.func @transform_2(%arg0: i32) -> (i32, i32) {
    %c0_i32 = arith.constant 0 : i32
    %c0_i32_0 = arith.constant 0 : i32
    %c0_i32_1 = arith.constant 0 : i32
    return %c0_i32, %c0_i32_0 : i32, i32
  }
  func.func @transform_3(%arg0: i32) -> (i32, i32) {
    %c0_i32 = arith.constant 0 : i32
    %c0_i32_0 = arith.constant 0 : i32
    return %arg0, %c0_i32 : i32, i32
  }
  func.func @transform_4(%arg0: i32) -> (i32, i32, i32) {
    %c0_i32 = arith.constant 0 : i32
    %c0_i32_0 = arith.constant 0 : i32
    %c0_i32_1 = arith.constant 0 : i32
    return %arg0, %c0_i32, %c0_i32_0 : i32, i32, i32
  }
}

module attributes {stable_mosaic.version = 11 : i64} {
  func.func @_bn_apply_kernel(%arg0: i32, %arg1: memref<512x16xbf16, #tpu.memory_space<vmem>>, %arg2: memref<1x16xf32, #tpu.memory_space<vmem>>, %arg3: memref<1x16xf32, #tpu.memory_space<vmem>>, %arg4: memref<512x16xbf16, #tpu.memory_space<vmem>>) attributes {dimension_semantics = [#tpu.dimension_semantics<parallel>], iteration_bounds = array<i64: 1>, scalar_prefetch = 0 : i64, scratch_operands = 0 : i64, tpu.core_type = #tpu.core_type<tc>, window_params = [{transform_indices = @transform_0, window_bounds = array<i64: 512, 16>}, {pipeline_mode = #tpu.pipeline_mode<synchronous>, transform_indices = @transform_1, window_bounds = array<i64: 1, 16>}, {pipeline_mode = #tpu.pipeline_mode<synchronous>, transform_indices = @transform_2, window_bounds = array<i64: 1, 16>}, {transform_indices = @transform_3, window_bounds = array<i64: 512, 16>}]} {
    %c0 = arith.constant 0 : index
    %c0_0 = arith.constant 0 : index
    %0 = vector.load %arg1[%c0, %c0_0] : memref<512x16xbf16, #tpu.memory_space<vmem>>, vector<512x16xbf16>
    %1 = arith.extf %0 : vector<512x16xbf16> to vector<512x16xf32>
    %c0_1 = arith.constant 0 : index
    %c0_2 = arith.constant 0 : index
    %2 = vector.load %arg2[%c0_1, %c0_2] : memref<1x16xf32, #tpu.memory_space<vmem>>, vector<1x16xf32>
    %3 = vector.broadcast %2 : vector<1x16xf32> to vector<512x16xf32>
    %4 = arith.mulf %1, %3 : vector<512x16xf32>
    %c0_3 = arith.constant 0 : index
    %c0_4 = arith.constant 0 : index
    %5 = vector.load %arg3[%c0_3, %c0_4] : memref<1x16xf32, #tpu.memory_space<vmem>>, vector<1x16xf32>
    %6 = vector.broadcast %5 : vector<1x16xf32> to vector<512x16xf32>
    %7 = arith.addf %4, %6 : vector<512x16xf32>
    %8 = arith.truncf %7 : vector<512x16xf32> to vector<512x16xbf16>
    %c0_5 = arith.constant 0 : index
    %c0_6 = arith.constant 0 : index
    %9 = vector.load %arg4[%c0_5, %c0_6] : memref<512x16xbf16, #tpu.memory_space<vmem>>, vector<512x16xbf16>
    tpu.vector_store %arg4[%c0_5, %c0_6], %8 {strides = array<i32>} : memref<512x16xbf16, #tpu.memory_space<vmem>>, vector<512x16xbf16>,
    return
  }
  func.func @transform_0(%arg0: i32) -> (i32, i32) {
    %c0_i32 = arith.constant 0 : i32
    %c0_i32_0 = arith.constant 0 : i32
    return %arg0, %c0_i32 : i32, i32
  }
  func.func @transform_1(%arg0: i32) -> (i32, i32) {
    %c0_i32 = arith.constant 0 : i32
    %c0_i32_0 = arith.constant 0 : i32
    %c0_i32_1 = arith.constant 0 : i32
    return %c0_i32, %c0_i32_0 : i32, i32
  }
  func.func @transform_2(%arg0: i32) -> (i32, i32) {
    %c0_i32 = arith.constant 0 : i32
    %c0_i32_0 = arith.constant 0 : i32
    %c0_i32_1 = arith.constant 0 : i32
    return %c0_i32, %c0_i32_0 : i32, i32
  }
  func.func @transform_3(%arg0: i32) -> (i32, i32) {
    %c0_i32 = arith.constant 0 : i32
    %c0_i32_0 = arith.constant 0 : i32
    return %arg0, %c0_i32 : i32, i32
  }
}

module attributes {stable_mosaic.version = 11 : i64} {
  func.func @_mm_kernel(%arg0: i32, %arg1: memref<1024x16xbf16, #tpu.memory_space<vmem>>, %arg2: memref<16x12xbf16, #tpu.memory_space<vmem>>, %arg3: memref<1x12xf32, #tpu.memory_space<vmem>>, %arg4: memref<1024x12xf32, #tpu.memory_space<vmem>>) attributes {dimension_semantics = [#tpu.dimension_semantics<parallel>], iteration_bounds = array<i64: 8>, scalar_prefetch = 0 : i64, scratch_operands = 0 : i64, tpu.core_type = #tpu.core_type<tc>, window_params = [{transform_indices = @transform_0, window_bounds = array<i64: 1024, 16>}, {pipeline_mode = #tpu.pipeline_mode<synchronous>, transform_indices = @transform_1, window_bounds = array<i64: 16, 12>}, {pipeline_mode = #tpu.pipeline_mode<synchronous>, transform_indices = @transform_2, window_bounds = array<i64: 1, 12>}, {transform_indices = @transform_3, window_bounds = array<i64: 1024, 12>}]} {
    %c0 = arith.constant 0 : index
    %c0_0 = arith.constant 0 : index
    %0 = vector.load %arg1[%c0, %c0_0] : memref<1024x16xbf16, #tpu.memory_space<vmem>>, vector<1024x16xbf16>
    %c0_1 = arith.constant 0 : index
    %c0_2 = arith.constant 0 : index
    %1 = vector.load %arg2[%c0_1, %c0_2] : memref<16x12xbf16, #tpu.memory_space<vmem>>, vector<16x12xbf16>
    %cst = arith.constant dense<0.000000e+00> : vector<1024x12xf32>
    %2 = tpu.matmul %0, %1, %cst {dimension_numbers = #tpu.dot_dimension_numbers<[1], [0], [0], [1], [0, 0, 1, 1], [], []>} : vector<1024x16xbf16>, vector<16x12xbf16>, vector<1024x12xf32> -> vector<1024x12xf32>
    %c0_3 = arith.constant 0 : index
    %c0_4 = arith.constant 0 : index
    %3 = vector.load %arg3[%c0_3, %c0_4] : memref<1x12xf32, #tpu.memory_space<vmem>>, vector<1x12xf32>
    %4 = vector.broadcast %3 : vector<1x12xf32> to vector<1024x12xf32>
    %5 = arith.addf %2, %4 : vector<1024x12xf32>
    %cst_5 = arith.constant 0.000000e+00 : f32
    %6 = vector.broadcast %cst_5 : f32 to vector<1024x12xf32>
    %7 = arith.subf %6, %5 : vector<1024x12xf32>
    %8 = math.exp %7 : vector<1024x12xf32>
    %cst_6 = arith.constant 1.000000e+00 : f32
    %9 = vector.broadcast %cst_6 : f32 to vector<1024x12xf32>
    %10 = arith.addf %9, %8 : vector<1024x12xf32>
    %cst_7 = arith.constant 1.000000e+00 : f32
    %11 = vector.broadcast %cst_7 : f32 to vector<1024x12xf32>
    %12 = arith.divf %11, %10 : vector<1024x12xf32>
    %c0_8 = arith.constant 0 : index
    %c0_9 = arith.constant 0 : index
    %13 = vector.load %arg4[%c0_8, %c0_9] : memref<1024x12xf32, #tpu.memory_space<vmem>>, vector<1024x12xf32>
    tpu.vector_store %arg4[%c0_8, %c0_9], %12 {strides = array<i32>} : memref<1024x12xf32, #tpu.memory_space<vmem>>, vector<1024x12xf32>,
    return
  }
  func.func @transform_0(%arg0: i32) -> (i32, i32) {
    %c0_i32 = arith.constant 0 : i32
    %c0_i32_0 = arith.constant 0 : i32
    return %arg0, %c0_i32 : i32, i32
  }
  func.func @transform_1(%arg0: i32) -> (i32, i32) {
    %c0_i32 = arith.constant 0 : i32
    %c0_i32_0 = arith.constant 0 : i32
    %c0_i32_1 = arith.constant 0 : i32
    return %c0_i32, %c0_i32_0 : i32, i32
  }
  func.func @transform_2(%arg0: i32) -> (i32, i32) {
    %c0_i32 = arith.constant 0 : i32
    %c0_i32_0 = arith.constant 0 : i32
    %c0_i32_1 = arith.constant 0 : i32
    return %c0_i32, %c0_i32_0 : i32, i32
  }
  func.func @transform_3(%arg0: i32) -> (i32, i32) {
    %c0_i32 = arith.constant 0 : i32
    %c0_i32_0 = arith.constant 0 : i32
    return %arg0, %c0_i32 : i32, i32
  }
}

</mosaic_0001>

<bundles_post_ra>
// kernel: decoder_forward.8
= control target key start
LH: loop header
LB: loop body
LE: loop exit
PB: predicated region body
PF: predicated region fallthrough
CT: control target
= control target key end

     0   :  { %8 = vsyncpa [#allocation3], 0  ;;  %s232_s0 = inlined_call_operand.vmem [shape: bf16[8,16], index: 0, kind: input, shape index: {}]   ;;  %s233_s1 = inlined_call_operand.hbm [shape: bf16[16,128], index: 1, kind: input, shape index: {}]   ;;  %s234_s2 = inlined_call_operand.hbm [shape: f32[1,128], index: 2, kind: input, shape index: {}]   ;;  %s235_s3 = inlined_call_operand.vmem [shape: bf16[8,128], index: 3, kind: output, shape index: {}]  }
   0x1   :  { %9 = vsyncpa [#allocation5], 0  ;;  %s176_s12 = smov [#allocation2]   ;;  %s128_s16 = scalar_lea.hbm %s233_s1, 128 }
   0x2   :  { %s17_s13 = sshll.u32 %s176_s12, 4  ;;  %p129_p0 = scmp.ne.s32.totalorder %s233_s1, %s128_s16  ;;  %s18_s13 = int_to_ptr.vmem [resolvable:$true] %s17_s13 }
   0x3   :  { %p132_p1 = scmp.lt.u32.totalorder %s128_s16, %s233_s1 }
   0x5   :  { %p134_p2 = pnand %p132_p1, %p129_p0 }
   0x7   :  { %137 = shalt.err (!%p134_p2)
}
   0x8   :  { %s138_s21 = scalar_lea.vmem %s18_s13, 128  ;;  %p143_p4 = scmp.lt.s32.totalorder %s18_s13, %s18_s13 }
   0x9   :  { %p139_p3 = scmp.ne.s32.totalorder %s18_s13, %s138_s21  ;;  %p144_p5 = scmp.lt.s32.totalorder %s138_s21, %s138_s21 }
   0xb   :  { %p145_p6 = por %p144_p5, %p143_p4 }
   0xd   :  { %p146_p7 = pnand %p145_p6, %p139_p3 }
   0xf   :  { %149 = shalt.err (!%p146_p7)
}
  0x10   :  { %s177_s22 = smov 64   ;;  %s178_s23 = smov 4  }
  0x11   :  { %23 = dma.hbm_to_vmem [thread:$0]  %s233_s1, 128, %s18_s13, [#allocation3], %s177_s22, %s177_s22, %s178_s23  }
  0x12   :  { %s179_s26 = smov [#allocation4]   ;;  %s150_s30 = scalar_lea.hbm %s234_s2, 16 }
  0x13   :  { %s30_s27 = sshll.u32 %s179_s26, 4  ;;  %p151_p8 = scmp.ne.s32.totalorder %s234_s2, %s150_s30  ;;  %s31_s27 = int_to_ptr.vmem [resolvable:$true] %s30_s27 }
  0x14   :  { %p154_p9 = scmp.lt.u32.totalorder %s150_s30, %s234_s2 }
  0x16   :  { %p156_p10 = pnand %p154_p9, %p151_p8 }
  0x18   :  { %159 = shalt.err (!%p156_p10)
}
  0x19   :  { %s160_s8 = scalar_lea.vmem %s31_s27, 16  ;;  %s164_s1 = scalar_lea.vmem %s31_s27, 32 }
  0x1a   :  { %p161_p11 = scmp.ne.s32.totalorder %s31_s27, %s160_s8  ;;  %p165_p12 = scmp.lt.s32.totalorder %s31_s27, %s31_s27 }
  0x1b   :  { %p166_p13 = scmp.lt.s32.totalorder %s164_s1, %s160_s8 }
  0x1d   :  { %p167_p0 = por %p166_p13, %p165_p12 }
  0x1f   :  { %p168_p1 = pnand %p167_p0, %p161_p11 }
  0x21   :  { %171 = shalt.err (!%p168_p1)
}
  0x22   :  { %33 = dma.hbm_to_vmem [thread:$0]  %s234_s2, 16, %s31_s27, [#allocation5]  }
  0x23   :  { %172 = dma.done.wait [#allocation3], 128  }
  0x24   :  { %173 = vsyncadd [#allocation3], 4294967168 }
  0x25   :  { %174 = dma.done.wait [#allocation5], 16  }
  0x26   :  { %175 = vsyncadd [#allocation5], 4294967280  ;;  %v180_v0 = vmov 0.0   ;;  %vm181_vm0 = vmmov 0   ;;  %v127_v1 = vld [vmem:[#allocation2] sm:$0xff]   ;;  %vm57_vm1 = vcmask 130048  }
  0x27   :  { %115 = vmatprep.subr.bf16.mxu0 %v180_v0  ;;  %117 = vmatprep.mubr.msk.bf16.mxu0 %vm181_vm0, %v180_v0  ;;  %v41_v2 = vld [vmem:[%s232_s0] sm:$0xf]  ;;  %v110_v3 = vld [vmem:[#allocation4] ss:$0 sm:$0xff] }
  0x28   :  { %116 = vmatpush3.bf16.msra.mxu0 %v127_v1 }
  0x2b   :  { %118 = vmatmul.mubr.msk.bf16.vlgmr.msra.gmra.mrb[0].mxu0 %vm57_vm1, %v41_v2 }
  0xfe   :  { %v95_v4 = vpop.f32.mrb[0].mxu0 }
  0xff   :  { %v96_v5 = vadd.f32 %v110_v3, %v95_v4  ;;  %v119_v6 = vpop.f32.mrb[1].mxu0 }
 0x100   :  { %v98_v7 = vpop.f32.mrb[2].mxu0 }
 0x101   :  { %v101_v8 = vmax.f32 %v96_v5, 0.0  ;;  %v120_v9 = vpop.f32.mrb[3].mxu0 }
 0x103   :  { %v102_v10 = vpack.c.bf16 %v101_v8, %v101_v8 }
 0x105   :  { %103 = vst [vmem:[%s235_s3] sm:$0xf] %v102_v10 }
 0x106   :  { %108 = vsyncpa [#allocation3], 1 }
 0x107   :  { %109 = vsyncpa [#allocation5], 1 }

// kernel: squeeze.6
= control target key start
LH: loop header
LB: loop body
LE: loop exit
PB: predicated region body
PF: predicated region fallthrough
CT: control target
= control target key end

     0   :  { %s37_s8 = smov 80   ;;  %vm7_vm0 = vcmask 130048   ;;  %s38_s9 = smov 96   ;;  %s55_s0 = inlined_call_operand.vmem [shape: f32[64], index: 0, kind: input, shape index: {}]   ;;  %s56_s1 = inlined_call_operand.vmem [shape: f32[4,16], index: 1, kind: output, shape index: {}]  }
   0x1   :  { %v4_v0 = vld [vmem:[%s55_s0] sm:$0x1]  ;;  %s36_s0 = smov 112  }
   0x2   :  { %5 = vst [vmem:[#allocation1] sm:$0x1] %v4_v0 }
   0x9   :  { %v9_v1 = vld [vmem:[#allocation1] sm:$0x1]  }
   0xa   :  { %v21_v2 = vld [vmem:[#allocation1] sm:$0x1]   ;;  %10 = vrot.lane.b32.xlu0 %v9_v1, %s36_s0 }
   0xb   :  { %22 = vrot.lane.b32.xlu1 %v21_v2, %s37_s8  ;;  %v6_v3 = vld [vmem:[#allocation1] sm:$0x1]  }
   0xc   :  { %v15_v4 = vld [vmem:[#allocation1] sm:$0x1]   ;;  %8 = vst.msk [vmem:[#allocation0] sm:$0x1] %vm7_vm0, %v6_v3  }
   0xe   :  { %16 = vrot.lane.b32.xlu0 %v15_v4, %s38_s9 }
  0x7c   :  { %v11_v5 = vpop.permute.xlu0 %10  }
  0x7d   :  { %v23_v6 = vpop.permute.xlu1 %22   ;;  %14 = vst.msk [vmem:[#allocation0 + $0x1] sm:$0x1] %vm7_vm0, %v11_v5  }
  0x7e   :  { %26 = vst.msk [vmem:[#allocation0 + $0x3] sm:$0x1] %vm7_vm0, %v23_v6  }
  0x80   :  { %v17_v7 = vpop.permute.xlu0 %16  }
  0x81   :  { %20 = vst.msk [vmem:[#allocation0 + $0x2] sm:$0x1] %vm7_vm0, %v17_v7  }
  0x88   :  { %v30_v8 = vld [vmem:[#allocation0] sm:$0xf] }
  0x89   :  { %32 = vst [vmem:[%s56_s1] sm:$0xf] %v30_v8 }

// kernel: tile.37
= control target key start
LH: loop header
LB: loop body
LE: loop exit
PB: predicated region body
PF: predicated region fallthrough
CT: control target
= control target key end

     0   :  { %s22_s0 = inlined_call_operand.vmem [shape: f32[16], index: 0, kind: input, shape index: {}]   ;;  %s23_s1 = inlined_call_operand.vmem [shape: f32[4,16], index: 1, kind: output, shape index: {}]  }
   0x1   :  { %v4_v0 = vld [vmem:[%s22_s0] ss:$0 sm:$0xff] }
   0x2   :  { %5 = vst [vmem:[%s23_s1] sm:$0xf] %v4_v0 }

// kernel: tile.39
= control target key start
LH: loop header
LB: loop body
LE: loop exit
PB: predicated region body
PF: predicated region fallthrough
CT: control target
= control target key end

     0   :  { %vm7_vm0 = vcmask 130048   ;;  %s37_s8 = smov 16   ;;  %s38_s9 = smov 32   ;;  %vm13_vm1 = vcmask 523648   ;;  %vm19_vm2 = vcmask 392448   ;;  %vm25_vm3 = vcmask 261248   ;;  %s55_s0 = inlined_call_operand.vmem [shape: f32[4,16], index: 0, kind: input, shape index: {}]   ;;  %s56_s1 = inlined_call_operand.vmem [shape: f32[1,64], index: 1, kind: output, shape index: {}]  }
   0x1   :  { %v4_v0 = vld [vmem:[%s55_s0] sm:$0xf]  ;;  %s36_s0 = smov 48  }
   0x2   :  { %5 = vst [vmem:[#allocation1] sm:$0xf] %v4_v0 }
   0x9   :  { %v10_v1 = vld [vmem:[#allocation1 + $0x3] sm:$0x1]   ;;  %v22_v2 = vld [vmem:[#allocation1 + $0x1] sm:$0x1]   ;;  %v6_v3 = vld [vmem:[#allocation1] sm:$0x1]  }
   0xa   :  { %11 = vrot.lane.b32.xlu0 %v10_v1, %s36_s0  ;;  %23 = vrot.lane.b32.xlu1 %v22_v2, %s37_s8  ;;  %v16_v4 = vld [vmem:[#allocation1 + $0x2] sm:$0x1]   ;;  %8 = vst.msk [vmem:[#allocation0] sm:$0x1] %vm7_vm0, %v6_v3  }
   0xe   :  { %17 = vrot.lane.b32.xlu0 %v16_v4, %s38_s9 }
  0x7c   :  { %v12_v5 = vpop.permute.xlu0 %11   ;;  %v24_v6 = vpop.permute.xlu1 %23  }
  0x7d   :  { %14 = vst.msk [vmem:[#allocation0] sm:$0x1] %vm13_vm1, %v12_v5  }
  0x80   :  { %v18_v7 = vpop.permute.xlu0 %17  }
  0x81   :  { %20 = vst.msk [vmem:[#allocation0] sm:$0x1] %vm19_vm2, %v18_v7  }
  0x82   :  { %26 = vst.msk [vmem:[#allocation0] sm:$0x1] %vm25_vm3, %v24_v6  }
  0x89   :  { %v30_v8 = vld [vmem:[#allocation0] sm:$0x1] }
  0x8a   :  { %32 = vst [vmem:[%s56_s1] sm:$0x1] %v30_v8 }

// kernel: decoder_forward.9
= control target key start
LH: loop header
LB: loop body
LE: loop exit
PB: predicated region body
PF: predicated region fallthrough
CT: control target
= control target key end

     0   :  { %10 = vsyncpa [#allocation3], 0  ;;  %s413_s15 = smov [#allocation2]   ;;  %s519_s0 = inlined_call_operand.vmem [shape: bf16[8,288], index: 0, kind: input, shape index: {}]   ;;  %s520_s1 = inlined_call_operand.vmem [shape: bf16[288,64], index: 1, kind: input, shape index: {}]   ;;  %s521_s2 = inlined_call_operand.hbm [shape: f32[1,64], index: 2, kind: input, shape index: {}]   ;;  %s522_s3 = inlined_call_operand.vmem [shape: bf16[8,64], index: 3, kind: output, shape index: {0}]   ;;  %s523_s4 = inlined_call_operand.vmem [shape: f32[1,2,64], index: 4, kind: output, shape index: {1}]  }
   0x1   :  { %s21_s16 = sshll.u32 %s413_s15, 4  ;;  %s389_s19 = scalar_lea.hbm %s521_s2, 16  ;;  %s22_s16 = int_to_ptr.vmem [resolvable:$true] %s21_s16 }
   0x2   :  { %p390_p0 = scmp.ne.s32.totalorder %s521_s2, %s389_s19  ;;  %p393_p1 = scmp.lt.u32.totalorder %s389_s19, %s521_s2 }
   0x4   :  { %p395_p2 = pnand %p393_p1, %p390_p0 }
   0x6   :  { %398 = shalt.err (!%p395_p2)
}
   0x7   :  { %s399_s24 = scalar_lea.vmem %s22_s16, 16  ;;  %s403_s25 = scalar_lea.vmem %s22_s16, 32 }
   0x8   :  { %p400_p3 = scmp.ne.s32.totalorder %s22_s16, %s399_s24  ;;  %p404_p4 = scmp.lt.s32.totalorder %s22_s16, %s22_s16 }
   0x9   :  { %p405_p5 = scmp.lt.s32.totalorder %s403_s25, %s399_s24 }
   0xb   :  { %p406_p6 = por %p405_p5, %p404_p4 }
   0xd   :  { %p407_p7 = pnand %p406_p6, %p400_p3 }
   0xf   :  { %410 = shalt.err (!%p407_p7)
}
  0x10   :  { %24 = dma.hbm_to_vmem [thread:$0]  %s521_s2, 16, %s22_s16, [#allocation3]  }
  0x11   :  { %411 = dma.done.wait [#allocation3], 16  }
  0x12   :  { %412 = vsyncadd [#allocation3], 4294967280  ;;  %v414_v0 = vmov 0.0   ;;  %vm415_vm0 = vmmov 0   ;;  %v368_v1 = vld [vmem:[%s520_s1 + $0x40] sm:$0xff]   ;;  %v370_v3 = vld [vmem:[%s520_s1 + $0x48] sm:$0xff]  }
  0x13   :  { %357 = vmatprep.subr.bf16.mxu1 %v414_v0  ;;  %361 = vmatprep.mubr.msk.bf16.mxu1 %vm415_vm0, %v414_v0  ;;  %v369_v2 = vld [vmem:[%s520_s1] sm:$0xff]   ;;  %v371_v4 = vld [vmem:[%s520_s1 + $0x8] sm:$0xff]   ;;  %v372_v5 = vld [vmem:[%s520_s1 + $0x50] sm:$0xff]   ;;  %vm192_vm1 = vcmask 261120   ;;  %vm280_vm2 = vcmask 523264   ;;  %vm278_vm3 = vcmask 519168  }
  0x14   :  { %332 = vmatprep.subr.bf16.mxu0 %v368_v1  ;;  %v373_v6 = vld [vmem:[%s520_s1 + $0x10] sm:$0xff]   ;;  %v374_v7 = vld [vmem:[%s520_s1 + $0x58] sm:$0xff]   ;;  %v376_v9 = vld [vmem:[%s520_s1 + $0x60] sm:$0xff]   ;;  %vm296_vm4 = vcmask 1040384   ;;  %vm298_vm5 = vcmask 517120  }
  0x15   :  { %333 = vmatpush3.bf16.msra.mxu0 %v369_v2  ;;  %v375_v8 = vld [vmem:[%s520_s1 + $0x18] sm:$0xff]   ;;  %v382_v10 = vld [vmem:[%s520_s1 + $0x80] sm:$0xff]   ;;  %v378_v12 = vld [vmem:[%s520_s1 + $0x68] sm:$0xff]  }
  0x16   :  { %334 = vmatprep.subr.bf16.mxu0 %v370_v3  ;;  %v377_v11 = vld [vmem:[%s520_s1 + $0x20] sm:$0xff]   ;;  %358 = vmatpush3.bf16.msra.mxu1 %v382_v10  ;;  %v387_v15 = vld [vmem:[%s520_s1 + $0x88] sm:$0xff]   ;;  %v380_v17 = vld [vmem:[%s520_s1 + $0x70] sm:$0xff]  }
  0x17   :  { %359 = vmatprep.subr.bf16.mxu1 %v414_v0  ;;  %v29_v13 = vld [vmem:[%s519_s0] sm:$0xff]  ;;  %v379_v16 = vld [vmem:[%s520_s1 + $0x28] sm:$0xff]   ;;  %v381_v19 = vld [vmem:[%s520_s1 + $0x30] sm:$0xff]  }
  0x18   :  { %v311_v14 = vcombine.high %v29_v13, %v29_v13  ;;  %v388_v18 = vld [vmem:[%s519_s0 + $0x8] ss:$0 sps:$4 sm:$0xff]   ;;  %v383_v20 = vld [vmem:[%s520_s1 + $0x78] sm:$0xff]   ;;  %v310_v22 = vcombine.low %v29_v13, %v29_v13  ;;  %v309_v29 = vld [vmem:[#allocation2] ss:$0 sm:$0xff] }
  0x19   :  { %335 = vmatpush3.bf16.msra.mxu0 %v371_v4  ;;  %v384_v21 = vld [vmem:[%s520_s1 + $0x38] sm:$0xff]  }
  0x1a   :  { %336 = vmatprep.subr.bf16.mxu0 %v372_v5  ;;  %228 = vmatprep.mubr.bf16.mxu0 %v311_v14 }
  0x1b   :  { %360 = vmatpush3.bf16.msra.mxu1 %v387_v15 }
  0x1d   :  { %337 = vmatpush3.bf16.msra.mxu0 %v373_v6 }
  0x1e   :  { %338 = vmatprep.subr.bf16.mxu0 %v374_v7  ;;  %362 = vmatmul.mubr.msk.bf16.vlgmr.msra.gmra.mrb[0].mxu1 %vm192_vm1, %v388_v18 }
  0x21   :  { %339 = vmatpush3.bf16.msra.mxu0 %v375_v8 }
  0x22   :  { %340 = vmatprep.subr.bf16.mxu0 %v376_v9 }
  0x25   :  { %341 = vmatpush3.bf16.msra.mxu0 %v377_v11 }
  0x26   :  { %342 = vmatprep.subr.bf16.mxu0 %v378_v12 }
  0x29   :  { %343 = vmatpush3.bf16.msra.mxu0 %v379_v16 }
  0x2a   :  { %344 = vmatprep.subr.bf16.mxu0 %v380_v17 }
  0x2d   :  { %345 = vmatpush3.bf16.msra.mxu0 %v381_v19 }
  0x2e   :  { %346 = vmatprep.subr.bf16.mxu0 %v383_v20 }
  0x31   :  { %347 = vmatpush3.bf16.msra.mxu0 %v384_v21 }
  0x34   :  { %229 = vmatmul.mubr.bf16.vlgmr.msra.gmra.mrb[0].mxu0 %v310_v22 }
  0xf1   :  { %v270_v23 = vpop.f32.mrb[0].mxu1 }
  0xf2   :  { %v363_v24 = vpop.f32.mrb[1].mxu1 }
  0xf3   :  { %v273_v25 = vpop.f32.mrb[2].mxu1 }
  0xf4   :  { %v364_v26 = vpop.f32.mrb[3].mxu1 }
 0x107   :  { %v348_v27 = vpop.f32.mrb[0].mxu0 }
 0x108   :  { %v349_v28 = vpop.f32.mrb[1].mxu0 }
 0x109   :  { %v350_v30 = vadd.f32 %v349_v28, %v348_v27  ;;  %v351_v31 = vpop.f32.mrb[2].mxu0 }
 0x10a   :  { %v352_v32 = vpop.f32.mrb[3].mxu0 }
 0x10b   :  { %v231_v33 = vadd.f32 %v350_v30, %v309_v29 }
 0x10d   :  { %v271_v34 = vadd.f32 %v270_v23, %v231_v33 }
 0x10f   :  { %v276_v35 = vmax.f32 %v271_v34, 0.0 }
 0x111   :  { %v277_v36 = vpack.c.bf16 %v276_v35, %v276_v35  ;;  %v281_v37 = vsel %vm280_vm2, %v276_v35, 0.0  ;;  %v288_v38 = vmul.f32 %v276_v35, %v276_v35 }
 0x112   :  { %v282_v39 = vrot.slane %v281_v37, 4 }
 0x113   :  { %279 = vst.msk [vmem:[%s522_s3] sm:$0xf] %vm278_vm3, %v277_v36  ;;  %v289_v40 = vsel %vm280_vm2, %v288_v38, 0.0 }
 0x114   :  { %v283_v41 = vadd.f32 %v282_v39, %v281_v37  ;;  %v290_v42 = vrot.slane %v289_v40, 4 }
 0x116   :  { %v284_v43 = vrot.slane %v283_v41, 2  ;;  %v291_v44 = vadd.f32 %v290_v42, %v289_v40 }
 0x118   :  { %v285_v45 = vadd.f32 %v284_v43, %v283_v41  ;;  %v292_v46 = vrot.slane %v291_v44, 2 }
 0x11a   :  { %v286_v47 = vrot.slane %v285_v45, 1  ;;  %v293_v48 = vadd.f32 %v292_v46, %v291_v44 }
 0x11c   :  { %v294_v49 = vrot.slane %v293_v48, 1  ;;  %v287_v50 = vadd.f32 %v286_v47, %v285_v45 }
 0x11e   :  { %v295_v51 = vadd.f32 %v294_v49, %v293_v48 }
 0x120   :  { %v297_v52 = vsel %vm296_vm4, %v287_v50, %v295_v51 }
 0x121   :  { %299 = vst.msk [vmem:[%s523_s4] sm:$0x3] %vm298_vm5, %v297_v52 }
 0x122   :  { %308 = vsyncpa [#allocation3], 1 }

// kernel: decoder_forward.10
= control target key start
LH: loop header
LB: loop body
LE: loop exit
PB: predicated region body
PF: predicated region fallthrough
CT: control target
= control target key end

     0   :  { %vm33_vm0 = vcmask 519168   ;;  %s73_s0 = inlined_call_operand.vmem [shape: bf16[8,64], index: 0, kind: input, shape index: {}]   ;;  %s74_s1 = inlined_call_operand.vmem [shape: f32[1,64], index: 1, kind: input, shape index: {}]   ;;  %s75_s2 = inlined_call_operand.vmem [shape: f32[1,64], index: 2, kind: input, shape index: {}]   ;;  %s76_s3 = inlined_call_operand.vmem [shape: bf16[8,64], index: 3, kind: output, shape index: {}]  }
   0x1   :  { %v14_v0 = vld [vmem:[%s73_s0] sm:$0xf] }
   0x2   :  { %v39_v1 = vld [vmem:[%s74_s1] ss:$0 sm:$0xff]  ;;  %v15_v2 = vunpack.c.l.bf16 %v14_v0 }
   0x3   :  { %v40_v3 = vld [vmem:[%s75_s2] ss:$0 sm:$0xff] }
   0x4   :  { %v23_v4 = vmul.f32 %v39_v1, %v15_v2 }
   0x6   :  { %v31_v5 = vadd.f32 %v40_v3, %v23_v4 }
   0x8   :  { %v32_v6 = vpack.c.bf16 %v31_v5, %v31_v5 }
   0xa   :  { %34 = vst.msk [vmem:[%s76_s3] sm:$0xf] %vm33_vm0, %v32_v6 }

// kernel: squeeze.8
= control target key start
LH: loop header
LB: loop body
LE: loop exit
PB: predicated region body
PF: predicated region fallthrough
CT: control target
= control target key end

     0   :  { %s37_s8 = smov 104   ;;  %vm7_vm0 = vcmask 64512   ;;  %s38_s9 = smov 112   ;;  %s55_s0 = inlined_call_operand.vmem [shape: f32[32], index: 0, kind: input, shape index: {}]   ;;  %s56_s1 = inlined_call_operand.vmem [shape: f32[4,8], index: 1, kind: output, shape index: {}]  }
   0x1   :  { %v4_v0 = vld [vmem:[%s55_s0] sm:$0x1]  ;;  %s36_s0 = smov 120  }
   0x2   :  { %5 = vst [vmem:[#allocation1] sm:$0x1] %v4_v0 }
   0x9   :  { %v9_v1 = vld [vmem:[#allocation1] sm:$0x1]  }
   0xa   :  { %v21_v2 = vld [vmem:[#allocation1] sm:$0x1]   ;;  %10 = vrot.lane.b32.xlu0 %v9_v1, %s36_s0 }
   0xb   :  { %22 = vrot.lane.b32.xlu1 %v21_v2, %s37_s8  ;;  %v6_v3 = vld [vmem:[#allocation1] sm:$0x1]  }
   0xc   :  { %v15_v4 = vld [vmem:[#allocation1] sm:$0x1]   ;;  %8 = vst.msk [vmem:[#allocation0] sm:$0x1] %vm7_vm0, %v6_v3  }
   0xe   :  { %16 = vrot.lane.b32.xlu0 %v15_v4, %s38_s9 }
  0x7c   :  { %v11_v5 = vpop.permute.xlu0 %10  }
  0x7d   :  { %v23_v6 = vpop.permute.xlu1 %22   ;;  %14 = vst.msk [vmem:[#allocation0 + $0x1] sm:$0x1] %vm7_vm0, %v11_v5  }
  0x7e   :  { %26 = vst.msk [vmem:[#allocation0 + $0x3] sm:$0x1] %vm7_vm0, %v23_v6  }
  0x80   :  { %v17_v7 = vpop.permute.xlu0 %16  }
  0x81   :  { %20 = vst.msk [vmem:[#allocation0 + $0x2] sm:$0x1] %vm7_vm0, %v17_v7  }
  0x88   :  { %v30_v8 = vld [vmem:[#allocation0] sm:$0xf] }
  0x89   :  { %32 = vst [vmem:[%s56_s1] sm:$0xf] %v30_v8 }

// kernel: tile.47
= control target key start
LH: loop header
LB: loop body
LE: loop exit
PB: predicated region body
PF: predicated region fallthrough
CT: control target
= control target key end

     0   :  { %s22_s0 = inlined_call_operand.vmem [shape: f32[8], index: 0, kind: input, shape index: {}]   ;;  %s23_s1 = inlined_call_operand.vmem [shape: f32[4,8], index: 1, kind: output, shape index: {}]  }
   0x1   :  { %v4_v0 = vld [vmem:[%s22_s0] ss:$0 sm:$0xff] }
   0x2   :  { %5 = vst [vmem:[%s23_s1] sm:$0xf] %v4_v0 }

// kernel: tile.49
= control target key start
LH: loop header
LB: loop body
LE: loop exit
PB: predicated region body
PF: predicated region fallthrough
CT: control target
= control target key end

     0   :  { %vm7_vm0 = vcmask 64512   ;;  %s37_s8 = smov 8   ;;  %s38_s9 = smov 16   ;;  %vm13_vm1 = vcmask 261312   ;;  %vm19_vm2 = vcmask 195712   ;;  %vm25_vm3 = vcmask 130112   ;;  %s55_s0 = inlined_call_operand.vmem [shape: f32[4,8], index: 0, kind: input, shape index: {}]   ;;  %s56_s1 = inlined_call_operand.vmem [shape: f32[1,32], index: 1, kind: output, shape index: {}]  }
   0x1   :  { %v4_v0 = vld [vmem:[%s55_s0] sm:$0xf]  ;;  %s36_s0 = smov 24  }
   0x2   :  { %5 = vst [vmem:[#allocation1] sm:$0xf] %v4_v0 }
   0x9   :  { %v10_v1 = vld [vmem:[#allocation1 + $0x3] sm:$0x1]   ;;  %v22_v2 = vld [vmem:[#allocation1 + $0x1] sm:$0x1]   ;;  %v6_v3 = vld [vmem:[#allocation1] sm:$0x1]  }
   0xa   :  { %11 = vrot.lane.b32.xlu0 %v10_v1, %s36_s0  ;;  %23 = vrot.lane.b32.xlu1 %v22_v2, %s37_s8  ;;  %v16_v4 = vld [vmem:[#allocation1 + $0x2] sm:$0x1]   ;;  %8 = vst.msk [vmem:[#allocation0] sm:$0x1] %vm7_vm0, %v6_v3  }
   0xe   :  { %17 = vrot.lane.b32.xlu0 %v16_v4, %s38_s9 }
  0x7c   :  { %v12_v5 = vpop.permute.xlu0 %11   ;;  %v24_v6 = vpop.permute.xlu1 %23  }
  0x7d   :  { %14 = vst.msk [vmem:[#allocation0] sm:$0x1] %vm13_vm1, %v12_v5  }
  0x80   :  { %v18_v7 = vpop.permute.xlu0 %17  }
  0x81   :  { %20 = vst.msk [vmem:[#allocation0] sm:$0x1] %vm19_vm2, %v18_v7  }
  0x82   :  { %26 = vst.msk [vmem:[#allocation0] sm:$0x1] %vm25_vm3, %v24_v6  }
  0x89   :  { %v30_v8 = vld [vmem:[#allocation0] sm:$0x1] }
  0x8a   :  { %32 = vst [vmem:[%s56_s1] sm:$0x1] %v30_v8 }

// kernel: decoder_forward.12
= control target key start
LH: loop header
LB: loop body
LE: loop exit
PB: predicated region body
PF: predicated region fallthrough
CT: control target
= control target key end

     0   :  { %vm60_vm0 = vcmask 257024   ;;  %s132_s0 = inlined_call_operand.vmem [shape: bf16[32,32], index: 0, kind: input, shape index: {}]   ;;  %s133_s1 = inlined_call_operand.vmem [shape: f32[1,32], index: 1, kind: input, shape index: {}]   ;;  %s134_s2 = inlined_call_operand.vmem [shape: f32[1,32], index: 2, kind: input, shape index: {}]   ;;  %s135_s3 = inlined_call_operand.vmem [shape: bf16[32,32], index: 3, kind: output, shape index: {}]  }
   0x1   :  { %v80_v0 = vld [vmem:[%s132_s0] sm:$0xff]   ;;  %v87_v4 = vld [vmem:[%s132_s0 + $0x8] sm:$0xff]  }
   0x2   :  { %v69_v1 = vld [vmem:[%s133_s1] ss:$0 sm:$0xff]  ;;  %v81_v2 = vunpack.c.l.bf16 %v80_v0  ;;  %v82_v3 = vunpack.c.h.bf16 %v80_v0  ;;  %v85_v6 = vunpack.c.l.bf16 %v87_v4  ;;  %v86_v7 = vunpack.c.h.bf16 %v87_v4 }
   0x3   :  { %v70_v5 = vld [vmem:[%s134_s2] ss:$0 sm:$0xff] }
   0x4   :  { %v29_v8 = vmul.f32 %v81_v2, %v69_v1  ;;  %v30_v9 = vmul.f32 %v82_v3, %v69_v1  ;;  %v31_v10 = vmul.f32 %v85_v6, %v69_v1  ;;  %v32_v11 = vmul.f32 %v86_v7, %v69_v1 }
   0x6   :  { %v40_v12 = vadd.f32 %v70_v5, %v29_v8  ;;  %v41_v13 = vadd.f32 %v70_v5, %v30_v9  ;;  %v42_v14 = vadd.f32 %v70_v5, %v31_v10  ;;  %v43_v15 = vadd.f32 %v70_v5, %v32_v11 }
   0x8   :  { %v75_v16 = vpack.c.bf16 %v40_v12, %v40_v12  ;;  %v76_v17 = vpack.c.bf16 %v41_v13, %v41_v13  ;;  %v77_v18 = vpack.c.bf16 %v42_v14, %v42_v14  ;;  %v78_v19 = vpack.c.bf16 %v43_v15, %v43_v15 }
   0xa   :  { %61 = vst.msk [vmem:[%s135_s3] sm:$0xf] %vm60_vm0, %v75_v16  ;;  %62 = vst.msk [vmem:[%s135_s3 + $0x4] sm:$0xf] %vm60_vm0, %v76_v17 }
   0xb   :  { %63 = vst.msk [vmem:[%s135_s3 + $0x8] sm:$0xf] %vm60_vm0, %v77_v18  ;;  %64 = vst.msk [vmem:[%s135_s3 + $0xc] sm:$0xf] %vm60_vm0, %v78_v19 }

// kernel: decoder_forward.11
= control target key start
LH: loop header
LB: loop body
LE: loop exit
PB: predicated region body
PF: predicated region fallthrough
CT: control target
= control target key end

     0   :  { %10 = vsyncpa [#allocation3], 0  ;;  %s338_s15 = smov [#allocation2]   ;;  %s443_s0 = inlined_call_operand.vmem [shape: bf16[32,144], index: 0, kind: input, shape index: {}]   ;;  %s444_s1 = inlined_call_operand.vmem [shape: bf16[144,32], index: 1, kind: input, shape index: {}]   ;;  %s445_s2 = inlined_call_operand.hbm [shape: f32[1,32], index: 2, kind: input, shape index: {}]   ;;  %s446_s3 = inlined_call_operand.vmem [shape: bf16[32,32], index: 3, kind: output, shape index: {0}]   ;;  %s447_s4 = inlined_call_operand.vmem [shape: f32[1,2,32], index: 4, kind: output, shape index: {1}]  }
   0x1   :  { %s21_s16 = sshll.u32 %s338_s15, 4  ;;  %s314_s19 = scalar_lea.hbm %s445_s2, 16  ;;  %s22_s16 = int_to_ptr.vmem [resolvable:$true] %s21_s16 }
   0x2   :  { %p315_p0 = scmp.ne.s32.totalorder %s445_s2, %s314_s19  ;;  %p318_p1 = scmp.lt.u32.totalorder %s314_s19, %s445_s2 }
   0x4   :  { %p320_p2 = pnand %p318_p1, %p315_p0 }
   0x6   :  { %323 = shalt.err (!%p320_p2)
}
   0x7   :  { %s324_s24 = scalar_lea.vmem %s22_s16, 16  ;;  %s328_s25 = scalar_lea.vmem %s22_s16, 32 }
   0x8   :  { %p325_p3 = scmp.ne.s32.totalorder %s22_s16, %s324_s24  ;;  %p329_p4 = scmp.lt.s32.totalorder %s22_s16, %s22_s16 }
   0x9   :  { %p330_p5 = scmp.lt.s32.totalorder %s328_s25, %s324_s24 }
   0xb   :  { %p331_p6 = por %p330_p5, %p329_p4 }
   0xd   :  { %p332_p7 = pnand %p331_p6, %p325_p3 }
   0xf   :  { %335 = shalt.err (!%p332_p7)
}
  0x10   :  { %24 = dma.hbm_to_vmem [thread:$0]  %s445_s2, 16, %s22_s16, [#allocation3]  }
  0x11   :  { %336 = dma.done.wait [#allocation3], 16  }
  0x12   :  { %337 = vsyncadd [#allocation3], 4294967280  ;;  %v339_v0 = vmov 0   ;;  %v299_v1 = vld [vmem:[%s444_s1] sm:$0xff]   ;;  %v300_v2 = vld [vmem:[%s444_s1 + $0x8] sm:$0xff]   ;;  %vm130_vm0 = vcmask 130048  }
  0x13   :  { %137 = vmatprep.subr.bf16.mxu0 %v339_v0  ;;  %279 = vmatprep.subr.bf16.mxu1 %v339_v0  ;;  %v301_v3 = vld [vmem:[%s444_s1 + $0x10] sm:$0xff]   ;;  %v302_v4 = vld [vmem:[%s444_s1 + $0x18] sm:$0xff]   ;;  %v310_v5 = vld [vmem:[%s443_s0 + $0x4] ss:$8 sps:$4 sm:$0xff]   ;;  %vm206_vm1 = vcmask 257024   ;;  %vm211_vm2 = vcmask 261120  }
  0x14   :  { %138 = vmatpush1.bf16.msra.mxu0 %v299_v1  ;;  %288 = vmatpush1.bf16.msra.mxu1 %v299_v1  ;;  %v313_v6 = vld [vmem:[%s443_s0 + $0x14] ss:$8 sps:$4 sm:$0xff]   ;;  %v303_v7 = vld [vmem:[%s444_s1 + $0x20] sm:$0xff]   ;;  %v304_v8 = vld [vmem:[%s444_s1 + $0x28] sm:$0xff]   ;;  %vm242_vm3 = vcmask 1040384   ;;  %vm244_vm4 = vcmask 254976  }
  0x15   :  { %139 = vmatprep.subr.bf16.mxu0 %v339_v0  ;;  %280 = vmatprep.subr.bf16.mxu1 %v339_v0  ;;  %v305_v9 = vld [vmem:[%s444_s1 + $0x30] sm:$0xff]   ;;  %v306_v10 = vld [vmem:[%s444_s1 + $0x38] sm:$0xff]   ;;  %v307_v11 = vld [vmem:[%s444_s1 + $0x40] sm:$0xff]  }
  0x16   :  { %269 = vmatprep.mubr.msk.bf16.mxu0 %vm130_vm0, %v310_v5  ;;  %270 = vmatprep.mubr.msk.bf16.mxu1 %vm130_vm0, %v313_v6  ;;  %v308_v12 = vld [vmem:[%s443_s0] ss:$8 sps:$4 sm:$0xff]   ;;  %v311_v13 = vld [vmem:[%s443_s0 + $0x10] ss:$8 sps:$4 sm:$0xff]  }
  0x17   :  { %v255_v14 = vld [vmem:[#allocation2] ss:$0 sm:$0xff] }
  0x18   :  { %140 = vmatpush1.bf16.msra.mxu0 %v300_v2  ;;  %289 = vmatpush1.bf16.msra.mxu1 %v300_v2 }
  0x19   :  { %141 = vmatprep.subr.bf16.mxu0 %v339_v0  ;;  %281 = vmatprep.subr.bf16.mxu1 %v339_v0 }
  0x1c   :  { %142 = vmatpush1.bf16.msra.mxu0 %v301_v3  ;;  %290 = vmatpush1.bf16.msra.mxu1 %v301_v3 }
  0x1d   :  { %143 = vmatprep.subr.bf16.mxu0 %v339_v0  ;;  %282 = vmatprep.subr.bf16.mxu1 %v339_v0 }
  0x20   :  { %144 = vmatpush1.bf16.msra.mxu0 %v302_v4  ;;  %291 = vmatpush1.bf16.msra.mxu1 %v302_v4 }
  0x21   :  { %145 = vmatprep.subr.bf16.mxu0 %v339_v0  ;;  %283 = vmatprep.subr.bf16.mxu1 %v339_v0 }
  0x24   :  { %146 = vmatpush1.bf16.msra.mxu0 %v303_v7  ;;  %292 = vmatpush1.bf16.msra.mxu1 %v303_v7 }
  0x25   :  { %147 = vmatprep.subr.bf16.mxu0 %v339_v0  ;;  %284 = vmatprep.subr.bf16.mxu1 %v339_v0 }
  0x28   :  { %148 = vmatpush1.bf16.msra.mxu0 %v304_v8  ;;  %293 = vmatpush1.bf16.msra.mxu1 %v304_v8 }
  0x29   :  { %149 = vmatprep.subr.bf16.mxu0 %v339_v0  ;;  %285 = vmatprep.subr.bf16.mxu1 %v339_v0 }
  0x2c   :  { %150 = vmatpush1.bf16.msra.mxu0 %v305_v9  ;;  %294 = vmatpush1.bf16.msra.mxu1 %v305_v9 }
  0x2d   :  { %151 = vmatprep.subr.bf16.mxu0 %v339_v0  ;;  %286 = vmatprep.subr.bf16.mxu1 %v339_v0 }
  0x30   :  { %152 = vmatpush1.bf16.msra.mxu0 %v306_v10  ;;  %295 = vmatpush1.bf16.msra.mxu1 %v306_v10 }
  0x31   :  { %153 = vmatprep.subr.bf16.mxu0 %v339_v0  ;;  %287 = vmatprep.subr.bf16.mxu1 %v339_v0 }
  0x34   :  { %154 = vmatpush1.bf16.msra.mxu0 %v307_v11  ;;  %296 = vmatpush1.bf16.msra.mxu1 %v307_v11 }
  0x37   :  { %170 = vmatmul.mubr.bf16.vlgmr.msra.gmra.mrb[0].mxu0 %v308_v12  ;;  %178 = vmatmul.mubr.bf16.vlgmr.msra.gmra.mrb[0].mxu1 %v311_v13 }
 0x10a   :  { %v171_v15 = vpop.f32.mrb[0].mxu0  ;;  %v179_v16 = vpop.f32.mrb[0].mxu1 }
 0x10b   :  { %v172_v17 = vadd.f32 %v255_v14, %v171_v15  ;;  %v173_v18 = vpop.f32.mrb[1].mxu0  ;;  %v180_v19 = vadd.f32 %v255_v14, %v179_v16  ;;  %v181_v20 = vpop.f32.mrb[1].mxu1 }
 0x10c   :  { %v174_v21 = vpop.f32.mrb[2].mxu0  ;;  %v182_v22 = vpop.f32.mrb[2].mxu1 }
 0x10d   :  { %v186_v23 = vmax.f32 %v172_v17, 0.0  ;;  %v188_v24 = vmax.f32 %v180_v19, 0.0  ;;  %v175_v25 = vadd.f32 %v255_v14, %v174_v21  ;;  %v176_v26 = vpop.f32.mrb[3].mxu0  ;;  %v183_v27 = vadd.f32 %v255_v14, %v182_v22  ;;  %v184_v28 = vpop.f32.mrb[3].mxu1 }
 0x10f   :  { %v275_v29 = vpack.c.bf16 %v186_v23, %v186_v23  ;;  %v277_v30 = vpack.c.bf16 %v188_v24, %v188_v24  ;;  %v225_v31 = vmul.f32 %v186_v23, %v186_v23  ;;  %v227_v32 = vmul.f32 %v188_v24, %v188_v24 }
 0x110   :  { %v187_v33 = vmax.f32 %v175_v25, 0.0  ;;  %v189_v34 = vmax.f32 %v183_v27, 0.0  ;;  %v212_v35 = vsel %vm211_vm2, %v186_v23, 0.0  ;;  %v215_v36 = vsel %vm211_vm2, %v188_v24, 0.0 }
 0x111   :  { %207 = vst.msk [vmem:[%s446_s3] sm:$0xf] %vm206_vm1, %v275_v29  ;;  %209 = vst.msk [vmem:[%s446_s3 + $0x8] sm:$0xf] %vm206_vm1, %v277_v30  ;;  %v229_v42 = vsel %vm211_vm2, %v225_v31, 0.0  ;;  %v232_v43 = vsel %vm211_vm2, %v227_v32, 0.0 }
 0x112   :  { %v276_v37 = vpack.c.bf16 %v187_v33, %v187_v33  ;;  %v213_v38 = vsel %vm211_vm2, %v187_v33, 0.0  ;;  %v226_v39 = vmul.f32 %v187_v33, %v187_v33  ;;  %v278_v41 = vpack.c.bf16 %v189_v34, %v189_v34 }
 0x113   :  { %v214_v40 = vadd.f32 %v213_v38, %v212_v35  ;;  %v228_v45 = vmul.f32 %v189_v34, %v189_v34  ;;  %v217_v48 = vsel %vm211_vm2, %v189_v34, 0.0 }
 0x114   :  { %208 = vst.msk [vmem:[%s446_s3 + $0x4] sm:$0xf] %vm206_vm1, %v276_v37  ;;  %v230_v44 = vsel %vm211_vm2, %v226_v39, 0.0  ;;  %210 = vst.msk [vmem:[%s446_s3 + $0xc] sm:$0xf] %vm206_vm1, %v278_v41 }
 0x115   :  { %v231_v46 = vadd.f32 %v230_v44, %v229_v42  ;;  %v216_v47 = vadd.f32 %v215_v36, %v214_v40  ;;  %v234_v51 = vsel %vm211_vm2, %v228_v45, 0.0 }
 0x117   :  { %v218_v49 = vadd.f32 %v217_v48, %v216_v47  ;;  %v233_v50 = vadd.f32 %v232_v43, %v231_v46 }
 0x119   :  { %v219_v52 = vrot.slane %v218_v49, 4  ;;  %v235_v53 = vadd.f32 %v234_v51, %v233_v50 }
 0x11b   :  { %v220_v54 = vadd.f32 %v219_v52, %v218_v49  ;;  %v236_v55 = vrot.slane %v235_v53, 4 }
 0x11d   :  { %v221_v56 = vrot.slane %v220_v54, 2  ;;  %v237_v57 = vadd.f32 %v236_v55, %v235_v53 }
 0x11f   :  { %v222_v58 = vadd.f32 %v221_v56, %v220_v54  ;;  %v238_v59 = vrot.slane %v237_v57, 2 }
 0x121   :  { %v223_v60 = vrot.slane %v222_v58, 1  ;;  %v239_v61 = vadd.f32 %v238_v59, %v237_v57 }
 0x123   :  { %v240_v62 = vrot.slane %v239_v61, 1  ;;  %v224_v63 = vadd.f32 %v223_v60, %v222_v58 }
 0x125   :  { %v241_v0 = vadd.f32 %v240_v62, %v239_v61 }
 0x127   :  { %v243_v1 = vsel %vm242_vm3, %v224_v63, %v241_v0 }
 0x128   :  { %245 = vst.msk [vmem:[%s447_s4] sm:$0x3] %vm244_vm4, %v243_v1 }
 0x129   :  { %254 = vsyncpa [#allocation3], 1 }

// kernel: decoder_forward.13
= control target key start
LH: loop header
LB: loop body
LE: loop exit
PB: predicated region body
PF: predicated region fallthrough
CT: control target
= control target key end

     0   :  { %vm284_vm0 = vcmask 588800   ;;  %vm381_vm1 = vcmask 1043456   ;;  %vm994_vm2 = vcmask 125952   ;;  %vm1059_vm3 = vcmask 130048   ;;  %s2543_s1 = inlined_call_operand.vmem [shape: bf16[72,16], index: 1, kind: input, shape index: {}]   ;;  %s2544_s0 = inlined_call_operand.vmem [shape: bf16[512,72], index: 0, kind: input, shape index: {}]   ;;  %s2545_s2 = inlined_call_operand.vmem [shape: f32[1,16], index: 2, kind: input, shape index: {}]   ;;  %s2546_s3 = inlined_call_operand.vmem [shape: bf16[512,16], index: 3, kind: output, shape index: {0}]   ;;  %s2547_s4 = inlined_call_operand.vmem [shape: f32[1,2,16], index: 4, kind: output, shape index: {1}]  }
   0x1   :  { %v1723_v0 = vld [vmem:[%s2543_s1] sm:$0xff]   ;;  %v1724_v1 = vld [vmem:[%s2543_s1 + $0x8] sm:$0xff]   ;;  %v1725_v2 = vld [vmem:[%s2543_s1 + $0x10] sm:$0xff]   ;;  %vm1390_vm4 = vcmask 1040384   ;;  %vm1392_vm5 = vcmask 123904  }
   0x2   :  { %1637 = vmatprep.subr.bf16.mxu0 %v1723_v0  ;;  %1711 = vmatprep.subr.bf16.mxu1 %v1723_v0  ;;  %v1728_v3 = vld [vmem:[%s2544_s0] sm:$0xff]   ;;  %v1726_v4 = vld [vmem:[%s2543_s1 + $0x18] sm:$0xff]   ;;  %v1729_v7 = vld [vmem:[%s2544_s0 + $0x8] sm:$0xff]  }
   0x3   :  { %1638 = vmatpush3.bf16.msra.mxu0 %v1723_v0  ;;  %1716 = vmatpush3.bf16.msra.mxu1 %v1723_v0  ;;  %v1727_v5 = vld [vmem:[%s2543_s1 + $0x20] ss:$0 sps:$4 sm:$0xff]   ;;  %v1730_v8 = vld [vmem:[%s2544_s0 + $0x10] sm:$0xff]   ;;  %v1745_v10 = vld [vmem:[%s2544_s0 + $0x88] sm:$0xff]  }
   0x4   :  { %1639 = vmatprep.subr.bf16.mxu0 %v1724_v1  ;;  %1712 = vmatprep.subr.bf16.mxu1 %v1724_v1  ;;  %v383_v6 = vsel %vm381_vm1, %v1727_v5, 0  ;;  %v1744_v9 = vld [vmem:[%s2544_s0 + $0x80] sm:$0xff]   ;;  %v1746_v11 = vld [vmem:[%s2544_s0 + $0x90] sm:$0xff]   ;;  %v1731_v12 = vld [vmem:[%s2544_s0 + $0x18] sm:$0xff]  }
   0x5   :  { %1647 = vmatprep.mubr.msk.bf16.mxu0 %vm284_vm0, %v1728_v3  ;;  %1679 = vmatprep.mubr.msk.bf16.mxu1 %vm284_vm0, %v1744_v9  ;;  %v1732_v13 = vld [vmem:[%s2544_s0 + $0x20] sm:$0xff]   ;;  %v1747_v14 = vld [vmem:[%s2544_s0 + $0x98] sm:$0xff]   ;;  %v1733_v16 = vld [vmem:[%s2544_s0 + $0x28] sm:$0xff]  }
   0x6   :  { %v1748_v15 = vld [vmem:[%s2544_s0 + $0xa0] sm:$0xff]   ;;  %v1734_v17 = vld [vmem:[%s2544_s0 + $0x30] sm:$0xff]   ;;  %v1749_v18 = vld [vmem:[%s2544_s0 + $0xa8] sm:$0xff]  }
   0x7   :  { %1640 = vmatpush3.bf16.msra.mxu0 %v1724_v1  ;;  %1717 = vmatpush3.bf16.msra.mxu1 %v1724_v1  ;;  %v1750_v19 = vld [vmem:[%s2544_s0 + $0xb0] sm:$0xff]   ;;  %v1735_v20 = vld [vmem:[%s2544_s0 + $0x38] sm:$0xff]   ;;  %v1736_v21 = vld [vmem:[%s2544_s0 + $0x40] sm:$0xff]  }
   0x8   :  { %1641 = vmatprep.subr.bf16.mxu0 %v1725_v2  ;;  %1713 = vmatprep.subr.bf16.mxu1 %v1725_v2  ;;  %v1751_v22 = vld [vmem:[%s2544_s0 + $0xb8] sm:$0xff]   ;;  %v1752_v23 = vld [vmem:[%s2544_s0 + $0xc0] sm:$0xff]   ;;  %v1737_v24 = vld [vmem:[%s2544_s0 + $0x48] sm:$0xff]  }
   0x9   :  { %v1738_v25 = vld [vmem:[%s2544_s0 + $0x50] sm:$0xff]   ;;  %v1753_v26 = vld [vmem:[%s2544_s0 + $0xc8] sm:$0xff]   ;;  %v1739_v28 = vld [vmem:[%s2544_s0 + $0x58] sm:$0xff]  }
   0xa   :  { %v1754_v27 = vld [vmem:[%s2544_s0 + $0xd0] sm:$0xff]   ;;  %v1740_v29 = vld [vmem:[%s2544_s0 + $0x60] sm:$0xff]   ;;  %v1755_v30 = vld [vmem:[%s2544_s0 + $0xd8] sm:$0xff]  }
   0xb   :  { %1642 = vmatpush3.bf16.msra.mxu0 %v1725_v2  ;;  %1718 = vmatpush3.bf16.msra.mxu1 %v1725_v2  ;;  %v1756_v31 = vld [vmem:[%s2544_s0 + $0xe0] sm:$0xff]   ;;  %v1741_v32 = vld [vmem:[%s2544_s0 + $0x68] sm:$0xff]   ;;  %v1742_v33 = vld [vmem:[%s2544_s0 + $0x70] sm:$0xff]  }
   0xc   :  { %1643 = vmatprep.subr.bf16.mxu0 %v1726_v4  ;;  %1714 = vmatprep.subr.bf16.mxu1 %v1726_v4  ;;  %v1757_v34 = vld [vmem:[%s2544_s0 + $0xe8] sm:$0xff]   ;;  %v1758_v35 = vld [vmem:[%s2544_s0 + $0xf0] sm:$0xff]   ;;  %v1743_v36 = vld [vmem:[%s2544_s0 + $0x78] sm:$0xff]  }
   0xd   :  { %v1759_v37 = vld [vmem:[%s2544_s0 + $0xf8] sm:$0xff]   ;;  %v1932_v38 = vld [vmem:[%s2545_s2] ss:$0 sm:$0xff] }
   0xf   :  { %1644 = vmatpush3.bf16.msra.mxu0 %v1726_v4  ;;  %1719 = vmatpush3.bf16.msra.mxu1 %v1726_v4 }
  0x10   :  { %1721 = vmatprep.subr.msk.bf16.mxu0 %vm381_vm1, %v1727_v5  ;;  %1722 = vmatprep.subr.msk.bf16.mxu1 %vm381_vm1, %v1727_v5 }
  0x13   :  { %1646 = vmatpush3.bf16.msra.mxu0 %v383_v6  ;;  %1720 = vmatpush3.bf16.msra.mxu1 %v383_v6 }
  0x16   :  { %1648 = vmatmul.mubr.msk.bf16.vlgmr.msra.gmra.mrb[0].mxu0 %vm284_vm0, %v1729_v7  ;;  %1680 = vmatmul.mubr.msk.bf16.vlgmr.msra.gmra.mrb[0].mxu1 %vm284_vm0, %v1745_v10 }
  0x17   :  { %1651 = vmatprep.mubr.msk.bf16.mxu0 %vm284_vm0, %v1730_v8  ;;  %1683 = vmatprep.mubr.msk.bf16.mxu1 %vm284_vm0, %v1746_v11 }
  0x1e   :  { %1652 = vmatmul.mubr.msk.bf16.gmra.mrb[4].mxu0 %vm284_vm0, %v1731_v12  ;;  %1684 = vmatmul.mubr.msk.bf16.gmra.mrb[4].mxu1 %vm284_vm0, %v1747_v14 }
  0x1f   :  { %1655 = vmatprep.mubr.msk.bf16.mxu0 %vm284_vm0, %v1732_v13  ;;  %1687 = vmatprep.mubr.msk.bf16.mxu1 %vm284_vm0, %v1748_v15 }
  0x26   :  { %1656 = vmatmul.mubr.msk.bf16.gmra.mrb[8].mxu0 %vm284_vm0, %v1733_v16  ;;  %1688 = vmatmul.mubr.msk.bf16.gmra.mrb[8].mxu1 %vm284_vm0, %v1749_v18 }
  0x27   :  { %1659 = vmatprep.mubr.msk.bf16.mxu0 %vm284_vm0, %v1734_v17  ;;  %1691 = vmatprep.mubr.msk.bf16.mxu1 %vm284_vm0, %v1750_v19 }
  0x2e   :  { %1660 = vmatmul.mubr.msk.bf16.gmra.mrb[12].mxu0 %vm284_vm0, %v1735_v20  ;;  %1692 = vmatmul.mubr.msk.bf16.gmra.mrb[12].mxu1 %vm284_vm0, %v1751_v22 }
  0x2f   :  { %1663 = vmatprep.mubr.msk.bf16.mxu0 %vm284_vm0, %v1736_v21  ;;  %1695 = vmatprep.mubr.msk.bf16.mxu1 %vm284_vm0, %v1752_v23 }
  0x36   :  { %1664 = vmatmul.mubr.msk.bf16.gmra.mrb[16].mxu0 %vm284_vm0, %v1737_v24  ;;  %1696 = vmatmul.mubr.msk.bf16.gmra.mrb[16].mxu1 %vm284_vm0, %v1753_v26 }
  0x37   :  { %1667 = vmatprep.mubr.msk.bf16.mxu0 %vm284_vm0, %v1738_v25  ;;  %1699 = vmatprep.mubr.msk.bf16.mxu1 %vm284_vm0, %v1754_v27 }
  0x3e   :  { %1668 = vmatmul.mubr.msk.bf16.gmra.mrb[20].mxu0 %vm284_vm0, %v1739_v28  ;;  %1700 = vmatmul.mubr.msk.bf16.gmra.mrb[20].mxu1 %vm284_vm0, %v1755_v30 }
  0x3f   :  { %1671 = vmatprep.mubr.msk.bf16.mxu0 %vm284_vm0, %v1740_v29  ;;  %1703 = vmatprep.mubr.msk.bf16.mxu1 %vm284_vm0, %v1756_v31 }
  0x46   :  { %1672 = vmatmul.mubr.msk.bf16.gmra.mrb[24].mxu0 %vm284_vm0, %v1741_v32  ;;  %1704 = vmatmul.mubr.msk.bf16.gmra.mrb[24].mxu1 %vm284_vm0, %v1757_v34 }
  0x47   :  { %1675 = vmatprep.mubr.msk.bf16.mxu0 %vm284_vm0, %v1742_v33  ;;  %1707 = vmatprep.mubr.msk.bf16.mxu1 %vm284_vm0, %v1758_v35 }
  0x4e   :  { %1676 = vmatmul.mubr.msk.bf16.gmra.mrb[28].mxu0 %vm284_vm0, %v1743_v36  ;;  %1708 = vmatmul.mubr.msk.bf16.gmra.mrb[28].mxu1 %vm284_vm0, %v1759_v37 }
  0xe9   :  { %v1649_v39 = vpop.f32.mrb[0].mxu0  ;;  %v1681_v44 = vpop.f32.mrb[0].mxu1 }
  0xea   :  { %v428_v40 = vadd.f32 %v1649_v39, %v1932_v38  ;;  %v419_v41 = vpop.f32.mrb[1].mxu0  ;;  %v547_v48 = vpop.f32.mrb[1].mxu1  ;;  %v556_v54 = vadd.f32 %v1681_v44, %v1932_v38 }
  0xeb   :  { %v420_v42 = vadd.f32 %v1932_v38, %v419_v41  ;;  %v1650_v43 = vpop.f32.mrb[2].mxu0  ;;  %v1938_v51 = vpop.f32.mrb[2].mxu1  ;;  %v548_v62 = vadd.f32 %v1932_v38, %v547_v48 }
  0xec   :  { %v676_v45 = vmax.f32 %v428_v40, 0.0  ;;  %v431_v46 = vadd.f32 %v1650_v43, %v1932_v38  ;;  %v422_v47 = vpop.f32.mrb[3].mxu0  ;;  %v1941_v55 = vpop.f32.mrb[3].mxu1  ;;  %v1960_v8 = vmax.f32 %v556_v54, 0.0 }
  0xed   :  { %v674_v49 = vmax.f32 %v420_v42, 0.0  ;;  %v423_v50 = vadd.f32 %v1932_v38, %v422_v47  ;;  %v1978_v24 = vmax.f32 %v548_v62, 0.0 }
  0xee   :  { %v1538_v52 = vpack.c.bf16 %v676_v45, %v676_v45  ;;  %v677_v53 = vmax.f32 %v431_v46, 0.0  ;;  %v1195_v56 = vmul.f32 %v676_v45, %v676_v45  ;;  %v1063_v60 = vsel %vm1059_vm3, %v676_v45, 0.0 }
  0xef   :  { %v1536_v57 = vpack.c.bf16 %v674_v49, %v674_v49  ;;  %v1193_v58 = vmul.f32 %v674_v49, %v674_v49  ;;  %v675_v59 = vmax.f32 %v423_v50, 0.0  ;;  %v1060_v63 = vsel %vm1059_vm3, %v674_v49, 0.0 }
  0xf0   :  { %997 = vst.msk [vmem:[%s2546_s3 + $0x8] sm:$0xf] %vm994_vm2, %v1538_v52  ;;  %v1539_v61 = vpack.c.bf16 %v677_v53, %v677_v53  ;;  %v1196_v4 = vmul.f32 %v677_v53, %v677_v53  ;;  %v1260_v9 = vsel %vm1059_vm3, %v1195_v56, 0.0  ;;  %v1570_v23 = vpack.c.bf16 %v1960_v8, %v1960_v8 }
  0xf1   :  { %995 = vst.msk [vmem:[%s2546_s3] sm:$0xf] %vm994_vm2, %v1536_v57  ;;  %v1537_v0 = vpack.c.bf16 %v675_v59, %v675_v59  ;;  %v1061_v1 = vsel %vm1059_vm3, %v675_v59, 0.0  ;;  %v1194_v2 = vmul.f32 %v675_v59, %v675_v59  ;;  %v1653_v3 = vpop.f32.mrb[4].mxu0  ;;  %v1257_v10 = vsel %vm1059_vm3, %v1193_v58, 0.0  ;;  %v1970_v14 = vpop.f32.mrb[4].mxu1 }
  0xf2   :  { %998 = vst.msk [vmem:[%s2546_s3 + $0xc] sm:$0xf] %vm994_vm2, %v1539_v61  ;;  %v1062_v5 = vadd.f32 %v1061_v1, %v1060_v63  ;;  %v444_v6 = vadd.f32 %v1653_v3, %v1932_v38  ;;  %v435_v7 = vpop.f32.mrb[5].mxu0  ;;  %v1973_v20 = vpop.f32.mrb[5].mxu1  ;;  %v1065_v26 = vsel %vm1059_vm3, %v677_v53, 0.0  ;;  %v1262_v27 = vsel %vm1059_vm3, %v1196_v4, 0.0 }
  0xf3   :  { %996 = vst.msk [vmem:[%s2546_s3 + $0x4] sm:$0xf] %vm994_vm2, %v1537_v0  ;;  %v1258_v11 = vsel %vm1059_vm3, %v1194_v2, 0.0  ;;  %v436_v12 = vadd.f32 %v1932_v38, %v435_v7  ;;  %v1654_v13 = vpop.f32.mrb[6].mxu0  ;;  %v1980_v25 = vpop.f32.mrb[6].mxu1  ;;  %v1568_v42 = vpack.c.bf16 %v1978_v24, %v1978_v24 }
  0xf4   :  { %v1064_v15 = vadd.f32 %v1063_v60, %v1062_v5  ;;  %v1259_v16 = vadd.f32 %v1258_v11, %v1257_v10  ;;  %v680_v17 = vmax.f32 %v444_v6, 0.0  ;;  %v447_v18 = vadd.f32 %v1654_v13, %v1932_v38  ;;  %v438_v19 = vpop.f32.mrb[7].mxu0  ;;  %v1984_v30 = vpop.f32.mrb[7].mxu1  ;;  %1029 = vst.msk [vmem:[%s2546_s3 + $0x88] sm:$0xf] %vm994_vm2, %v1570_v23 }
  0xf5   :  { %v678_v21 = vmax.f32 %v436_v12, 0.0  ;;  %v439_v22 = vadd.f32 %v1932_v38, %v438_v19  ;;  %1027 = vst.msk [vmem:[%s2546_s3 + $0x80] sm:$0xf] %vm994_vm2, %v1568_v42 }
  0xf6   :  { %v1261_v28 = vadd.f32 %v1260_v9, %v1259_v16  ;;  %v1542_v29 = vpack.c.bf16 %v680_v17, %v680_v17  ;;  %v1066_v32 = vadd.f32 %v1065_v26, %v1064_v15  ;;  %v681_v36 = vmax.f32 %v447_v18, 0.0 }
  0xf7   :  { %v1540_v31 = vpack.c.bf16 %v678_v21, %v678_v21  ;;  %v1067_v33 = vsel %vm1059_vm3, %v678_v21, 0.0  ;;  %v1197_v34 = vmul.f32 %v678_v21, %v678_v21  ;;  %v679_v37 = vmax.f32 %v439_v22, 0.0 }
  0xf8   :  { %1001 = vst.msk [vmem:[%s2546_s3 + $0x18] sm:$0xf] %vm994_vm2, %v1542_v29  ;;  %v1263_v35 = vadd.f32 %v1262_v27, %v1261_v28  ;;  %v1068_v39 = vadd.f32 %v1067_v33, %v1066_v32  ;;  %v1199_v43 = vmul.f32 %v680_v17, %v680_v17  ;;  %v1543_v45 = vpack.c.bf16 %v681_v36, %v681_v36 }
  0xf9   :  { %999 = vst.msk [vmem:[%s2546_s3 + $0x10] sm:$0xf] %vm994_vm2, %v1540_v31  ;;  %v1264_v40 = vsel %vm1059_vm3, %v1197_v34, 0.0  ;;  %v1657_v41 = vpop.f32.mrb[8].mxu0  ;;  %v1541_v47 = vpack.c.bf16 %v679_v37, %v679_v37  ;;  %v1069_v48 = vsel %vm1059_vm3, %v679_v37, 0.0  ;;  %v1198_v49 = vmul.f32 %v679_v37, %v679_v37  ;;  %v2008_v53 = vpop.f32.mrb[8].mxu1 }
  0xfa   :  { %v1265_v44 = vadd.f32 %v1264_v40, %v1263_v35  ;;  %v451_v46 = vpop.f32.mrb[9].mxu0  ;;  %v460_v50 = vadd.f32 %v1657_v41, %v1932_v38  ;;  %v1071_v54 = vsel %vm1059_vm3, %v680_v17, 0.0  ;;  %1002 = vst.msk [vmem:[%s2546_s3 + $0x1c] sm:$0xf] %vm994_vm2, %v1543_v45  ;;  %v1070_v56 = vadd.f32 %v1069_v48, %v1068_v39  ;;  %v2017_v60 = vpop.f32.mrb[9].mxu1 }
  0xfb   :  { %v1658_v52 = vpop.f32.mrb[10].mxu0  ;;  %v452_v57 = vadd.f32 %v1932_v38, %v451_v46  ;;  %v1200_v61 = vmul.f32 %v681_v36, %v681_v36  ;;  %1000 = vst.msk [vmem:[%s2546_s3 + $0x14] sm:$0xf] %vm994_vm2, %v1541_v47  ;;  %v1266_v62 = vsel %vm1059_vm3, %v1198_v49, 0.0  ;;  %v2025_v1 = vpop.f32.mrb[10].mxu1  ;;  %v1268_v7 = vsel %vm1059_vm3, %v1199_v43, 0.0 }
  0xfc   :  { %v463_v58 = vadd.f32 %v1658_v52, %v1932_v38  ;;  %v454_v59 = vpop.f32.mrb[11].mxu0  ;;  %v684_v63 = vmax.f32 %v460_v50, 0.0  ;;  %v1072_v2 = vadd.f32 %v1071_v54, %v1070_v56  ;;  %v1267_v3 = vadd.f32 %v1266_v62, %v1265_v44  ;;  %v2027_v6 = vpop.f32.mrb[11].mxu1 }
  0xfd   :  { %v455_v0 = vadd.f32 %v1932_v38, %v454_v59  ;;  %v682_v4 = vmax.f32 %v452_v57, 0.0  ;;  %v1073_v9 = vsel %vm1059_vm3, %v681_v36, 0.0  ;;  %v1270_v17 = vsel %vm1059_vm3, %v1200_v61, 0.0 }
  0xfe   :  { %v685_v5 = vmax.f32 %v463_v58, 0.0  ;;  %v1546_v10 = vpack.c.bf16 %v684_v63, %v684_v63  ;;  %v1269_v12 = vadd.f32 %v1268_v7, %v1267_v3  ;;  %v1074_v15 = vadd.f32 %v1073_v9, %v1072_v2 }
  0xff   :  { %v683_v11 = vmax.f32 %v455_v0, 0.0  ;;  %v1544_v13 = vpack.c.bf16 %v682_v4, %v682_v4  ;;  %v1075_v16 = vsel %vm1059_vm3, %v682_v4, 0.0  ;;  %v1201_v18 = vmul.f32 %v682_v4, %v682_v4 }
 0x100   :  { %1005 = vst.msk [vmem:[%s2546_s3 + $0x28] sm:$0xf] %vm994_vm2, %v1546_v10  ;;  %v1547_v19 = vpack.c.bf16 %v685_v5, %v685_v5  ;;  %v1203_v22 = vmul.f32 %v684_v63, %v684_v63  ;;  %v1076_v23 = vadd.f32 %v1075_v16, %v1074_v15  ;;  %v1271_v26 = vadd.f32 %v1270_v17, %v1269_v12 }
 0x101   :  { %v1661_v21 = vpop.f32.mrb[12].mxu0  ;;  %1003 = vst.msk [vmem:[%s2546_s3 + $0x20] sm:$0xf] %vm994_vm2, %v1544_v13  ;;  %v1545_v27 = vpack.c.bf16 %v683_v11, %v683_v11  ;;  %v1272_v29 = vsel %vm1059_vm3, %v1201_v18, 0.0  ;;  %v1077_v31 = vsel %vm1059_vm3, %v683_v11, 0.0  ;;  %v1202_v32 = vmul.f32 %v683_v11, %v683_v11  ;;  %v2048_v35 = vpop.f32.mrb[12].mxu1 }
 0x102   :  { %v467_v28 = vpop.f32.mrb[13].mxu0  ;;  %1006 = vst.msk [vmem:[%s2546_s3 + $0x2c] sm:$0xf] %vm994_vm2, %v1547_v19  ;;  %v476_v33 = vadd.f32 %v1661_v21, %v1932_v38  ;;  %v1079_v36 = vsel %vm1059_vm3, %v684_v63, 0.0  ;;  %v1273_v37 = vadd.f32 %v1272_v29, %v1271_v26  ;;  %v1078_v39 = vadd.f32 %v1077_v31, %v1076_v23  ;;  %v2056_v42 = vpop.f32.mrb[13].mxu1 }
 0x103   :  { %v1662_v34 = vpop.f32.mrb[14].mxu0  ;;  %1004 = vst.msk [vmem:[%s2546_s3 + $0x24] sm:$0xf] %vm994_vm2, %v1545_v27  ;;  %v468_v40 = vadd.f32 %v1932_v38, %v467_v28  ;;  %v1204_v43 = vmul.f32 %v685_v5, %v685_v5  ;;  %v1274_v44 = vsel %vm1059_vm3, %v1202_v32, 0.0  ;;  %v2060_v47 = vpop.f32.mrb[14].mxu1  ;;  %v1276_v56 = vsel %vm1059_vm3, %v1203_v22, 0.0 }
 0x104   :  { %v470_v41 = vpop.f32.mrb[15].mxu0  ;;  %v688_v45 = vmax.f32 %v476_v33, 0.0  ;;  %v479_v46 = vadd.f32 %v1662_v34, %v1932_v38  ;;  %v1080_v48 = vadd.f32 %v1079_v36, %v1078_v39  ;;  %v1275_v49 = vadd.f32 %v1274_v44, %v1273_v37  ;;  %v2063_v54 = vpop.f32.mrb[15].mxu1 }
 0x105   :  { %v686_v50 = vmax.f32 %v468_v40, 0.0  ;;  %v471_v52 = vadd.f32 %v1932_v38, %v470_v41  ;;  %v1081_v57 = vsel %vm1059_vm3, %v685_v5, 0.0  ;;  %v1278_v2 = vsel %vm1059_vm3, %v1204_v43, 0.0 }
 0x106   :  { %v1550_v58 = vpack.c.bf16 %v688_v45, %v688_v45  ;;  %v689_v59 = vmax.f32 %v479_v46, 0.0  ;;  %v1277_v61 = vadd.f32 %v1276_v56, %v1275_v49  ;;  %v1082_v63 = vadd.f32 %v1081_v57, %v1080_v48 }
 0x107   :  { %v1548_v62 = vpack.c.bf16 %v686_v50, %v686_v50  ;;  %v1083_v0 = vsel %vm1059_vm3, %v686_v50, 0.0  ;;  %v1205_v3 = vmul.f32 %v686_v50, %v686_v50  ;;  %v687_v10 = vmax.f32 %v471_v52, 0.0 }
 0x108   :  { %1009 = vst.msk [vmem:[%s2546_s3 + $0x38] sm:$0xf] %vm994_vm2, %v1550_v58  ;;  %v1551_v4 = vpack.c.bf16 %v689_v59, %v689_v59  ;;  %v1084_v5 = vadd.f32 %v1083_v0, %v1082_v63  ;;  %v1279_v9 = vadd.f32 %v1278_v2, %v1277_v61  ;;  %v559_v12 = vadd.f32 %v1938_v51, %v1932_v38 }
 0x109   :  { %v1665_v7 = vpop.f32.mrb[16].mxu0  ;;  %1007 = vst.msk [vmem:[%s2546_s3 + $0x30] sm:$0xf] %vm994_vm2, %v1548_v62  ;;  %v1207_v13 = vmul.f32 %v688_v45, %v688_v45  ;;  %v1280_v15 = vsel %vm1059_vm3, %v1205_v3, 0.0  ;;  %v2086_v19 = vpop.f32.mrb[16].mxu1  ;;  %v1087_v21 = vsel %vm1059_vm3, %v688_v45, 0.0  ;;  %v1549_v23 = vpack.c.bf16 %v687_v10, %v687_v10 }
 0x10a   :  { %v483_v11 = vpop.f32.mrb[17].mxu0  ;;  %1010 = vst.msk [vmem:[%s2546_s3 + $0x3c] sm:$0xf] %vm994_vm2, %v1551_v4  ;;  %v492_v16 = vadd.f32 %v1665_v7, %v1932_v38  ;;  %v1281_v22 = vadd.f32 %v1280_v15, %v1279_v9  ;;  %v1085_v51 = vsel %vm1059_vm3, %v687_v10, 0.0  ;;  %v2090_v27 = vpop.f32.mrb[17].mxu1  ;;  %v1206_v29 = vmul.f32 %v687_v10, %v687_v10 }
 0x10b   :  { %v484_v17 = vadd.f32 %v1932_v38, %v483_v11  ;;  %v1666_v18 = vpop.f32.mrb[18].mxu0  ;;  %v1086_v28 = vadd.f32 %v1085_v51, %v1084_v5  ;;  %v2092_v33 = vpop.f32.mrb[18].mxu1  ;;  %v1208_v34 = vmul.f32 %v689_v59, %v689_v59  ;;  %1008 = vst.msk [vmem:[%s2546_s3 + $0x34] sm:$0xf] %vm994_vm2, %v1549_v23  ;;  %v2100_v39 = vmax.f32 %v559_v12, 0.0 }
 0x10c   :  { %v486_v26 = vpop.f32.mrb[19].mxu0  ;;  %v692_v31 = vmax.f32 %v492_v16, 0.0  ;;  %v495_v36 = vadd.f32 %v1666_v18, %v1932_v38  ;;  %v2102_v40 = vpop.f32.mrb[19].mxu1  ;;  %v1284_v41 = vsel %vm1059_vm3, %v1207_v13, 0.0  ;;  %v1282_v44 = vsel %vm1059_vm3, %v1206_v29, 0.0 }
 0x10d   :  { %v690_v32 = vmax.f32 %v484_v17, 0.0  ;;  %v487_v37 = vadd.f32 %v1932_v38, %v486_v26  ;;  %v1088_v43 = vadd.f32 %v1087_v21, %v1086_v28  ;;  %v1089_v46 = vsel %vm1059_vm3, %v689_v59, 0.0 }
 0x10e   :  { %v1554_v45 = vpack.c.bf16 %v692_v31, %v692_v31  ;;  %v1283_v48 = vadd.f32 %v1282_v44, %v1281_v22  ;;  %v693_v57 = vmax.f32 %v495_v36, 0.0  ;;  %v1286_v62 = vsel %vm1059_vm3, %v1208_v34, 0.0 }
 0x10f   :  { %v1552_v49 = vpack.c.bf16 %v690_v32, %v690_v32  ;;  %v1091_v50 = vsel %vm1059_vm3, %v690_v32, 0.0  ;;  %v1090_v52 = vadd.f32 %v1089_v46, %v1088_v43  ;;  %v1209_v56 = vmul.f32 %v690_v32, %v690_v32 }
 0x110   :  { %1013 = vst.msk [vmem:[%s2546_s3 + $0x48] sm:$0xf] %vm994_vm2, %v1554_v45  ;;  %v691_v58 = vmax.f32 %v487_v37, 0.0  ;;  %v1285_v63 = vadd.f32 %v1284_v41, %v1283_v48  ;;  %v1571_v2 = vpack.c.bf16 %v2100_v39, %v2100_v39  ;;  %v1095_v3 = vsel %vm1059_vm3, %v692_v31, 0.0 }
 0x111   :  { %v1669_v61 = vpop.f32.mrb[20].mxu0  ;;  %1011 = vst.msk [vmem:[%s2546_s3 + $0x40] sm:$0xf] %vm994_vm2, %v1552_v49  ;;  %v1092_v4 = vadd.f32 %v1091_v50, %v1090_v52  ;;  %v1288_v7 = vsel %vm1059_vm3, %v1209_v56, 0.0  ;;  %v1555_v5 = vpack.c.bf16 %v693_v57, %v693_v57  ;;  %v2122_v10 = vpop.f32.mrb[20].mxu1  ;;  %v1211_v11 = vmul.f32 %v692_v31, %v692_v31 }
 0x112   :  { %v508_v59 = vadd.f32 %v1669_v61, %v1932_v38  ;;  %v499_v0 = vpop.f32.mrb[21].mxu0  ;;  %v1287_v12 = vadd.f32 %v1286_v62, %v1285_v63  ;;  %v1553_v13 = vpack.c.bf16 %v691_v58, %v691_v58  ;;  %v1093_v15 = vsel %vm1059_vm3, %v691_v58, 0.0  ;;  %1030 = vst.msk [vmem:[%s2546_s3 + $0x8c] sm:$0xf] %vm994_vm2, %v1571_v2  ;;  %v2129_v17 = vpop.f32.mrb[21].mxu1 }
 0x113   :  { %v1670_v9 = vpop.f32.mrb[22].mxu0  ;;  %1014 = vst.msk [vmem:[%s2546_s3 + $0x4c] sm:$0xf] %vm994_vm2, %v1555_v5  ;;  %v1094_v18 = vadd.f32 %v1093_v15, %v1092_v4  ;;  %v1210_v21 = vmul.f32 %v691_v58, %v691_v58  ;;  %v500_v23 = vadd.f32 %v1932_v38, %v499_v0  ;;  %v2136_v51 = vpop.f32.mrb[22].mxu1  ;;  %v1212_v28 = vmul.f32 %v693_v57, %v693_v57 }
 0x114   :  { %v502_v16 = vpop.f32.mrb[23].mxu0  ;;  %v696_v22 = vmax.f32 %v508_v59, 0.0  ;;  %v1289_v26 = vadd.f32 %v1288_v7, %v1287_v12  ;;  %1012 = vst.msk [vmem:[%s2546_s3 + $0x44] sm:$0xf] %vm994_vm2, %v1553_v13  ;;  %v511_v29 = vadd.f32 %v1670_v9, %v1932_v38  ;;  %v2144_v32 = vpop.f32.mrb[23].mxu1  ;;  %v1097_v41 = vsel %vm1059_vm3, %v693_v57, 0.0 }
 0x115   :  { %v503_v31 = vadd.f32 %v1932_v38, %v502_v16  ;;  %v1096_v34 = vadd.f32 %v1095_v3, %v1094_v18  ;;  %v1290_v36 = vsel %vm1059_vm3, %v1210_v21, 0.0  ;;  %v694_v44 = vmax.f32 %v500_v23, 0.0 }
 0x116   :  { %v1558_v37 = vpack.c.bf16 %v696_v22, %v696_v22  ;;  %v1291_v43 = vadd.f32 %v1290_v36, %v1289_v26  ;;  %v697_v45 = vmax.f32 %v511_v29, 0.0  ;;  %v1292_v46 = vsel %vm1059_vm3, %v1211_v11, 0.0 }
 0x117   :  { %v1098_v48 = vadd.f32 %v1097_v41, %v1096_v34  ;;  %v695_v49 = vmax.f32 %v503_v31, 0.0  ;;  %v1294_v52 = vsel %vm1059_vm3, %v1212_v28, 0.0  ;;  %v1556_v58 = vpack.c.bf16 %v694_v44, %v694_v44 }
 0x118   :  { %1017 = vst.msk [vmem:[%s2546_s3 + $0x58] sm:$0xf] %vm994_vm2, %v1558_v37  ;;  %v1293_v56 = vadd.f32 %v1292_v46, %v1291_v43  ;;  %v1099_v61 = vsel %vm1059_vm3, %v694_v44, 0.0  ;;  %v1103_v62 = vsel %vm1059_vm3, %v696_v22, 0.0  ;;  %v1213_v59 = vmul.f32 %v694_v44, %v694_v44 }
 0x119   :  { %v1673_v50 = vpop.f32.mrb[24].mxu0  ;;  %v1100_v63 = vadd.f32 %v1099_v61, %v1098_v48  ;;  %v1559_v0 = vpack.c.bf16 %v697_v45, %v697_v45  ;;  %v2156_v3 = vpop.f32.mrb[24].mxu1  ;;  %v1215_v4 = vmul.f32 %v696_v22, %v696_v22  ;;  %1015 = vst.msk [vmem:[%s2546_s3 + $0x50] sm:$0xf] %vm994_vm2, %v1556_v58  ;;  %v1557_v5 = vpack.c.bf16 %v695_v49, %v695_v49 }
 0x11a   :  { %v515_v57 = vpop.f32.mrb[25].mxu0  ;;  %v1295_v7 = vadd.f32 %v1294_v52, %v1293_v56  ;;  %v1101_v9 = vsel %vm1059_vm3, %v695_v49, 0.0  ;;  %v2163_v12 = vpop.f32.mrb[25].mxu1  ;;  %v1296_v13 = vsel %vm1059_vm3, %v1213_v59, 0.0  ;;  %v1214_v16 = vmul.f32 %v695_v49, %v695_v49 }
 0x11b   :  { %v1674_v2 = vpop.f32.mrb[26].mxu0  ;;  %1018 = vst.msk [vmem:[%s2546_s3 + $0x5c] sm:$0xf] %vm994_vm2, %v1559_v0  ;;  %v1102_v15 = vadd.f32 %v1101_v9, %v1100_v63  ;;  %v524_v18 = vadd.f32 %v1673_v50, %v1932_v38  ;;  %v2171_v21 = vpop.f32.mrb[26].mxu1  ;;  %v1105_v23 = vsel %vm1059_vm3, %v697_v45, 0.0  ;;  %v516_v26 = vadd.f32 %v1932_v38, %v515_v57 }
 0x11c   :  { %v518_v11 = vpop.f32.mrb[27].mxu0  ;;  %v1297_v22 = vadd.f32 %v1296_v13, %v1295_v7  ;;  %1016 = vst.msk [vmem:[%s2546_s3 + $0x54] sm:$0xf] %vm994_vm2, %v1557_v5  ;;  %v527_v28 = vadd.f32 %v1674_v2, %v1932_v38  ;;  %v2180_v29 = vpop.f32.mrb[27].mxu1  ;;  %v1216_v31 = vmul.f32 %v697_v45, %v697_v45  ;;  %v1298_v36 = vsel %vm1059_vm3, %v1214_v16, 0.0 }
 0x11d   :  { %v1104_v34 = vadd.f32 %v1103_v62, %v1102_v15  ;;  %v700_v37 = vmax.f32 %v524_v18, 0.0  ;;  %v698_v43 = vmax.f32 %v516_v26, 0.0  ;;  %v519_v46 = vadd.f32 %v1932_v38, %v518_v11 }
 0x11e   :  { %v1299_v41 = vadd.f32 %v1298_v36, %v1297_v22  ;;  %v701_v44 = vmax.f32 %v527_v28, 0.0  ;;  %v1300_v48 = vsel %vm1059_vm3, %v1215_v4, 0.0  ;;  %v1302_v62 = vsel %vm1059_vm3, %v1216_v31, 0.0 }
 0x11f   :  { %v1562_v49 = vpack.c.bf16 %v700_v37, %v700_v37  ;;  %v1106_v50 = vadd.f32 %v1105_v23, %v1104_v34  ;;  %v1560_v58 = vpack.c.bf16 %v698_v43, %v698_v43  ;;  %v1107_v61 = vsel %vm1059_vm3, %v698_v43, 0.0 }
 0x120   :  { %v1301_v56 = vadd.f32 %v1300_v48, %v1299_v41  ;;  %v1217_v57 = vmul.f32 %v698_v43, %v698_v43  ;;  %v1563_v59 = vpack.c.bf16 %v701_v44, %v701_v44  ;;  %v1111_v4 = vsel %vm1059_vm3, %v700_v37, 0.0 }
 0x121   :  { %v1677_v52 = vpop.f32.mrb[28].mxu0  ;;  %1021 = vst.msk [vmem:[%s2546_s3 + $0x68] sm:$0xf] %vm994_vm2, %v1562_v49  ;;  %v1108_v63 = vadd.f32 %v1107_v61, %v1106_v50  ;;  %v2191_v2 = vpop.f32.mrb[28].mxu1  ;;  %1019 = vst.msk [vmem:[%s2546_s3 + $0x60] sm:$0xf] %vm994_vm2, %v1560_v58  ;;  %v1219_v26 = vmul.f32 %v700_v37, %v700_v37  ;;  %v1220_v50 = vmul.f32 %v701_v44, %v701_v44 }
 0x122   :  { %v531_v45 = vpop.f32.mrb[29].mxu0  ;;  %v1303_v7 = vadd.f32 %v1302_v62, %v1301_v56  ;;  %v1304_v5 = vsel %vm1059_vm3, %v1217_v57, 0.0  ;;  %v699_v9 = vmax.f32 %v519_v46, 0.0  ;;  %v2199_v13 = vpop.f32.mrb[29].mxu1  ;;  %1022 = vst.msk [vmem:[%s2546_s3 + $0x6c] sm:$0xf] %vm994_vm2, %v1563_v59  ;;  %v540_v15 = vadd.f32 %v1677_v52, %v1932_v38 }
 0x123   :  { %v1678_v0 = vpop.f32.mrb[30].mxu0  ;;  %v532_v16 = vadd.f32 %v1932_v38, %v531_v45  ;;  %v2209_v23 = vpop.f32.mrb[30].mxu1  ;;  %v1113_v49 = vsel %vm1059_vm3, %v701_v44, 0.0  ;;  %v551_v57 = vadd.f32 %v1932_v38, %v1941_v55  ;;  %v572_v44 = vadd.f32 %v1970_v14, %v1932_v38 }
 0x124   :  { %v534_v11 = vpop.f32.mrb[31].mxu0  ;;  %v543_v18 = vadd.f32 %v1678_v0, %v1932_v38  ;;  %v1305_v28 = vadd.f32 %v1304_v5, %v1303_v7  ;;  %v1561_v31 = vpack.c.bf16 %v699_v9, %v699_v9  ;;  %v1109_v34 = vsel %vm1059_vm3, %v699_v9, 0.0  ;;  %v2212_v36 = vpop.f32.mrb[31].mxu1 }
 0x125   :  { %v535_v22 = vadd.f32 %v1932_v38, %v534_v11  ;;  %v1110_v41 = vadd.f32 %v1109_v34, %v1108_v63  ;;  %v1218_v43 = vmul.f32 %v699_v9, %v699_v9  ;;  %v704_v46 = vmax.f32 %v540_v15, 0.0 }
 0x126   :  { %v702_v48 = vmax.f32 %v532_v16, 0.0  ;;  %1020 = vst.msk [vmem:[%s2546_s3 + $0x64] sm:$0xf] %vm994_vm2, %v1561_v31  ;;  %v705_v52 = vmax.f32 %v543_v18, 0.0  ;;  %v1308_v59 = vsel %vm1059_vm3, %v1219_v26, 0.0  ;;  %v1310_v5 = vsel %vm1059_vm3, %v1220_v50, 0.0 }
 0x127   :  { %v703_v37 = vmax.f32 %v535_v22, 0.0  ;;  %v1112_v56 = vadd.f32 %v1111_v4, %v1110_v41  ;;  %v1306_v58 = vsel %vm1059_vm3, %v1218_v43, 0.0  ;;  %v1566_v61 = vpack.c.bf16 %v704_v46, %v704_v46 }
 0x128   :  { %v1307_v45 = vadd.f32 %v1306_v58, %v1305_v28  ;;  %v1564_v62 = vpack.c.bf16 %v702_v48, %v702_v48  ;;  %v1115_v63 = vsel %vm1059_vm3, %v702_v48, 0.0  ;;  %v1221_v4 = vmul.f32 %v702_v48, %v702_v48 }
 0x129   :  { %1025 = vst.msk [vmem:[%s2546_s3 + $0x78] sm:$0xf] %vm994_vm2, %v1566_v61  ;;  %v1114_v0 = vadd.f32 %v1113_v49, %v1112_v56  ;;  %v1567_v7 = vpack.c.bf16 %v705_v52, %v705_v52  ;;  %v1565_v9 = vpack.c.bf16 %v703_v37, %v703_v37  ;;  %v1117_v15 = vsel %vm1059_vm3, %v703_v37, 0.0 }
 0x12a   :  { %v1309_v55 = vadd.f32 %v1308_v59, %v1307_v45  ;;  %1023 = vst.msk [vmem:[%s2546_s3 + $0x70] sm:$0xf] %vm994_vm2, %v1564_v62  ;;  %v1312_v11 = vsel %vm1059_vm3, %v1221_v4, 0.0  ;;  %v1222_v16 = vmul.f32 %v703_v37, %v703_v37  ;;  %v1223_v18 = vmul.f32 %v704_v46, %v704_v46 }
 0x12b   :  { %v1116_v14 = vadd.f32 %v1115_v63, %v1114_v0  ;;  %1026 = vst.msk [vmem:[%s2546_s3 + $0x7c] sm:$0xf] %vm994_vm2, %v1567_v7  ;;  %1024 = vst.msk [vmem:[%s2546_s3 + $0x74] sm:$0xf] %vm994_vm2, %v1565_v9  ;;  %v707_v26 = vmax.f32 %v551_v57, 0.0  ;;  %v2245_v28 = vmax.f32 %v572_v44, 0.0  ;;  %v564_v41 = vadd.f32 %v1932_v38, %v1973_v20 }
 0x12c   :  { %v1311_v22 = vadd.f32 %v1310_v5, %v1309_v55  ;;  %v1314_v34 = vsel %vm1059_vm3, %v1222_v16, 0.0  ;;  %v575_v43 = vadd.f32 %v1980_v25, %v1932_v38  ;;  %v1119_v48 = vsel %vm1059_vm3, %v704_v46, 0.0 }
 0x12d   :  { %v1118_v31 = vadd.f32 %v1117_v15, %v1116_v14  ;;  %v1225_v50 = vmul.f32 %v1978_v24, %v1978_v24  ;;  %v1569_v37 = vpack.c.bf16 %v707_v26, %v707_v26  ;;  %v1224_v56 = vmul.f32 %v705_v52, %v705_v52 }
 0x12e   :  { %v1313_v49 = vadd.f32 %v1312_v11, %v1311_v22  ;;  %v1123_v61 = vsel %vm1059_vm3, %v1978_v24, 0.0  ;;  %v1574_v57 = vpack.c.bf16 %v2245_v28, %v2245_v28  ;;  %v1121_v20 = vsel %vm1059_vm3, %v705_v52, 0.0 }
 0x12f   :  { %v1120_v58 = vadd.f32 %v1119_v48, %v1118_v31  ;;  %1028 = vst.msk [vmem:[%s2546_s3 + $0x84] sm:$0xf] %vm994_vm2, %v1569_v37  ;;  %v710_v25 = vmax.f32 %v564_v41, 0.0  ;;  %v713_v46 = vmax.f32 %v575_v43, 0.0  ;;  %v1316_v62 = vsel %vm1059_vm3, %v1223_v18, 0.0 }
 0x130   :  { %v1315_v45 = vadd.f32 %v1314_v34, %v1313_v49  ;;  %1033 = vst.msk [vmem:[%s2546_s3 + $0x98] sm:$0xf] %vm994_vm2, %v1574_v57  ;;  %v567_v24 = vadd.f32 %v1932_v38, %v1984_v30  ;;  %v588_v52 = vadd.f32 %v2008_v53, %v1932_v38  ;;  %v1127_v59 = vsel %vm1059_vm3, %v1960_v8, 0.0 }
 0x131   :  { %v1122_v63 = vadd.f32 %v1121_v20, %v1120_v58  ;;  %v1320_v0 = vsel %vm1059_vm3, %v1225_v50, 0.0  ;;  %v1572_v4 = vpack.c.bf16 %v710_v25, %v710_v25  ;;  %v1318_v7 = vsel %vm1059_vm3, %v1224_v56, 0.0 }
 0x132   :  { %v1317_v44 = vadd.f32 %v1316_v62, %v1315_v45  ;;  %v1226_v55 = vmul.f32 %v707_v26, %v707_v26  ;;  %v1575_v9 = vpack.c.bf16 %v713_v46, %v713_v46  ;;  %v1125_v11 = vsel %vm1059_vm3, %v707_v26, 0.0 }
 0x133   :  { %v1124_v5 = vadd.f32 %v1123_v61, %v1122_v63  ;;  %1031 = vst.msk [vmem:[%s2546_s3 + $0x90] sm:$0xf] %vm994_vm2, %v1572_v4  ;;  %v711_v30 = vmax.f32 %v567_v24, 0.0  ;;  %v2282_v53 = vmax.f32 %v588_v52, 0.0  ;;  %v1227_v15 = vmul.f32 %v1960_v8, %v1960_v8 }
 0x134   :  { %v1319_v14 = vadd.f32 %v1318_v7, %v1317_v44  ;;  %1034 = vst.msk [vmem:[%s2546_s3 + $0x9c] sm:$0xf] %vm994_vm2, %v1575_v9  ;;  %v580_v18 = vadd.f32 %v1932_v38, %v2017_v60  ;;  %v591_v22 = vadd.f32 %v2025_v1, %v1932_v38  ;;  %v1129_v31 = vsel %vm1059_vm3, %v2100_v39, 0.0 }
 0x135   :  { %v1126_v16 = vadd.f32 %v1125_v11, %v1124_v5  ;;  %v1228_v34 = vmul.f32 %v2100_v39, %v2100_v39  ;;  %v1573_v8 = vpack.c.bf16 %v711_v30, %v711_v30  ;;  %v1322_v43 = vsel %vm1059_vm3, %v1226_v55, 0.0 }
 0x136   :  { %v1321_v26 = vadd.f32 %v1320_v0, %v1319_v14  ;;  %v1229_v48 = vmul.f32 %v710_v25, %v710_v25  ;;  %v1578_v49 = vpack.c.bf16 %v2282_v53, %v2282_v53  ;;  %v1131_v60 = vsel %vm1059_vm3, %v710_v25, 0.0 }
 0x137   :  { %v1128_v41 = vadd.f32 %v1127_v59, %v1126_v16  ;;  %1032 = vst.msk [vmem:[%s2546_s3 + $0x94] sm:$0xf] %vm994_vm2, %v1573_v8  ;;  %v714_v1 = vmax.f32 %v580_v18, 0.0  ;;  %v717_v37 = vmax.f32 %v591_v22, 0.0  ;;  %v1324_v39 = vsel %vm1059_vm3, %v1227_v15, 0.0 }
 0x138   :  { %v1323_v50 = vadd.f32 %v1322_v43, %v1321_v26  ;;  %1037 = vst.msk [vmem:[%s2546_s3 + $0xa8] sm:$0xf] %vm994_vm2, %v1578_v49  ;;  %v583_v58 = vadd.f32 %v1932_v38, %v2027_v6  ;;  %v604_v61 = vadd.f32 %v2048_v35, %v1932_v38  ;;  %v1326_v57 = vsel %vm1059_vm3, %v1228_v34, 0.0 }
 0x139   :  { %v1130_v56 = vadd.f32 %v1129_v31, %v1128_v41  ;;  %v1135_v45 = vsel %vm1059_vm3, %v2245_v28, 0.0  ;;  %v1576_v25 = vpack.c.bf16 %v714_v1, %v714_v1  ;;  %v1328_v63 = vsel %vm1059_vm3, %v1229_v48, 0.0 }
 0x13a   :  { %v1325_v20 = vadd.f32 %v1324_v39, %v1323_v50  ;;  %v1230_v24 = vmul.f32 %v711_v30, %v711_v30  ;;  %v1579_v52 = vpack.c.bf16 %v717_v37, %v717_v37  ;;  %v1133_v59 = vsel %vm1059_vm3, %v711_v30, 0.0 }
 0x13b   :  { %v1132_v62 = vadd.f32 %v1131_v60, %v1130_v56  ;;  %1035 = vst.msk [vmem:[%s2546_s3 + $0xa0] sm:$0xf] %vm994_vm2, %v1576_v25  ;;  %v715_v6 = vmax.f32 %v583_v58, 0.0  ;;  %v2324_v35 = vmax.f32 %v604_v61, 0.0  ;;  %v1231_v0 = vmul.f32 %v2245_v28, %v2245_v28 }
 0x13c   :  { %v1327_v44 = vadd.f32 %v1326_v57, %v1325_v20  ;;  %1038 = vst.msk [vmem:[%s2546_s3 + $0xac] sm:$0xf] %vm994_vm2, %v1579_v52  ;;  %v596_v7 = vadd.f32 %v1932_v38, %v2056_v42  ;;  %v607_v5 = vadd.f32 %v2060_v47, %v1932_v38  ;;  %v1137_v9 = vsel %vm1059_vm3, %v713_v46, 0.0 }
 0x13d   :  { %v1134_v4 = vadd.f32 %v1133_v59, %v1132_v62  ;;  %v1232_v14 = vmul.f32 %v713_v46, %v713_v46  ;;  %v1577_v11 = vpack.c.bf16 %v715_v6, %v715_v6  ;;  %v1330_v28 = vsel %vm1059_vm3, %v1230_v24, 0.0 }
 0x13e   :  { %v1329_v55 = vadd.f32 %v1328_v63, %v1327_v44  ;;  %v1233_v15 = vmul.f32 %v714_v1, %v714_v1  ;;  %v1582_v16 = vpack.c.bf16 %v2324_v35, %v2324_v35  ;;  %v1139_v22 = vsel %vm1059_vm3, %v714_v1, 0.0 }
 0x13f   :  { %v1136_v30 = vadd.f32 %v1135_v45, %v1134_v4  ;;  %1036 = vst.msk [vmem:[%s2546_s3 + $0xa4] sm:$0xf] %vm994_vm2, %v1577_v11  ;;  %v718_v42 = vmax.f32 %v596_v7, 0.0  ;;  %v721_v47 = vmax.f32 %v607_v5, 0.0  ;;  %v1332_v46 = vsel %vm1059_vm3, %v1231_v0, 0.0 }
 0x140   :  { %v1331_v18 = vadd.f32 %v1330_v28, %v1329_v55  ;;  %1041 = vst.msk [vmem:[%s2546_s3 + $0xb8] sm:$0xf] %vm994_vm2, %v1582_v16  ;;  %v599_v31 = vadd.f32 %v1932_v38, %v2063_v54  ;;  %v620_v34 = vadd.f32 %v2086_v19, %v1932_v38  ;;  %v1334_v8 = vsel %vm1059_vm3, %v1232_v14, 0.0 }
 0x141   :  { %v1138_v26 = vadd.f32 %v1137_v9, %v1136_v30  ;;  %v1143_v43 = vsel %vm1059_vm3, %v2282_v53, 0.0  ;;  %v1580_v48 = vpack.c.bf16 %v718_v42, %v718_v42  ;;  %v1336_v50 = vsel %vm1059_vm3, %v1233_v15, 0.0 }
 0x142   :  { %v1333_v41 = vadd.f32 %v1332_v46, %v1331_v18  ;;  %v1234_v60 = vmul.f32 %v715_v6, %v715_v6  ;;  %v1583_v1 = vpack.c.bf16 %v721_v47, %v721_v47  ;;  %v1141_v56 = vsel %vm1059_vm3, %v715_v6, 0.0 }
 0x143   :  { %v1140_v49 = vadd.f32 %v1139_v22, %v1138_v26  ;;  %1039 = vst.msk [vmem:[%s2546_s3 + $0xb0] sm:$0xf] %vm994_vm2, %v1580_v48  ;;  %v719_v54 = vmax.f32 %v599_v31, 0.0  ;;  %v2363_v19 = vmax.f32 %v620_v34, 0.0  ;;  %v1235_v58 = vmul.f32 %v2282_v53, %v2282_v53 }
 0x144   :  { %v1335_v39 = vadd.f32 %v1334_v8, %v1333_v41  ;;  %1042 = vst.msk [vmem:[%s2546_s3 + $0xbc] sm:$0xf] %vm994_vm2, %v1583_v1  ;;  %v612_v57 = vadd.f32 %v1932_v38, %v2090_v27  ;;  %v623_v20 = vadd.f32 %v2092_v33, %v1932_v38  ;;  %v1145_v25 = vsel %vm1059_vm3, %v717_v37, 0.0  ;;  %v2431_v1 = vld [vmem:[%s2545_s2] ss:$0 sm:$0xff] }
 0x145   :  { %v1142_v61 = vadd.f32 %v1141_v56, %v1140_v49  ;;  %v1236_v62 = vmul.f32 %v717_v37, %v717_v37  ;;  %v1581_v63 = vpack.c.bf16 %v719_v54, %v719_v54  ;;  %v1338_v53 = vsel %vm1059_vm3, %v1234_v60, 0.0 }
 0x146   :  { %v1337_v45 = vadd.f32 %v1336_v50, %v1335_v39  ;;  %v1237_v52 = vmul.f32 %v718_v42, %v718_v42  ;;  %v1586_v44 = vpack.c.bf16 %v2363_v19, %v2363_v19  ;;  %v1147_v6 = vsel %vm1059_vm3, %v718_v42, 0.0 }
 0x147   :  { %v1144_v24 = vadd.f32 %v1143_v43, %v1142_v61  ;;  %1040 = vst.msk [vmem:[%s2546_s3 + $0xb4] sm:$0xf] %vm994_vm2, %v1581_v63  ;;  %v722_v27 = vmax.f32 %v612_v57, 0.0  ;;  %v725_v33 = vmax.f32 %v623_v20, 0.0  ;;  %v1340_v37 = vsel %vm1059_vm3, %v1235_v58, 0.0 }
 0x148   :  { %v1339_v59 = vadd.f32 %v1338_v53, %v1337_v45  ;;  %1045 = vst.msk [vmem:[%s2546_s3 + $0xc8] sm:$0xf] %vm994_vm2, %v1586_v44  ;;  %v615_v4 = vadd.f32 %v1932_v38, %v2102_v40  ;;  %v636_v7 = vadd.f32 %v2122_v10, %v1932_v38  ;;  %v1342_v5 = vsel %vm1059_vm3, %v1236_v62, 0.0 }
 0x149   :  { %v1146_v0 = vadd.f32 %v1145_v25, %v1144_v24  ;;  %v1151_v9 = vsel %vm1059_vm3, %v2324_v35, 0.0  ;;  %v1584_v14 = vpack.c.bf16 %v722_v27, %v722_v27  ;;  %v1344_v30 = vsel %vm1059_vm3, %v1237_v52, 0.0 }
 0x14a   :  { %v1341_v55 = vadd.f32 %v1340_v37, %v1339_v59  ;;  %v1238_v28 = vmul.f32 %v719_v54, %v719_v54  ;;  %v1587_v15 = vpack.c.bf16 %v725_v33, %v725_v33  ;;  %v1149_v18 = vsel %vm1059_vm3, %v719_v54, 0.0 }
 0x14b   :  { %v1148_v11 = vadd.f32 %v1147_v6, %v1146_v0  ;;  %1043 = vst.msk [vmem:[%s2546_s3 + $0xc0] sm:$0xf] %vm994_vm2, %v1584_v14  ;;  %v723_v40 = vmax.f32 %v615_v4, 0.0  ;;  %v2402_v10 = vmax.f32 %v636_v7, 0.0  ;;  %v1239_v22 = vmul.f32 %v2324_v35, %v2324_v35 }
 0x14c   :  { %v1343_v16 = vadd.f32 %v1342_v5, %v1341_v55  ;;  %1046 = vst.msk [vmem:[%s2546_s3 + $0xcc] sm:$0xf] %vm994_vm2, %v1587_v15  ;;  %v628_v46 = vadd.f32 %v1932_v38, %v2129_v17  ;;  %v639_v26 = vadd.f32 %v2136_v51, %v1932_v38  ;;  %v1153_v34 = vsel %vm1059_vm3, %v721_v47, 0.0 }
 0x14d   :  { %v1150_v42 = vadd.f32 %v1149_v18, %v1148_v11  ;;  %v1240_v8 = vmul.f32 %v721_v47, %v721_v47  ;;  %v1585_v41 = vpack.c.bf16 %v723_v40, %v723_v40  ;;  %v1346_v35 = vsel %vm1059_vm3, %v1238_v28, 0.0 }
 0x14e   :  { %v1345_v31 = vadd.f32 %v1344_v30, %v1343_v16  ;;  %v1241_v48 = vmul.f32 %v722_v27, %v722_v27  ;;  %v1590_v49 = vpack.c.bf16 %v2402_v10, %v2402_v10  ;;  %v1155_v60 = vsel %vm1059_vm3, %v722_v27, 0.0 }
 0x14f   :  { %v1152_v43 = vadd.f32 %v1151_v9, %v1150_v42  ;;  %1044 = vst.msk [vmem:[%s2546_s3 + $0xc4] sm:$0xf] %vm994_vm2, %v1585_v41  ;;  %v726_v38 = vmax.f32 %v628_v46, 0.0  ;;  %v729_v17 = vmax.f32 %v639_v26, 0.0  ;;  %v1348_v51 = vsel %vm1059_vm3, %v1239_v22, 0.0 }
 0x150   :  { %v1347_v50 = vadd.f32 %v1346_v35, %v1345_v31  ;;  %1049 = vst.msk [vmem:[%s2546_s3 + $0xd8] sm:$0xf] %vm994_vm2, %v1590_v49  ;;  %v631_v39 = vadd.f32 %v2431_v1, %v2144_v32  ;;  %v652_v56 = vadd.f32 %v2431_v1, %v2156_v3  ;;  %v1350_v54 = vsel %vm1059_vm3, %v1240_v8, 0.0 }
 0x151   :  { %v1154_v47 = vadd.f32 %v1153_v34, %v1152_v43  ;;  %v1159_v61 = vsel %vm1059_vm3, %v2363_v19, 0.0  ;;  %v1588_v57 = vpack.c.bf16 %v726_v38, %v726_v38  ;;  %v1352_v45 = vsel %vm1059_vm3, %v1241_v48, 0.0 }
 0x152   :  { %v1349_v58 = vadd.f32 %v1348_v51, %v1347_v50  ;;  %v1242_v25 = vmul.f32 %v723_v40, %v723_v40  ;;  %v1591_v62 = vpack.c.bf16 %v729_v17, %v729_v17  ;;  %v1157_v24 = vsel %vm1059_vm3, %v723_v40, 0.0 }
 0x153   :  { %v1156_v20 = vadd.f32 %v1155_v60, %v1154_v47  ;;  %1047 = vst.msk [vmem:[%s2546_s3 + $0xd0] sm:$0xf] %vm994_vm2, %v1588_v57  ;;  %v727_v32 = vmax.f32 %v631_v39, 0.0  ;;  %v2446_v3 = vmax.f32 %v652_v56, 0.0  ;;  %v1243_v53 = vmul.f32 %v2363_v19, %v2363_v19 }
 0x154   :  { %v1351_v63 = vadd.f32 %v1350_v54, %v1349_v58  ;;  %1050 = vst.msk [vmem:[%s2546_s3 + $0xdc] sm:$0xf] %vm994_vm2, %v1591_v62  ;;  %v644_v44 = vadd.f32 %v2431_v1, %v2163_v12  ;;  %v655_v59 = vadd.f32 %v2431_v1, %v2171_v21  ;;  %v1161_v27 = vsel %vm1059_vm3, %v725_v33, 0.0 }
 0x155   :  { %v1158_v52 = vadd.f32 %v1157_v24, %v1156_v20  ;;  %v1244_v37 = vmul.f32 %v725_v33, %v725_v33  ;;  %v1589_v0 = vpack.c.bf16 %v727_v32, %v727_v32  ;;  %v1354_v19 = vsel %vm1059_vm3, %v1242_v25, 0.0 }
 0x156   :  { %v1353_v6 = vadd.f32 %v1352_v45, %v1351_v63  ;;  %v1245_v7 = vmul.f32 %v726_v38, %v726_v38  ;;  %v1594_v5 = vpack.c.bf16 %v2446_v3, %v2446_v3  ;;  %v1163_v9 = vsel %vm1059_vm3, %v726_v38, 0.0 }
 0x157   :  { %v1160_v4 = vadd.f32 %v1159_v61, %v1158_v52  ;;  %1048 = vst.msk [vmem:[%s2546_s3 + $0xd4] sm:$0xf] %vm994_vm2, %v1589_v0  ;;  %v730_v12 = vmax.f32 %v644_v44, 0.0  ;;  %v733_v21 = vmax.f32 %v655_v59, 0.0  ;;  %v1356_v33 = vsel %vm1059_vm3, %v1243_v53, 0.0 }
 0x158   :  { %v1355_v55 = vadd.f32 %v1354_v19, %v1353_v6  ;;  %1053 = vst.msk [vmem:[%s2546_s3 + $0xe8] sm:$0xf] %vm994_vm2, %v1594_v5  ;;  %v647_v11 = vadd.f32 %v2431_v1, %v2180_v29  ;;  %v668_v30 = vadd.f32 %v2431_v1, %v2191_v2  ;;  %v1358_v28 = vsel %vm1059_vm3, %v1244_v37, 0.0 }
 0x159   :  { %v1162_v14 = vadd.f32 %v1161_v27, %v1160_v4  ;;  %v1167_v16 = vsel %vm1059_vm3, %v2402_v10, 0.0  ;;  %v1592_v18 = vpack.c.bf16 %v730_v12, %v730_v12  ;;  %v1360_v22 = vsel %vm1059_vm3, %v1245_v7, 0.0 }
 0x15a   :  { %v1357_v15 = vadd.f32 %v1356_v33, %v1355_v55  ;;  %v1246_v42 = vmul.f32 %v727_v32, %v727_v32  ;;  %v1595_v46 = vpack.c.bf16 %v733_v21, %v733_v21  ;;  %v1165_v31 = vsel %vm1059_vm3, %v727_v32, 0.0 }
 0x15b   :  { %v1164_v40 = vadd.f32 %v1163_v9, %v1162_v14  ;;  %1051 = vst.msk [vmem:[%s2546_s3 + $0xe0] sm:$0xf] %vm994_vm2, %v1592_v18  ;;  %v731_v29 = vmax.f32 %v647_v11, 0.0  ;;  %v736_v2 = vmax.f32 %v668_v30, 0.0  ;;  %v1247_v34 = vmul.f32 %v2402_v10, %v2402_v10 }
 0x15c   :  { %v1359_v26 = vadd.f32 %v1358_v28, %v1357_v15  ;;  %1054 = vst.msk [vmem:[%s2546_s3 + $0xec] sm:$0xf] %vm994_vm2, %v1595_v46  ;;  %v660_v41 = vadd.f32 %v2431_v1, %v2199_v13  ;;  %v671_v43 = vadd.f32 %v2431_v1, %v2209_v23  ;;  %v1169_v48 = vsel %vm1059_vm3, %v729_v17, 0.0 }
 0x15d   :  { %v1166_v8 = vadd.f32 %v1165_v31, %v1164_v40  ;;  %v1248_v49 = vmul.f32 %v729_v17, %v729_v17  ;;  %v1593_v50 = vpack.c.bf16 %v731_v29, %v731_v29  ;;  %v1362_v10 = vsel %vm1059_vm3, %v1246_v42, 0.0 }
 0x15e   :  { %v1361_v35 = vadd.f32 %v1360_v22, %v1359_v26  ;;  %v1249_v38 = vmul.f32 %v730_v12, %v730_v12  ;;  %v1598_v51 = vpack.c.bf16 %v736_v2, %v736_v2  ;;  %v1171_v39 = vsel %vm1059_vm3, %v730_v12, 0.0 }
 0x15f   :  { %v1168_v60 = vadd.f32 %v1167_v16, %v1166_v8  ;;  %1052 = vst.msk [vmem:[%s2546_s3 + $0xe4] sm:$0xf] %vm994_vm2, %v1593_v50  ;;  %v734_v13 = vmax.f32 %v660_v41, 0.0  ;;  %v737_v23 = vmax.f32 %v671_v43, 0.0  ;;  %v1364_v56 = vsel %vm1059_vm3, %v1247_v34, 0.0 }
 0x160   :  { %v1363_v47 = vadd.f32 %v1362_v10, %v1361_v35  ;;  %1057 = vst.msk [vmem:[%s2546_s3 + $0xf8] sm:$0xf] %vm994_vm2, %v1598_v51  ;;  %v663_v17 = vadd.f32 %v2431_v1, %v2212_v36  ;;  %v1366_v58 = vsel %vm1059_vm3, %v1248_v49, 0.0  ;;  %v1368_v45 = vsel %vm1059_vm3, %v1249_v38, 0.0 }
 0x161   :  { %v1170_v54 = vadd.f32 %v1169_v48, %v1168_v60  ;;  %v1596_v57 = vpack.c.bf16 %v734_v13, %v734_v13  ;;  %v1250_v25 = vmul.f32 %v731_v29, %v731_v29  ;;  %v1599_v62 = vpack.c.bf16 %v737_v23, %v737_v23 }
 0x162   :  { %v1365_v61 = vadd.f32 %v1364_v56, %v1363_v47  ;;  %v1173_v24 = vsel %vm1059_vm3, %v731_v29, 0.0  ;;  %v735_v32 = vmax.f32 %v663_v17, 0.0  ;;  %v1251_v36 = vmul.f32 %v2446_v3, %v2446_v3 }
 0x163   :  { %v1172_v20 = vadd.f32 %v1171_v39, %v1170_v54  ;;  %1055 = vst.msk [vmem:[%s2546_s3 + $0xf0] sm:$0xf] %vm994_vm2, %v1596_v57  ;;  %1058 = vst.msk [vmem:[%s2546_s3 + $0xfc] sm:$0xf] %vm994_vm2, %v1599_v62  ;;  %v1175_v53 = vsel %vm1059_vm3, %v2446_v3, 0.0  ;;  %v1252_v59 = vmul.f32 %v733_v21, %v733_v21  ;;  %v1370_v27 = vsel %vm1059_vm3, %v1250_v25, 0.0 }
 0x164   :  { %v1367_v63 = vadd.f32 %v1366_v58, %v1365_v61  ;;  %v1597_v44 = vpack.c.bf16 %v735_v32, %v735_v32  ;;  %v1253_v37 = vmul.f32 %v734_v13, %v734_v13  ;;  %v1177_v0 = vsel %vm1059_vm3, %v733_v21, 0.0 }
 0x165   :  { %v1174_v1 = vadd.f32 %v1173_v24, %v1172_v20  ;;  %v1179_v19 = vsel %vm1059_vm3, %v734_v13, 0.0  ;;  %v1372_v7 = vsel %vm1059_vm3, %v1251_v36, 0.0  ;;  %v1374_v55 = vsel %vm1059_vm3, %v1252_v59, 0.0 }
 0x166   :  { %v1369_v52 = vadd.f32 %v1368_v45, %v1367_v63  ;;  %1056 = vst.msk [vmem:[%s2546_s3 + $0xf4] sm:$0xf] %vm994_vm2, %v1597_v44  ;;  %v1376_v12 = vsel %vm1059_vm3, %v1253_v37, 0.0  ;;  %v1254_v33 = vmul.f32 %v735_v32, %v735_v32  ;;  %v1181_v21 = vsel %vm1059_vm3, %v735_v32, 0.0 }
 0x167   :  { %v1176_v6 = vadd.f32 %v1175_v53, %v1174_v1  ;;  %v1255_v11 = vmul.f32 %v736_v2, %v736_v2  ;;  %v1183_v28 = vsel %vm1059_vm3, %v736_v2, 0.0  ;;  %v1256_v16 = vmul.f32 %v737_v23, %v737_v23 }
 0x168   :  { %v1371_v4 = vadd.f32 %v1370_v27, %v1369_v52  ;;  %v1378_v40 = vsel %vm1059_vm3, %v1254_v33, 0.0  ;;  %v1185_v22 = vsel %vm1059_vm3, %v737_v23, 0.0 }
 0x169   :  { %v1178_v3 = vadd.f32 %v1177_v0, %v1176_v6  ;;  %v1380_v46 = vsel %vm1059_vm3, %v1255_v11, 0.0  ;;  %v1382_v29 = vsel %vm1059_vm3, %v1256_v16, 0.0 }
 0x16a   :  { %v1373_v5 = vadd.f32 %v1372_v7, %v1371_v4 }
 0x16b   :  { %v1180_v9 = vadd.f32 %v1179_v19, %v1178_v3 }
 0x16c   :  { %v1375_v14 = vadd.f32 %v1374_v55, %v1373_v5 }
 0x16d   :  { %v1182_v30 = vadd.f32 %v1181_v21, %v1180_v9 }
 0x16e   :  { %v1377_v15 = vadd.f32 %v1376_v12, %v1375_v14 }
 0x16f   :  { %v1184_v18 = vadd.f32 %v1183_v28, %v1182_v30 }
 0x170   :  { %v1379_v42 = vadd.f32 %v1378_v40, %v1377_v15 }
 0x171   :  { %v1186_v26 = vadd.f32 %v1185_v22, %v1184_v18 }
 0x172   :  { %v1381_v31 = vadd.f32 %v1380_v46, %v1379_v42 }
 0x173   :  { %v1187_v34 = vrot.slane %v1186_v26, 4 }
 0x174   :  { %v1383_v8 = vadd.f32 %v1382_v29, %v1381_v31 }
 0x175   :  { %v1188_v41 = vadd.f32 %v1187_v34, %v1186_v26 }
 0x176   :  { %v1384_v43 = vrot.slane %v1383_v8, 4 }
 0x177   :  { %v1189_v35 = vrot.slane %v1188_v41, 2 }
 0x178   :  { %v1385_v2 = vadd.f32 %v1384_v43, %v1383_v8 }
 0x179   :  { %v1190_v48 = vadd.f32 %v1189_v35, %v1188_v41 }
 0x17a   :  { %v1386_v49 = vrot.slane %v1385_v2, 2 }
 0x17b   :  { %v1191_v50 = vrot.slane %v1190_v48, 1 }
 0x17c   :  { %v1387_v60 = vadd.f32 %v1386_v49, %v1385_v2 }
 0x17d   :  { %v1192_v38 = vadd.f32 %v1191_v50, %v1190_v48 }
 0x17e   :  { %v1388_v10 = vrot.slane %v1387_v60, 1 }
 0x180   :  { %v1389_v51 = vadd.f32 %v1388_v10, %v1387_v60 }
 0x182   :  { %v1391_v47 = vsel %vm1390_vm4, %v1192_v38, %v1389_v51 }
 0x183   :  { %1393 = vst.msk [vmem:[%s2547_s4] sm:$0x3] %vm1392_vm5, %v1391_v47 }

// kernel: squeeze.10
= control target key start
LH: loop header
LB: loop body
LE: loop exit
PB: predicated region body
PF: predicated region fallthrough
CT: control target
= control target key end

     0   :  { %s37_s8 = smov 116   ;;  %vm7_vm0 = vcmask 31744   ;;  %s38_s9 = smov 120   ;;  %s55_s0 = inlined_call_operand.vmem [shape: f32[16], index: 0, kind: input, shape index: {}]   ;;  %s56_s1 = inlined_call_operand.vmem [shape: f32[4,4], index: 1, kind: output, shape index: {}]  }
   0x1   :  { %v4_v0 = vld [vmem:[%s55_s0] sm:$0x1]  ;;  %s36_s0 = smov 124  }
   0x2   :  { %5 = vst [vmem:[#allocation1] sm:$0x1] %v4_v0 }
   0x9   :  { %v9_v1 = vld [vmem:[#allocation1] sm:$0x1]  }
   0xa   :  { %v21_v2 = vld [vmem:[#allocation1] sm:$0x1]   ;;  %10 = vrot.lane.b32.xlu0 %v9_v1, %s36_s0 }
   0xb   :  { %22 = vrot.lane.b32.xlu1 %v21_v2, %s37_s8  ;;  %v6_v3 = vld [vmem:[#allocation1] sm:$0x1]  }
   0xc   :  { %v15_v4 = vld [vmem:[#allocation1] sm:$0x1]   ;;  %8 = vst.msk [vmem:[#allocation0] sm:$0x1] %vm7_vm0, %v6_v3  }
   0xe   :  { %16 = vrot.lane.b32.xlu0 %v15_v4, %s38_s9 }
  0x7c   :  { %v11_v5 = vpop.permute.xlu0 %10  }
  0x7d   :  { %v23_v6 = vpop.permute.xlu1 %22   ;;  %14 = vst.msk [vmem:[#allocation0 + $0x1] sm:$0x1] %vm7_vm0, %v11_v5  }
  0x7e   :  { %26 = vst.msk [vmem:[#allocation0 + $0x3] sm:$0x1] %vm7_vm0, %v23_v6  }
  0x80   :  { %v17_v7 = vpop.permute.xlu0 %16  }
  0x81   :  { %20 = vst.msk [vmem:[#allocation0 + $0x2] sm:$0x1] %vm7_vm0, %v17_v7  }
  0x88   :  { %v30_v8 = vld [vmem:[#allocation0] sm:$0xf] }
  0x89   :  { %32 = vst [vmem:[%s56_s1] sm:$0xf] %v30_v8 }

// kernel: tile.57
= control target key start
LH: loop header
LB: loop body
LE: loop exit
PB: predicated region body
PF: predicated region fallthrough
CT: control target
= control target key end

     0   :  { %s22_s0 = inlined_call_operand.vmem [shape: f32[4], index: 0, kind: input, shape index: {}]   ;;  %s23_s1 = inlined_call_operand.vmem [shape: f32[4,4], index: 1, kind: output, shape index: {}]  }
   0x1   :  { %v4_v0 = vld [vmem:[%s22_s0] ss:$0 sm:$0xff] }
   0x2   :  { %5 = vst [vmem:[%s23_s1] sm:$0xf] %v4_v0 }

// kernel: tile.59
= control target key start
LH: loop header
LB: loop body
LE: loop exit
PB: predicated region body
PF: predicated region fallthrough
CT: control target
= control target key end

     0   :  { %vm7_vm0 = vcmask 31744   ;;  %s37_s8 = smov 4   ;;  %s38_s9 = smov 8   ;;  %vm13_vm1 = vcmask 130144   ;;  %vm19_vm2 = vcmask 97344   ;;  %vm25_vm3 = vcmask 64544   ;;  %s55_s0 = inlined_call_operand.vmem [shape: f32[4,4], index: 0, kind: input, shape index: {}]   ;;  %s56_s1 = inlined_call_operand.vmem [shape: f32[1,16], index: 1, kind: output, shape index: {}]  }
   0x1   :  { %v4_v0 = vld [vmem:[%s55_s0] sm:$0xf]  ;;  %s36_s0 = smov 12  }
   0x2   :  { %5 = vst [vmem:[#allocation1] sm:$0xf] %v4_v0 }
   0x9   :  { %v10_v1 = vld [vmem:[#allocation1 + $0x3] sm:$0x1]   ;;  %v22_v2 = vld [vmem:[#allocation1 + $0x1] sm:$0x1]   ;;  %v6_v3 = vld [vmem:[#allocation1] sm:$0x1]  }
   0xa   :  { %11 = vrot.lane.b32.xlu0 %v10_v1, %s36_s0  ;;  %23 = vrot.lane.b32.xlu1 %v22_v2, %s37_s8  ;;  %v16_v4 = vld [vmem:[#allocation1 + $0x2] sm:$0x1]   ;;  %8 = vst.msk [vmem:[#allocation0] sm:$0x1] %vm7_vm0, %v6_v3  }
   0xe   :  { %17 = vrot.lane.b32.xlu0 %v16_v4, %s38_s9 }
  0x7c   :  { %v12_v5 = vpop.permute.xlu0 %11   ;;  %v24_v6 = vpop.permute.xlu1 %23  }
  0x7d   :  { %14 = vst.msk [vmem:[#allocation0] sm:$0x1] %vm13_vm1, %v12_v5  }
  0x80   :  { %v18_v7 = vpop.permute.xlu0 %17  }
  0x81   :  { %20 = vst.msk [vmem:[#allocation0] sm:$0x1] %vm19_vm2, %v18_v7  }
  0x82   :  { %26 = vst.msk [vmem:[#allocation0] sm:$0x1] %vm25_vm3, %v24_v6  }
  0x89   :  { %v30_v8 = vld [vmem:[#allocation0] sm:$0x1] }
  0x8a   :  { %32 = vst [vmem:[%s56_s1] sm:$0x1] %v30_v8 }

// kernel: decoder_forward.14
= control target key start
LH: loop header
LB: loop body
LE: loop exit
PB: predicated region body
PF: predicated region fallthrough
CT: control target
= control target key end

     0   :  { %vm540_vm0 = vcmask 125952   ;;  %s1408_s0 = inlined_call_operand.vmem [shape: bf16[512,16], index: 0, kind: input, shape index: {}]   ;;  %s1409_s1 = inlined_call_operand.vmem [shape: f32[1,16], index: 1, kind: input, shape index: {}]   ;;  %s1410_s2 = inlined_call_operand.vmem [shape: f32[1,16], index: 2, kind: input, shape index: {}]   ;;  %s1411_s3 = inlined_call_operand.vmem [shape: bf16[512,16], index: 3, kind: output, shape index: {}]  }
   0x1   :  { %v740_v0 = vld [vmem:[%s1408_s0] sm:$0xff]   ;;  %v867_v4 = vld [vmem:[%s1408_s0 + $0x8] sm:$0xff]   ;;  %v868_v5 = vld [vmem:[%s1408_s0 + $0x10] sm:$0xff]  }
   0x2   :  { %v924_v1 = vld [vmem:[%s1409_s1] ss:$0 sm:$0xff]  ;;  %v741_v2 = vunpack.c.l.bf16 %v740_v0  ;;  %v742_v3 = vunpack.c.h.bf16 %v740_v0  ;;  %v869_v6 = vld [vmem:[%s1408_s0 + $0x18] sm:$0xff]   ;;  %v745_v8 = vunpack.c.l.bf16 %v867_v4  ;;  %v746_v9 = vunpack.c.h.bf16 %v867_v4  ;;  %v871_v33 = vld [vmem:[%s1408_s0 + $0x28] sm:$0xff]  }
   0x3   :  { %v938_v7 = vld [vmem:[%s1410_s2] ss:$0 sm:$0xff]  ;;  %v749_v10 = vunpack.c.l.bf16 %v868_v5  ;;  %v750_v11 = vunpack.c.h.bf16 %v868_v5  ;;  %v753_v14 = vunpack.c.l.bf16 %v869_v6  ;;  %v754_v15 = vunpack.c.h.bf16 %v869_v6  ;;  %v872_v34 = vld [vmem:[%s1408_s0 + $0x30] sm:$0xff]   ;;  %v873_v39 = vld [vmem:[%s1408_s0 + $0x38] sm:$0xff]  }
   0x4   :  { %v149_v12 = vmul.f32 %v741_v2, %v924_v1  ;;  %v150_v13 = vmul.f32 %v742_v3, %v924_v1  ;;  %v151_v16 = vmul.f32 %v745_v8, %v924_v1  ;;  %v152_v17 = vmul.f32 %v746_v9, %v924_v1  ;;  %v870_v28 = vld [vmem:[%s1408_s0 + $0x20] sm:$0xff]   ;;  %v875_v6 = vld [vmem:[%s1408_s0 + $0x48] sm:$0xff]   ;;  %v876_v8 = vld [vmem:[%s1408_s0 + $0x50] sm:$0xff]  }
   0x5   :  { %v153_v18 = vmul.f32 %v749_v10, %v924_v1  ;;  %v154_v19 = vmul.f32 %v750_v11, %v924_v1  ;;  %v155_v22 = vmul.f32 %v753_v14, %v924_v1  ;;  %v156_v23 = vmul.f32 %v754_v15, %v924_v1  ;;  %v874_v0 = vld [vmem:[%s1408_s0 + $0x40] sm:$0xff]  }
   0x6   :  { %v220_v20 = vadd.f32 %v938_v7, %v149_v12  ;;  %v221_v21 = vadd.f32 %v938_v7, %v150_v13  ;;  %v222_v24 = vadd.f32 %v938_v7, %v151_v16  ;;  %v223_v25 = vadd.f32 %v938_v7, %v152_v17  ;;  %v877_v13 = vld [vmem:[%s1408_s0 + $0x58] sm:$0xff]  }
   0x7   :  { %v224_v26 = vadd.f32 %v938_v7, %v153_v18  ;;  %v225_v27 = vadd.f32 %v938_v7, %v154_v19  ;;  %v226_v31 = vadd.f32 %v938_v7, %v155_v22  ;;  %v227_v32 = vadd.f32 %v938_v7, %v156_v23 }
   0x8   :  { %v675_v29 = vpack.c.bf16 %v220_v20, %v220_v20  ;;  %v676_v30 = vpack.c.bf16 %v221_v21, %v221_v21  ;;  %v677_v35 = vpack.c.bf16 %v222_v24, %v222_v24  ;;  %v678_v36 = vpack.c.bf16 %v223_v25, %v223_v25 }
   0x9   :  { %v679_v37 = vpack.c.bf16 %v224_v26, %v224_v26  ;;  %v680_v38 = vpack.c.bf16 %v225_v27, %v225_v27  ;;  %v681_v40 = vpack.c.bf16 %v226_v31, %v226_v31  ;;  %v682_v41 = vpack.c.bf16 %v227_v32, %v227_v32 }
   0xa   :  { %541 = vst.msk [vmem:[%s1411_s3] sm:$0xf] %vm540_vm0, %v675_v29  ;;  %542 = vst.msk [vmem:[%s1411_s3 + $0x4] sm:$0xf] %vm540_vm0, %v676_v30  ;;  %v757_v42 = vunpack.c.l.bf16 %v870_v28  ;;  %v758_v43 = vunpack.c.h.bf16 %v870_v28  ;;  %v761_v44 = vunpack.c.l.bf16 %v871_v33  ;;  %v762_v45 = vunpack.c.h.bf16 %v871_v33 }
   0xb   :  { %543 = vst.msk [vmem:[%s1411_s3 + $0x8] sm:$0xf] %vm540_vm0, %v677_v35  ;;  %544 = vst.msk [vmem:[%s1411_s3 + $0xc] sm:$0xf] %vm540_vm0, %v678_v36  ;;  %v765_v46 = vunpack.c.l.bf16 %v872_v34  ;;  %v766_v47 = vunpack.c.h.bf16 %v872_v34  ;;  %v769_v50 = vunpack.c.l.bf16 %v873_v39  ;;  %v770_v51 = vunpack.c.h.bf16 %v873_v39 }
   0xc   :  { %545 = vst.msk [vmem:[%s1411_s3 + $0x10] sm:$0xf] %vm540_vm0, %v679_v37  ;;  %546 = vst.msk [vmem:[%s1411_s3 + $0x14] sm:$0xf] %vm540_vm0, %v680_v38  ;;  %v157_v48 = vmul.f32 %v757_v42, %v924_v1  ;;  %v158_v49 = vmul.f32 %v758_v43, %v924_v1  ;;  %v159_v52 = vmul.f32 %v761_v44, %v924_v1  ;;  %v773_v16 = vunpack.c.l.bf16 %v874_v0  ;;  %v878_v38 = vld [vmem:[%s1408_s0 + $0x60] sm:$0xff]   ;;  %v879_v43 = vld [vmem:[%s1408_s0 + $0x68] sm:$0xff]  }
   0xd   :  { %547 = vst.msk [vmem:[%s1411_s3 + $0x18] sm:$0xf] %vm540_vm0, %v681_v40  ;;  %548 = vst.msk [vmem:[%s1411_s3 + $0x1c] sm:$0xf] %vm540_vm0, %v682_v41  ;;  %v160_v53 = vmul.f32 %v762_v45, %v924_v1  ;;  %v161_v54 = vmul.f32 %v765_v46, %v924_v1  ;;  %v162_v55 = vmul.f32 %v766_v47, %v924_v1  ;;  %v774_v17 = vunpack.c.h.bf16 %v874_v0  ;;  %v880_v44 = vld [vmem:[%s1408_s0 + $0x70] sm:$0xff]  }
   0xe   :  { %v228_v56 = vadd.f32 %v938_v7, %v157_v48  ;;  %v229_v57 = vadd.f32 %v938_v7, %v158_v49  ;;  %v163_v58 = vmul.f32 %v769_v50, %v924_v1  ;;  %v164_v59 = vmul.f32 %v770_v51, %v924_v1  ;;  %v881_v49 = vld [vmem:[%s1408_s0 + $0x78] sm:$0xff]  }
   0xf   :  { %v230_v60 = vadd.f32 %v938_v7, %v159_v52  ;;  %v231_v61 = vadd.f32 %v938_v7, %v160_v53  ;;  %v232_v62 = vadd.f32 %v938_v7, %v161_v54  ;;  %v233_v63 = vadd.f32 %v938_v7, %v162_v55 }
  0x10   :  { %v683_v2 = vpack.c.bf16 %v228_v56, %v228_v56  ;;  %v684_v3 = vpack.c.bf16 %v229_v57, %v229_v57  ;;  %v234_v4 = vadd.f32 %v938_v7, %v163_v58  ;;  %v235_v5 = vadd.f32 %v938_v7, %v164_v59 }
  0x11   :  { %v685_v9 = vpack.c.bf16 %v230_v60, %v230_v60  ;;  %v686_v10 = vpack.c.bf16 %v231_v61, %v231_v61  ;;  %v687_v11 = vpack.c.bf16 %v232_v62, %v232_v62  ;;  %v688_v12 = vpack.c.bf16 %v233_v63, %v233_v63 }
  0x12   :  { %549 = vst.msk [vmem:[%s1411_s3 + $0x20] sm:$0xf] %vm540_vm0, %v683_v2  ;;  %550 = vst.msk [vmem:[%s1411_s3 + $0x24] sm:$0xf] %vm540_vm0, %v684_v3  ;;  %v689_v14 = vpack.c.bf16 %v234_v4, %v234_v4  ;;  %v690_v15 = vpack.c.bf16 %v235_v5, %v235_v5  ;;  %v777_v18 = vunpack.c.l.bf16 %v875_v6  ;;  %v778_v19 = vunpack.c.h.bf16 %v875_v6 }
  0x13   :  { %551 = vst.msk [vmem:[%s1411_s3 + $0x28] sm:$0xf] %vm540_vm0, %v685_v9  ;;  %552 = vst.msk [vmem:[%s1411_s3 + $0x2c] sm:$0xf] %vm540_vm0, %v686_v10  ;;  %v781_v20 = vunpack.c.l.bf16 %v876_v8  ;;  %v782_v21 = vunpack.c.h.bf16 %v876_v8  ;;  %v165_v22 = vmul.f32 %v773_v16, %v924_v1  ;;  %v166_v23 = vmul.f32 %v774_v17, %v924_v1  ;;  %v883_v17 = vld [vmem:[%s1408_s0 + $0x88] sm:$0xff]  }
  0x14   :  { %553 = vst.msk [vmem:[%s1411_s3 + $0x30] sm:$0xf] %vm540_vm0, %v687_v11  ;;  %554 = vst.msk [vmem:[%s1411_s3 + $0x34] sm:$0xf] %vm540_vm0, %v688_v12  ;;  %v785_v24 = vunpack.c.l.bf16 %v877_v13  ;;  %v786_v25 = vunpack.c.h.bf16 %v877_v13  ;;  %v167_v26 = vmul.f32 %v777_v18, %v924_v1  ;;  %v168_v27 = vmul.f32 %v778_v19, %v924_v1  ;;  %v882_v12 = vld [vmem:[%s1408_s0 + $0x80] sm:$0xff]   ;;  %v884_v18 = vld [vmem:[%s1408_s0 + $0x90] sm:$0xff]  }
  0x15   :  { %555 = vst.msk [vmem:[%s1411_s3 + $0x38] sm:$0xf] %vm540_vm0, %v689_v14  ;;  %556 = vst.msk [vmem:[%s1411_s3 + $0x3c] sm:$0xf] %vm540_vm0, %v690_v15  ;;  %v169_v28 = vmul.f32 %v781_v20, %v924_v1  ;;  %v170_v29 = vmul.f32 %v782_v21, %v924_v1  ;;  %v236_v30 = vadd.f32 %v938_v7, %v165_v22  ;;  %v789_v52 = vunpack.c.l.bf16 %v878_v38 }
  0x16   :  { %v237_v31 = vadd.f32 %v938_v7, %v166_v23  ;;  %v171_v32 = vmul.f32 %v785_v24, %v924_v1  ;;  %v172_v33 = vmul.f32 %v786_v25, %v924_v1  ;;  %v238_v34 = vadd.f32 %v938_v7, %v167_v26  ;;  %v885_v23 = vld [vmem:[%s1408_s0 + $0x98] sm:$0xff]  }
  0x17   :  { %v239_v35 = vadd.f32 %v938_v7, %v168_v27  ;;  %v240_v36 = vadd.f32 %v938_v7, %v169_v28  ;;  %v241_v37 = vadd.f32 %v938_v7, %v170_v29  ;;  %v691_v39 = vpack.c.bf16 %v236_v30, %v236_v30 }
  0x18   :  { %v692_v40 = vpack.c.bf16 %v237_v31, %v237_v31  ;;  %v242_v41 = vadd.f32 %v938_v7, %v171_v32  ;;  %v243_v42 = vadd.f32 %v938_v7, %v172_v33  ;;  %v693_v45 = vpack.c.bf16 %v238_v34, %v238_v34 }
  0x19   :  { %v694_v46 = vpack.c.bf16 %v239_v35, %v239_v35  ;;  %v695_v47 = vpack.c.bf16 %v240_v36, %v240_v36  ;;  %v696_v48 = vpack.c.bf16 %v241_v37, %v241_v37  ;;  %557 = vst.msk [vmem:[%s1411_s3 + $0x40] sm:$0xf] %vm540_vm0, %v691_v39  ;;  %v790_v53 = vunpack.c.h.bf16 %v878_v38 }
  0x1a   :  { %558 = vst.msk [vmem:[%s1411_s3 + $0x44] sm:$0xf] %vm540_vm0, %v692_v40  ;;  %v697_v50 = vpack.c.bf16 %v242_v41, %v242_v41  ;;  %v698_v51 = vpack.c.bf16 %v243_v42, %v243_v42  ;;  %559 = vst.msk [vmem:[%s1411_s3 + $0x48] sm:$0xf] %vm540_vm0, %v693_v45  ;;  %v793_v54 = vunpack.c.l.bf16 %v879_v43  ;;  %v794_v55 = vunpack.c.h.bf16 %v879_v43 }
  0x1b   :  { %560 = vst.msk [vmem:[%s1411_s3 + $0x4c] sm:$0xf] %vm540_vm0, %v694_v46  ;;  %561 = vst.msk [vmem:[%s1411_s3 + $0x50] sm:$0xf] %vm540_vm0, %v695_v47  ;;  %v797_v56 = vunpack.c.l.bf16 %v880_v44  ;;  %v798_v57 = vunpack.c.h.bf16 %v880_v44  ;;  %v173_v58 = vmul.f32 %v789_v52, %v924_v1  ;;  %v174_v59 = vmul.f32 %v790_v53, %v924_v1  ;;  %v887_v53 = vld [vmem:[%s1408_s0 + $0xa8] sm:$0xff]  }
  0x1c   :  { %562 = vst.msk [vmem:[%s1411_s3 + $0x54] sm:$0xf] %vm540_vm0, %v696_v48  ;;  %563 = vst.msk [vmem:[%s1411_s3 + $0x58] sm:$0xf] %vm540_vm0, %v697_v50  ;;  %v801_v60 = vunpack.c.l.bf16 %v881_v49  ;;  %v802_v61 = vunpack.c.h.bf16 %v881_v49  ;;  %v175_v62 = vmul.f32 %v793_v54, %v924_v1  ;;  %v176_v63 = vmul.f32 %v794_v55, %v924_v1  ;;  %v886_v48 = vld [vmem:[%s1408_s0 + $0xa0] sm:$0xff]   ;;  %v888_v54 = vld [vmem:[%s1408_s0 + $0xb0] sm:$0xff]  }
  0x1d   :  { %564 = vst.msk [vmem:[%s1411_s3 + $0x5c] sm:$0xf] %vm540_vm0, %v698_v51  ;;  %v177_v0 = vmul.f32 %v797_v56, %v924_v1  ;;  %v178_v2 = vmul.f32 %v798_v57, %v924_v1  ;;  %v244_v3 = vadd.f32 %v938_v7, %v173_v58  ;;  %v245_v4 = vadd.f32 %v938_v7, %v174_v59  ;;  %v889_v59 = vld [vmem:[%s1408_s0 + $0xb8] sm:$0xff]  }
  0x1e   :  { %v179_v5 = vmul.f32 %v801_v60, %v924_v1  ;;  %v180_v6 = vmul.f32 %v802_v61, %v924_v1  ;;  %v246_v8 = vadd.f32 %v938_v7, %v175_v62  ;;  %v247_v9 = vadd.f32 %v938_v7, %v176_v63 }
  0x1f   :  { %v248_v10 = vadd.f32 %v938_v7, %v177_v0  ;;  %v249_v11 = vadd.f32 %v938_v7, %v178_v2  ;;  %v699_v13 = vpack.c.bf16 %v244_v3, %v244_v3  ;;  %v700_v14 = vpack.c.bf16 %v245_v4, %v245_v4 }
  0x20   :  { %v250_v15 = vadd.f32 %v938_v7, %v179_v5  ;;  %v251_v16 = vadd.f32 %v938_v7, %v180_v6  ;;  %v701_v19 = vpack.c.bf16 %v246_v8, %v246_v8  ;;  %v702_v20 = vpack.c.bf16 %v247_v9, %v247_v9 }
  0x21   :  { %v703_v21 = vpack.c.bf16 %v248_v10, %v248_v10  ;;  %v704_v22 = vpack.c.bf16 %v249_v11, %v249_v11  ;;  %565 = vst.msk [vmem:[%s1411_s3 + $0x60] sm:$0xf] %vm540_vm0, %v699_v13  ;;  %566 = vst.msk [vmem:[%s1411_s3 + $0x64] sm:$0xf] %vm540_vm0, %v700_v14  ;;  %v805_v26 = vunpack.c.l.bf16 %v882_v12  ;;  %v806_v27 = vunpack.c.h.bf16 %v882_v12 }
  0x22   :  { %v705_v24 = vpack.c.bf16 %v250_v15, %v250_v15  ;;  %v706_v25 = vpack.c.bf16 %v251_v16, %v251_v16  ;;  %567 = vst.msk [vmem:[%s1411_s3 + $0x68] sm:$0xf] %vm540_vm0, %v701_v19  ;;  %568 = vst.msk [vmem:[%s1411_s3 + $0x6c] sm:$0xf] %vm540_vm0, %v702_v20  ;;  %v809_v28 = vunpack.c.l.bf16 %v883_v17  ;;  %v810_v29 = vunpack.c.h.bf16 %v883_v17 }
  0x23   :  { %569 = vst.msk [vmem:[%s1411_s3 + $0x70] sm:$0xf] %vm540_vm0, %v703_v21  ;;  %570 = vst.msk [vmem:[%s1411_s3 + $0x74] sm:$0xf] %vm540_vm0, %v704_v22  ;;  %v813_v30 = vunpack.c.l.bf16 %v884_v18  ;;  %v814_v31 = vunpack.c.h.bf16 %v884_v18  ;;  %v181_v32 = vmul.f32 %v805_v26, %v924_v1  ;;  %v182_v33 = vmul.f32 %v806_v27, %v924_v1  ;;  %v890_v22 = vld [vmem:[%s1408_s0 + $0xc0] sm:$0xff]   ;;  %v891_v27 = vld [vmem:[%s1408_s0 + $0xc8] sm:$0xff]  }
  0x24   :  { %571 = vst.msk [vmem:[%s1411_s3 + $0x78] sm:$0xf] %vm540_vm0, %v705_v24  ;;  %572 = vst.msk [vmem:[%s1411_s3 + $0x7c] sm:$0xf] %vm540_vm0, %v706_v25  ;;  %v817_v34 = vunpack.c.l.bf16 %v885_v23  ;;  %v818_v35 = vunpack.c.h.bf16 %v885_v23  ;;  %v183_v36 = vmul.f32 %v809_v28, %v924_v1  ;;  %v184_v37 = vmul.f32 %v810_v29, %v924_v1  ;;  %v892_v28 = vld [vmem:[%s1408_s0 + $0xd0] sm:$0xff]  }
  0x25   :  { %v185_v38 = vmul.f32 %v813_v30, %v924_v1  ;;  %v186_v39 = vmul.f32 %v814_v31, %v924_v1  ;;  %v252_v40 = vadd.f32 %v938_v7, %v181_v32  ;;  %v253_v41 = vadd.f32 %v938_v7, %v182_v33  ;;  %v893_v33 = vld [vmem:[%s1408_s0 + $0xd8] sm:$0xff]  }
  0x26   :  { %v187_v42 = vmul.f32 %v817_v34, %v924_v1  ;;  %v188_v43 = vmul.f32 %v818_v35, %v924_v1  ;;  %v254_v44 = vadd.f32 %v938_v7, %v183_v36  ;;  %v255_v45 = vadd.f32 %v938_v7, %v184_v37 }
  0x27   :  { %v256_v46 = vadd.f32 %v938_v7, %v185_v38  ;;  %v257_v47 = vadd.f32 %v938_v7, %v186_v39  ;;  %v707_v49 = vpack.c.bf16 %v252_v40, %v252_v40  ;;  %v708_v50 = vpack.c.bf16 %v253_v41, %v253_v41 }
  0x28   :  { %v258_v51 = vadd.f32 %v938_v7, %v187_v42  ;;  %v259_v52 = vadd.f32 %v938_v7, %v188_v43  ;;  %v709_v55 = vpack.c.bf16 %v254_v44, %v254_v44  ;;  %v710_v56 = vpack.c.bf16 %v255_v45, %v255_v45 }
  0x29   :  { %v711_v57 = vpack.c.bf16 %v256_v46, %v256_v46  ;;  %v712_v58 = vpack.c.bf16 %v257_v47, %v257_v47  ;;  %573 = vst.msk [vmem:[%s1411_s3 + $0x80] sm:$0xf] %vm540_vm0, %v707_v49  ;;  %574 = vst.msk [vmem:[%s1411_s3 + $0x84] sm:$0xf] %vm540_vm0, %v708_v50  ;;  %v821_v62 = vunpack.c.l.bf16 %v886_v48  ;;  %v822_v63 = vunpack.c.h.bf16 %v886_v48 }
  0x2a   :  { %v713_v60 = vpack.c.bf16 %v258_v51, %v258_v51  ;;  %v714_v61 = vpack.c.bf16 %v259_v52, %v259_v52  ;;  %575 = vst.msk [vmem:[%s1411_s3 + $0x88] sm:$0xf] %vm540_vm0, %v709_v55  ;;  %576 = vst.msk [vmem:[%s1411_s3 + $0x8c] sm:$0xf] %vm540_vm0, %v710_v56  ;;  %v825_v0 = vunpack.c.l.bf16 %v887_v53  ;;  %v826_v2 = vunpack.c.h.bf16 %v887_v53 }
  0x2b   :  { %577 = vst.msk [vmem:[%s1411_s3 + $0x90] sm:$0xf] %vm540_vm0, %v711_v57  ;;  %578 = vst.msk [vmem:[%s1411_s3 + $0x94] sm:$0xf] %vm540_vm0, %v712_v58  ;;  %v829_v3 = vunpack.c.l.bf16 %v888_v54  ;;  %v830_v4 = vunpack.c.h.bf16 %v888_v54  ;;  %v189_v5 = vmul.f32 %v821_v62, %v924_v1  ;;  %v190_v6 = vmul.f32 %v822_v63, %v924_v1  ;;  %v894_v58 = vld [vmem:[%s1408_s0 + $0xe0] sm:$0xff]   ;;  %v895_v63 = vld [vmem:[%s1408_s0 + $0xe8] sm:$0xff]  }
  0x2c   :  { %579 = vst.msk [vmem:[%s1411_s3 + $0x98] sm:$0xf] %vm540_vm0, %v713_v60  ;;  %580 = vst.msk [vmem:[%s1411_s3 + $0x9c] sm:$0xf] %vm540_vm0, %v714_v61  ;;  %v833_v8 = vunpack.c.l.bf16 %v889_v59  ;;  %v834_v9 = vunpack.c.h.bf16 %v889_v59  ;;  %v191_v10 = vmul.f32 %v825_v0, %v924_v1  ;;  %v192_v11 = vmul.f32 %v826_v2, %v924_v1  ;;  %v896_v0 = vld [vmem:[%s1408_s0 + $0xf0] sm:$0xff]  }
  0x2d   :  { %v193_v12 = vmul.f32 %v829_v3, %v924_v1  ;;  %v194_v13 = vmul.f32 %v830_v4, %v924_v1  ;;  %v260_v14 = vadd.f32 %v938_v7, %v189_v5  ;;  %v261_v15 = vadd.f32 %v938_v7, %v190_v6  ;;  %v897_v6 = vld [vmem:[%s1408_s0 + $0xf8] sm:$0xff]  }
  0x2e   :  { %v195_v16 = vmul.f32 %v833_v8, %v924_v1  ;;  %v196_v17 = vmul.f32 %v834_v9, %v924_v1  ;;  %v262_v18 = vadd.f32 %v938_v7, %v191_v10  ;;  %v263_v19 = vadd.f32 %v938_v7, %v192_v11 }
  0x2f   :  { %v264_v20 = vadd.f32 %v938_v7, %v193_v12  ;;  %v265_v21 = vadd.f32 %v938_v7, %v194_v13  ;;  %v715_v23 = vpack.c.bf16 %v260_v14, %v260_v14  ;;  %v716_v24 = vpack.c.bf16 %v261_v15, %v261_v15 }
  0x30   :  { %v266_v25 = vadd.f32 %v938_v7, %v195_v16  ;;  %v267_v26 = vadd.f32 %v938_v7, %v196_v17  ;;  %v717_v29 = vpack.c.bf16 %v262_v18, %v262_v18  ;;  %v718_v30 = vpack.c.bf16 %v263_v19, %v263_v19 }
  0x31   :  { %v719_v31 = vpack.c.bf16 %v264_v20, %v264_v20  ;;  %v720_v32 = vpack.c.bf16 %v265_v21, %v265_v21  ;;  %581 = vst.msk [vmem:[%s1411_s3 + $0xa0] sm:$0xf] %vm540_vm0, %v715_v23  ;;  %582 = vst.msk [vmem:[%s1411_s3 + $0xa4] sm:$0xf] %vm540_vm0, %v716_v24  ;;  %v837_v36 = vunpack.c.l.bf16 %v890_v22  ;;  %v838_v37 = vunpack.c.h.bf16 %v890_v22 }
  0x32   :  { %v721_v34 = vpack.c.bf16 %v266_v25, %v266_v25  ;;  %v722_v35 = vpack.c.bf16 %v267_v26, %v267_v26  ;;  %583 = vst.msk [vmem:[%s1411_s3 + $0xa8] sm:$0xf] %vm540_vm0, %v717_v29  ;;  %584 = vst.msk [vmem:[%s1411_s3 + $0xac] sm:$0xf] %vm540_vm0, %v718_v30  ;;  %v841_v38 = vunpack.c.l.bf16 %v891_v27  ;;  %v842_v39 = vunpack.c.h.bf16 %v891_v27 }
  0x33   :  { %585 = vst.msk [vmem:[%s1411_s3 + $0xb0] sm:$0xf] %vm540_vm0, %v719_v31  ;;  %586 = vst.msk [vmem:[%s1411_s3 + $0xb4] sm:$0xf] %vm540_vm0, %v720_v32  ;;  %v845_v40 = vunpack.c.l.bf16 %v892_v28  ;;  %v846_v41 = vunpack.c.h.bf16 %v892_v28  ;;  %v197_v42 = vmul.f32 %v837_v36, %v924_v1  ;;  %v198_v43 = vmul.f32 %v838_v37, %v924_v1 }
  0x34   :  { %587 = vst.msk [vmem:[%s1411_s3 + $0xb8] sm:$0xf] %vm540_vm0, %v721_v34  ;;  %588 = vst.msk [vmem:[%s1411_s3 + $0xbc] sm:$0xf] %vm540_vm0, %v722_v35  ;;  %v849_v44 = vunpack.c.l.bf16 %v893_v33  ;;  %v850_v45 = vunpack.c.h.bf16 %v893_v33  ;;  %v199_v46 = vmul.f32 %v841_v38, %v924_v1  ;;  %v200_v47 = vmul.f32 %v842_v39, %v924_v1 }
  0x35   :  { %v201_v48 = vmul.f32 %v845_v40, %v924_v1  ;;  %v202_v49 = vmul.f32 %v846_v41, %v924_v1  ;;  %v268_v50 = vadd.f32 %v938_v7, %v197_v42  ;;  %v269_v51 = vadd.f32 %v938_v7, %v198_v43 }
  0x36   :  { %v203_v52 = vmul.f32 %v849_v44, %v924_v1  ;;  %v204_v53 = vmul.f32 %v850_v45, %v924_v1  ;;  %v270_v54 = vadd.f32 %v938_v7, %v199_v46  ;;  %v271_v55 = vadd.f32 %v938_v7, %v200_v47 }
  0x37   :  { %v272_v56 = vadd.f32 %v938_v7, %v201_v48  ;;  %v273_v57 = vadd.f32 %v938_v7, %v202_v49  ;;  %v723_v59 = vpack.c.bf16 %v268_v50, %v268_v50  ;;  %v724_v60 = vpack.c.bf16 %v269_v51, %v269_v51 }
  0x38   :  { %v274_v61 = vadd.f32 %v938_v7, %v203_v52  ;;  %v275_v62 = vadd.f32 %v938_v7, %v204_v53  ;;  %v725_v2 = vpack.c.bf16 %v270_v54, %v270_v54  ;;  %v726_v3 = vpack.c.bf16 %v271_v55, %v271_v55 }
  0x39   :  { %v727_v4 = vpack.c.bf16 %v272_v56, %v272_v56  ;;  %v728_v5 = vpack.c.bf16 %v273_v57, %v273_v57  ;;  %589 = vst.msk [vmem:[%s1411_s3 + $0xc0] sm:$0xf] %vm540_vm0, %v723_v59  ;;  %590 = vst.msk [vmem:[%s1411_s3 + $0xc4] sm:$0xf] %vm540_vm0, %v724_v60  ;;  %v853_v10 = vunpack.c.l.bf16 %v894_v58  ;;  %v854_v11 = vunpack.c.h.bf16 %v894_v58 }
  0x3a   :  { %v729_v8 = vpack.c.bf16 %v274_v61, %v274_v61  ;;  %v730_v9 = vpack.c.bf16 %v275_v62, %v275_v62  ;;  %591 = vst.msk [vmem:[%s1411_s3 + $0xc8] sm:$0xf] %vm540_vm0, %v725_v2  ;;  %592 = vst.msk [vmem:[%s1411_s3 + $0xcc] sm:$0xf] %vm540_vm0, %v726_v3  ;;  %v857_v12 = vunpack.c.l.bf16 %v895_v63  ;;  %v858_v13 = vunpack.c.h.bf16 %v895_v63 }
  0x3b   :  { %593 = vst.msk [vmem:[%s1411_s3 + $0xd0] sm:$0xf] %vm540_vm0, %v727_v4  ;;  %594 = vst.msk [vmem:[%s1411_s3 + $0xd4] sm:$0xf] %vm540_vm0, %v728_v5  ;;  %v861_v14 = vunpack.c.l.bf16 %v896_v0  ;;  %v862_v15 = vunpack.c.h.bf16 %v896_v0  ;;  %v205_v16 = vmul.f32 %v853_v10, %v924_v1  ;;  %v206_v17 = vmul.f32 %v854_v11, %v924_v1 }
  0x3c   :  { %595 = vst.msk [vmem:[%s1411_s3 + $0xd8] sm:$0xf] %vm540_vm0, %v729_v8  ;;  %596 = vst.msk [vmem:[%s1411_s3 + $0xdc] sm:$0xf] %vm540_vm0, %v730_v9  ;;  %v865_v18 = vunpack.c.l.bf16 %v897_v6  ;;  %v866_v19 = vunpack.c.h.bf16 %v897_v6  ;;  %v207_v20 = vmul.f32 %v857_v12, %v924_v1  ;;  %v208_v21 = vmul.f32 %v858_v13, %v924_v1 }
  0x3d   :  { %v209_v22 = vmul.f32 %v861_v14, %v924_v1  ;;  %v210_v23 = vmul.f32 %v862_v15, %v924_v1  ;;  %v276_v24 = vadd.f32 %v938_v7, %v205_v16  ;;  %v277_v25 = vadd.f32 %v938_v7, %v206_v17 }
  0x3e   :  { %v211_v26 = vmul.f32 %v865_v18, %v924_v1  ;;  %v212_v27 = vmul.f32 %v866_v19, %v924_v1  ;;  %v278_v28 = vadd.f32 %v938_v7, %v207_v20  ;;  %v279_v29 = vadd.f32 %v938_v7, %v208_v21 }
  0x3f   :  { %v280_v30 = vadd.f32 %v938_v7, %v209_v22  ;;  %v281_v31 = vadd.f32 %v938_v7, %v210_v23  ;;  %v731_v32 = vpack.c.bf16 %v276_v24, %v276_v24  ;;  %v732_v33 = vpack.c.bf16 %v277_v25, %v277_v25 }
  0x40   :  { %v282_v34 = vadd.f32 %v938_v7, %v211_v26  ;;  %v283_v35 = vadd.f32 %v938_v7, %v212_v27  ;;  %v733_v36 = vpack.c.bf16 %v278_v28, %v278_v28  ;;  %v734_v37 = vpack.c.bf16 %v279_v29, %v279_v29 }
  0x41   :  { %v735_v38 = vpack.c.bf16 %v280_v30, %v280_v30  ;;  %v736_v39 = vpack.c.bf16 %v281_v31, %v281_v31  ;;  %597 = vst.msk [vmem:[%s1411_s3 + $0xe0] sm:$0xf] %vm540_vm0, %v731_v32  ;;  %598 = vst.msk [vmem:[%s1411_s3 + $0xe4] sm:$0xf] %vm540_vm0, %v732_v33 }
  0x42   :  { %v737_v1 = vpack.c.bf16 %v282_v34, %v282_v34  ;;  %v738_v40 = vpack.c.bf16 %v283_v35, %v283_v35  ;;  %599 = vst.msk [vmem:[%s1411_s3 + $0xe8] sm:$0xf] %vm540_vm0, %v733_v36  ;;  %600 = vst.msk [vmem:[%s1411_s3 + $0xec] sm:$0xf] %vm540_vm0, %v734_v37 }
  0x43   :  { %601 = vst.msk [vmem:[%s1411_s3 + $0xf0] sm:$0xf] %vm540_vm0, %v735_v38  ;;  %602 = vst.msk [vmem:[%s1411_s3 + $0xf4] sm:$0xf] %vm540_vm0, %v736_v39 }
  0x44   :  { %603 = vst.msk [vmem:[%s1411_s3 + $0xf8] sm:$0xf] %vm540_vm0, %v737_v1  ;;  %604 = vst.msk [vmem:[%s1411_s3 + $0xfc] sm:$0xf] %vm540_vm0, %v738_v40 }

// kernel: decoder_forward.15
= control target key start
LH: loop header
LB: loop body
LE: loop exit
PB: predicated region body
PF: predicated region fallthrough
CT: control target
= control target key end

     0   :  { %s3282_s12 = smov 0   ;;  %s4146_s0 = inlined_call_operand.vmem [shape: bf16[8192,16], index: 0, kind: input, shape index: {}]   ;;  %s4147_s1 = inlined_call_operand.vmem [shape: bf16[16,12], index: 1, kind: input, shape index: {}]   ;;  %s4148_s2 = inlined_call_operand.vmem [shape: f32[1,12], index: 2, kind: input, shape index: {}]   ;;  %s4149_s3 = inlined_call_operand.vmem [shape: f32[8192,12], index: 3, kind: output, shape index: {}]  }
   0x1 LB: > { %s2329_s13 = sadd.s32 4294967295, %s3260_s12   ;;  %p2333_p0 = scmp.ge.s32.totalorder %s3260_s12, 1  ;;  %s3260_s12 = sphi %s3282_s12, %s13_s12  }
   0x2   : > { %p138_p1 = scmp.lt.s32.totalorder %s3260_s12, 9 }
   0x4   : > { %p139_p2 = pnand %p2333_p0, %p138_p1 }
   0x6   : > { %142 = sbr.rel (%p139_p2) target bundleno = 510 (0x1fe), region = 32 }
   0xd   : > { %v2675_v0 = vld [vmem:[%s4147_s1] sm:$0xff]   ;;  %s2334_s16 = sshll.u32 %s2329_s13, 7  ;;  %vm638_vm0 = vcmask 130048   ;;  %vm2144_vm1 = vcmask 97280  }
   0xe   : > { %p163_p3 = scmp.lt.s32.totalorder %s2334_s16, 1023  ;;  %2535 = vmatprep.subr.bf16.mxu0 %v2675_v0  ;;  %2665 = vmatprep.subr.bf16.mxu1 %v2675_v0 }
   0xf   : > { %2536 = vmatpush3.bf16.msra.mxu0 %v2675_v0  ;;  %2666 = vmatpush3.bf16.msra.mxu1 %v2675_v0 }
  0x10   : > { %s4183_s16 = smov (!%p163_p3, %s2334_s16), 1023 }
  0x11   : > { %s2335_s17 = sshll.u32 %s4183_s16, 2  ;;  %s2337_s23 = sshll.u32 %s4183_s16, 3 }
  0x12   : > { %s3299_s20 = scalar_lea.vmem %s4146_s0, %s2335_s17  ;;  %s3470_s26 = scalar_lea.vmem %s4149_s3, %s2337_s23 }
  0x13   : > { %v2676_v1 = vld [vmem:[%s3299_s20] sm:$0xff]   ;;  %v2678_v3 = vld [vmem:[%s3299_s20 + $0x8] sm:$0xff]   ;;  %v2680_v5 = vld [vmem:[%s3299_s20 + $0x10] sm:$0xff]  }
  0x14   : > { %v2677_v2 = vld [vmem:[%s3299_s20 + $0x100] sm:$0xff]   ;;  %2537 = vmatprep.mubr.msk.bf16.mxu0 %vm638_vm0, %v2676_v1  ;;  %v2679_v4 = vld [vmem:[%s3299_s20 + $0x108] sm:$0xff]   ;;  %v2681_v6 = vld [vmem:[%s3299_s20 + $0x110] sm:$0xff]  }
  0x15   : > { %2601 = vmatprep.mubr.msk.bf16.mxu1 %vm638_vm0, %v2677_v2  ;;  %2538 = vmatmul.mubr.msk.bf16.vlgmr.msra.gmra.mrb[0].mxu0 %vm638_vm0, %v2678_v3  ;;  %v2682_v7 = vld [vmem:[%s3299_s20 + $0x18] sm:$0xff]   ;;  %v2684_v9 = vld [vmem:[%s3299_s20 + $0x20] sm:$0xff]   ;;  %v2686_v11 = vld [vmem:[%s3299_s20 + $0x28] sm:$0xff]  }
  0x16   : > { %2602 = vmatmul.mubr.msk.bf16.vlgmr.msra.gmra.mrb[0].mxu1 %vm638_vm0, %v2679_v4  ;;  %2541 = vmatprep.mubr.msk.bf16.mxu0 %vm638_vm0, %v2680_v5  ;;  %v2683_v8 = vld [vmem:[%s3299_s20 + $0x118] sm:$0xff]   ;;  %v2685_v10 = vld [vmem:[%s3299_s20 + $0x120] sm:$0xff]   ;;  %v2687_v12 = vld [vmem:[%s3299_s20 + $0x128] sm:$0xff]  }
  0x17   : > { %2605 = vmatprep.mubr.msk.bf16.mxu1 %vm638_vm0, %v2681_v6  ;;  %v2688_v13 = vld [vmem:[%s3299_s20 + $0x30] sm:$0xff]   ;;  %v2690_v15 = vld [vmem:[%s3299_s20 + $0x38] sm:$0xff]   ;;  %v2692_v17 = vld [vmem:[%s3299_s20 + $0x40] sm:$0xff]  }
  0x18   : > { %v2689_v14 = vld [vmem:[%s3299_s20 + $0x130] sm:$0xff]   ;;  %v2691_v16 = vld [vmem:[%s3299_s20 + $0x138] sm:$0xff]   ;;  %v2693_v18 = vld [vmem:[%s3299_s20 + $0x140] sm:$0xff]  }
  0x19   : > { %v2694_v19 = vld [vmem:[%s3299_s20 + $0x48] sm:$0xff]   ;;  %v2696_v21 = vld [vmem:[%s3299_s20 + $0x50] sm:$0xff]   ;;  %v2698_v23 = vld [vmem:[%s3299_s20 + $0x58] sm:$0xff]  }
  0x1a   : > { %v2695_v20 = vld [vmem:[%s3299_s20 + $0x148] sm:$0xff]   ;;  %v2697_v22 = vld [vmem:[%s3299_s20 + $0x150] sm:$0xff]   ;;  %v2699_v24 = vld [vmem:[%s3299_s20 + $0x158] sm:$0xff]  }
  0x1b   : > { %v2700_v25 = vld [vmem:[%s3299_s20 + $0x60] sm:$0xff]   ;;  %v2702_v27 = vld [vmem:[%s3299_s20 + $0x68] sm:$0xff]   ;;  %v2704_v29 = vld [vmem:[%s3299_s20 + $0x70] sm:$0xff]  }
  0x1c   : > { %v2701_v26 = vld [vmem:[%s3299_s20 + $0x160] sm:$0xff]   ;;  %v2703_v28 = vld [vmem:[%s3299_s20 + $0x168] sm:$0xff]   ;;  %v2705_v30 = vld [vmem:[%s3299_s20 + $0x170] sm:$0xff]  }
  0x1d   : > { %2542 = vmatmul.mubr.msk.bf16.gmra.mrb[4].mxu0 %vm638_vm0, %v2682_v7  ;;  %v2706_v31 = vld [vmem:[%s3299_s20 + $0x78] sm:$0xff]   ;;  %v2708_v33 = vld [vmem:[%s3299_s20 + $0x80] sm:$0xff]   ;;  %v2710_v35 = vld [vmem:[%s3299_s20 + $0x88] sm:$0xff]  }
  0x1e   : > { %2606 = vmatmul.mubr.msk.bf16.gmra.mrb[4].mxu1 %vm638_vm0, %v2683_v8  ;;  %2545 = vmatprep.mubr.msk.bf16.mxu0 %vm638_vm0, %v2684_v9  ;;  %v2707_v32 = vld [vmem:[%s3299_s20 + $0x178] sm:$0xff]   ;;  %v2709_v34 = vld [vmem:[%s3299_s20 + $0x180] sm:$0xff]   ;;  %v2711_v36 = vld [vmem:[%s3299_s20 + $0x188] sm:$0xff]  }
  0x1f   : > { %2609 = vmatprep.mubr.msk.bf16.mxu1 %vm638_vm0, %v2685_v10  ;;  %v2712_v37 = vld [vmem:[%s3299_s20 + $0x90] sm:$0xff]   ;;  %v2714_v39 = vld [vmem:[%s3299_s20 + $0x98] sm:$0xff]   ;;  %v2716_v41 = vld [vmem:[%s3299_s20 + $0xa0] sm:$0xff]  }
  0x20   : > { %v2713_v38 = vld [vmem:[%s3299_s20 + $0x190] sm:$0xff]   ;;  %v2715_v40 = vld [vmem:[%s3299_s20 + $0x198] sm:$0xff]   ;;  %v2717_v42 = vld [vmem:[%s3299_s20 + $0x1a0] sm:$0xff]  }
  0x21   : > { %v2718_v43 = vld [vmem:[%s3299_s20 + $0xa8] sm:$0xff]   ;;  %v2720_v45 = vld [vmem:[%s3299_s20 + $0xb0] sm:$0xff]   ;;  %v2722_v47 = vld [vmem:[%s3299_s20 + $0xb8] sm:$0xff]  }
  0x22   : > { %v2719_v44 = vld [vmem:[%s3299_s20 + $0x1a8] sm:$0xff]   ;;  %v2721_v46 = vld [vmem:[%s3299_s20 + $0x1b0] sm:$0xff]   ;;  %v2723_v48 = vld [vmem:[%s3299_s20 + $0x1b8] sm:$0xff]  }
  0x23   : > { %v2724_v49 = vld [vmem:[%s3299_s20 + $0xc0] sm:$0xff]   ;;  %v2726_v51 = vld [vmem:[%s3299_s20 + $0xc8] sm:$0xff]   ;;  %v2728_v53 = vld [vmem:[%s3299_s20 + $0xd0] sm:$0xff]  }
  0x24   : > { %v2725_v50 = vld [vmem:[%s3299_s20 + $0x1c0] sm:$0xff]   ;;  %v2727_v52 = vld [vmem:[%s3299_s20 + $0x1c8] sm:$0xff]   ;;  %v2729_v54 = vld [vmem:[%s3299_s20 + $0x1d0] sm:$0xff]  }
  0x25   : > { %2546 = vmatmul.mubr.msk.bf16.gmra.mrb[8].mxu0 %vm638_vm0, %v2686_v11  ;;  %v2730_v55 = vld [vmem:[%s3299_s20 + $0xd8] sm:$0xff]   ;;  %v2732_v57 = vld [vmem:[%s3299_s20 + $0xe0] sm:$0xff]   ;;  %v2734_v59 = vld [vmem:[%s3299_s20 + $0xe8] sm:$0xff]  }
  0x26   : > { %2610 = vmatmul.mubr.msk.bf16.gmra.mrb[8].mxu1 %vm638_vm0, %v2687_v12  ;;  %2549 = vmatprep.mubr.msk.bf16.mxu0 %vm638_vm0, %v2688_v13  ;;  %v2731_v56 = vld [vmem:[%s3299_s20 + $0x1d8] sm:$0xff]   ;;  %v2733_v58 = vld [vmem:[%s3299_s20 + $0x1e0] sm:$0xff]   ;;  %v2735_v60 = vld [vmem:[%s3299_s20 + $0x1e8] sm:$0xff]  }
  0x27   : > { %2613 = vmatprep.mubr.msk.bf16.mxu1 %vm638_vm0, %v2689_v14  ;;  %v2736_v61 = vld [vmem:[%s3299_s20 + $0xf0] sm:$0xff]   ;;  %v2738_v63 = vld [vmem:[%s3299_s20 + $0xf8] sm:$0xff]   ;;  %v3432_v1 = vld [vmem:[%s4148_s2] ss:$0 sm:$0xff] }
  0x28   : > { %v2737_v62 = vld [vmem:[%s3299_s20 + $0x1f0] sm:$0xff]   ;;  %v2739_v0 = vld [vmem:[%s3299_s20 + $0x1f8] sm:$0xff]  }
  0x2d   : > { %2550 = vmatmul.mubr.msk.bf16.gmra.mrb[12].mxu0 %vm638_vm0, %v2690_v15 }
  0x2e   : > { %2614 = vmatmul.mubr.msk.bf16.gmra.mrb[12].mxu1 %vm638_vm0, %v2691_v16  ;;  %2553 = vmatprep.mubr.msk.bf16.mxu0 %vm638_vm0, %v2692_v17 }
  0x2f   : > { %2617 = vmatprep.mubr.msk.bf16.mxu1 %vm638_vm0, %v2693_v18 }
  0x35   : > { %2554 = vmatmul.mubr.msk.bf16.gmra.mrb[16].mxu0 %vm638_vm0, %v2694_v19 }
  0x36   : > { %2618 = vmatmul.mubr.msk.bf16.gmra.mrb[16].mxu1 %vm638_vm0, %v2695_v20  ;;  %2557 = vmatprep.mubr.msk.bf16.mxu0 %vm638_vm0, %v2696_v21 }
  0x37   : > { %2621 = vmatprep.mubr.msk.bf16.mxu1 %vm638_vm0, %v2697_v22 }
  0x3d   : > { %2558 = vmatmul.mubr.msk.bf16.gmra.mrb[20].mxu0 %vm638_vm0, %v2698_v23 }
  0x3e   : > { %2622 = vmatmul.mubr.msk.bf16.gmra.mrb[20].mxu1 %vm638_vm0, %v2699_v24  ;;  %2561 = vmatprep.mubr.msk.bf16.mxu0 %vm638_vm0, %v2700_v25 }
  0x3f   : > { %2625 = vmatprep.mubr.msk.bf16.mxu1 %vm638_vm0, %v2701_v26 }
  0x45   : > { %2562 = vmatmul.mubr.msk.bf16.gmra.mrb[24].mxu0 %vm638_vm0, %v2702_v27 }
  0x46   : > { %2626 = vmatmul.mubr.msk.bf16.gmra.mrb[24].mxu1 %vm638_vm0, %v2703_v28  ;;  %2565 = vmatprep.mubr.msk.bf16.mxu0 %vm638_vm0, %v2704_v29 }
  0x47   : > { %2629 = vmatprep.mubr.msk.bf16.mxu1 %vm638_vm0, %v2705_v30 }
  0x4d   : > { %2566 = vmatmul.mubr.msk.bf16.gmra.mrb[28].mxu0 %vm638_vm0, %v2706_v31 }
  0x4e   : > { %2630 = vmatmul.mubr.msk.bf16.gmra.mrb[28].mxu1 %vm638_vm0, %v2707_v32  ;;  %2569 = vmatprep.mubr.msk.bf16.mxu0 %vm638_vm0, %v2708_v33 }
  0x4f   : > { %2633 = vmatprep.mubr.msk.bf16.mxu1 %vm638_vm0, %v2709_v34 }
  0x55   : > { %2570 = vmatmul.mubr.msk.bf16.gmra.mrb[32].mxu0 %vm638_vm0, %v2710_v35 }
  0x56   : > { %2634 = vmatmul.mubr.msk.bf16.gmra.mrb[32].mxu1 %vm638_vm0, %v2711_v36  ;;  %2573 = vmatprep.mubr.msk.bf16.mxu0 %vm638_vm0, %v2712_v37 }
  0x57   : > { %2637 = vmatprep.mubr.msk.bf16.mxu1 %vm638_vm0, %v2713_v38 }
  0x5d   : > { %2574 = vmatmul.mubr.msk.bf16.gmra.mrb[36].mxu0 %vm638_vm0, %v2714_v39 }
  0x5e   : > { %2638 = vmatmul.mubr.msk.bf16.gmra.mrb[36].mxu1 %vm638_vm0, %v2715_v40  ;;  %2577 = vmatprep.mubr.msk.bf16.mxu0 %vm638_vm0, %v2716_v41 }
  0x5f   : > { %2641 = vmatprep.mubr.msk.bf16.mxu1 %vm638_vm0, %v2717_v42 }
  0x65   : > { %2578 = vmatmul.mubr.msk.bf16.gmra.mrb[40].mxu0 %vm638_vm0, %v2718_v43 }
  0x66   : > { %2642 = vmatmul.mubr.msk.bf16.gmra.mrb[40].mxu1 %vm638_vm0, %v2719_v44  ;;  %2581 = vmatprep.mubr.msk.bf16.mxu0 %vm638_vm0, %v2720_v45 }
  0x67   : > { %2645 = vmatprep.mubr.msk.bf16.mxu1 %vm638_vm0, %v2721_v46 }
  0x6d   : > { %2582 = vmatmul.mubr.msk.bf16.gmra.mrb[44].mxu0 %vm638_vm0, %v2722_v47 }
  0x6e   : > { %2646 = vmatmul.mubr.msk.bf16.gmra.mrb[44].mxu1 %vm638_vm0, %v2723_v48  ;;  %2585 = vmatprep.mubr.msk.bf16.mxu0 %vm638_vm0, %v2724_v49 }
  0x6f   : > { %2649 = vmatprep.mubr.msk.bf16.mxu1 %vm638_vm0, %v2725_v50 }
  0x75   : > { %2586 = vmatmul.mubr.msk.bf16.gmra.mrb[48].mxu0 %vm638_vm0, %v2726_v51 }
  0x76   : > { %2650 = vmatmul.mubr.msk.bf16.gmra.mrb[48].mxu1 %vm638_vm0, %v2727_v52  ;;  %2589 = vmatprep.mubr.msk.bf16.mxu0 %vm638_vm0, %v2728_v53 }
  0x77   : > { %2653 = vmatprep.mubr.msk.bf16.mxu1 %vm638_vm0, %v2729_v54 }
  0x7d   : > { %2590 = vmatmul.mubr.msk.bf16.gmra.mrb[52].mxu0 %vm638_vm0, %v2730_v55 }
  0x7e   : > { %2654 = vmatmul.mubr.msk.bf16.gmra.mrb[52].mxu1 %vm638_vm0, %v2731_v56  ;;  %2593 = vmatprep.mubr.msk.bf16.mxu0 %vm638_vm0, %v2732_v57 }
  0x7f   : > { %2657 = vmatprep.mubr.msk.bf16.mxu1 %vm638_vm0, %v2733_v58 }
  0x85   : > { %2594 = vmatmul.mubr.msk.bf16.gmra.mrb[56].mxu0 %vm638_vm0, %v2734_v59 }
  0x86   : > { %2658 = vmatmul.mubr.msk.bf16.gmra.mrb[56].mxu1 %vm638_vm0, %v2735_v60  ;;  %2597 = vmatprep.mubr.msk.bf16.mxu0 %vm638_vm0, %v2736_v61 }
  0x87   : > { %2661 = vmatprep.mubr.msk.bf16.mxu1 %vm638_vm0, %v2737_v62 }
  0x8d   : > { %2598 = vmatmul.mubr.msk.bf16.gmra.mrb[60].mxu0 %vm638_vm0, %v2738_v63 }
  0x8e   : > { %2662 = vmatmul.mubr.msk.bf16.gmra.mrb[60].mxu1 %vm638_vm0, %v2739_v0 }
  0xe8   : > { %v2539_v2 = vpop.f32.mrb[0].mxu0 }
  0xe9   : > { %v874_v3 = vadd.f32 %v2539_v2, %v3432_v1  ;;  %v2603_v4 = vpop.f32.mrb[0].mxu1  ;;  %v865_v5 = vpop.f32.mrb[1].mxu0 }
  0xea   : > { %v1130_v6 = vadd.f32 %v2603_v4, %v3432_v1  ;;  %v866_v7 = vadd.f32 %v3432_v1, %v865_v5  ;;  %v1121_v8 = vpop.f32.mrb[1].mxu1  ;;  %v2540_v9 = vpop.f32.mrb[2].mxu0 }
  0xeb   : > { %v1378_v10 = vsub.f32 0.0, %v874_v3  ;;  %v1122_v11 = vadd.f32 %v3432_v1, %v1121_v8  ;;  %v877_v12 = vadd.f32 %v2540_v9, %v3432_v1  ;;  %v2604_v13 = vpop.f32.mrb[2].mxu1  ;;  %v868_v14 = vpop.f32.mrb[3].mxu0 }
  0xec   : > { %v1442_v15 = vsub.f32 0.0, %v1130_v6  ;;  %v1376_v16 = vsub.f32 0.0, %v866_v7  ;;  %v1133_v17 = vadd.f32 %v2604_v13, %v3432_v1  ;;  %v869_v18 = vadd.f32 %v3432_v1, %v868_v14  ;;  %v1124_v19 = vpop.f32.mrb[3].mxu1 }
  0xed   : > { %v1508_v20 = vmul.f32 1.442695, %v1378_v10  ;;  %v1440_v21 = vsub.f32 0.0, %v1122_v11  ;;  %v1379_v22 = vsub.f32 0.0, %v877_v12  ;;  %v1125_v23 = vadd.f32 %v3432_v1, %v1124_v19 }
  0xee   : > { %v1636_v24 = vmul.f32 1.442695, %v1442_v15  ;;  %v1504_v25 = vmul.f32 1.442695, %v1376_v16  ;;  %v1443_v26 = vsub.f32 0.0, %v1133_v17  ;;  %v1377_v27 = vsub.f32 0.0, %v869_v18 }
  0xef   : > { %2740 = vpow2.f32 %v1508_v20  ;;  %v1632_v28 = vmul.f32 1.442695, %v1440_v21  ;;  %v1510_v29 = vmul.f32 1.442695, %v1379_v22  ;;  %v1441_v30 = vsub.f32 0.0, %v1125_v23 }
  0xf0   : > { %2742 = vpow2.f32 %v1636_v24  ;;  %v1638_v31 = vmul.f32 1.442695, %v1443_v26  ;;  %v2543_v32 = vpop.f32.mrb[4].mxu0  ;;  %v1506_v33 = vmul.f32 1.442695, %v1377_v27 }
  0xf1   : > { %2744 = vpow2.f32 %v1504_v25  ;;  %v890_v34 = vadd.f32 %v2543_v32, %v3432_v1  ;;  %v2607_v35 = vpop.f32.mrb[4].mxu1  ;;  %v881_v36 = vpop.f32.mrb[5].mxu0  ;;  %v1634_v37 = vmul.f32 1.442695, %v1441_v30 }
  0xf2   : > { %2746 = vpow2.f32 %v1632_v28  ;;  %v1146_v38 = vadd.f32 %v2607_v35, %v3432_v1  ;;  %v882_v39 = vadd.f32 %v3432_v1, %v881_v36  ;;  %v1137_v40 = vpop.f32.mrb[5].mxu1  ;;  %v2544_v41 = vpop.f32.mrb[6].mxu0 }
  0xf3   : > { %2748 = vpow2.f32 %v1510_v29  ;;  %v1382_v42 = vsub.f32 0.0, %v890_v34  ;;  %v1138_v43 = vadd.f32 %v3432_v1, %v1137_v40  ;;  %v893_v44 = vadd.f32 %v2544_v41, %v3432_v1  ;;  %v2608_v45 = vpop.f32.mrb[6].mxu1  ;;  %v884_v46 = vpop.f32.mrb[7].mxu0 }
  0xf4   : > { %2750 = vpow2.f32 %v1638_v31  ;;  %v1446_v47 = vsub.f32 0.0, %v1146_v38  ;;  %v1380_v48 = vsub.f32 0.0, %v882_v39  ;;  %v1140_v49 = vpop.f32.mrb[7].mxu1  ;;  %v1149_v59 = vadd.f32 %v2608_v45, %v3432_v1 }
  0xf5   : > { %2752 = vpow2.f32 %v1506_v33  ;;  %v1516_v50 = vmul.f32 1.442695, %v1382_v42  ;;  %v1444_v51 = vsub.f32 0.0, %v1138_v43  ;;  %v1383_v52 = vsub.f32 0.0, %v893_v44 }
  0xf6   : > { %2754 = vpow2.f32 %v1634_v37  ;;  %v1644_v53 = vmul.f32 1.442695, %v1446_v47  ;;  %v1512_v54 = vmul.f32 1.442695, %v1380_v48  ;;  %v885_v5 = vadd.f32 %v3432_v1, %v884_v46 }
  0xf7   : > { %2756 = vpow2.f32 %v1516_v50  ;;  %v1640_v55 = vmul.f32 1.442695, %v1444_v51  ;;  %v1518_v56 = vmul.f32 1.442695, %v1383_v52  ;;  %v1447_v13 = vsub.f32 0.0, %v1149_v59 }
  0xf8   : > { %2758 = vpow2.f32 %v1644_v53  ;;  %v2547_v57 = vpop.f32.mrb[8].mxu0  ;;  %v1141_v16 = vadd.f32 %v3432_v1, %v1140_v49  ;;  %v1381_v19 = vsub.f32 0.0, %v885_v5 }
  0xf9   : > { %v2741_v58 = vpop.eup %2740  ;;  %2760 = vpow2.f32 %v1512_v54  ;;  %v2611_v60 = vpop.f32.mrb[8].mxu1  ;;  %v906_v22 = vadd.f32 %v2547_v57, %v3432_v1  ;;  %v1646_v26 = vmul.f32 1.442695, %v1447_v13 }
  0xfa   : > { %v897_v61 = vpop.f32.mrb[9].mxu0  ;;  %v2743_v62 = vpop.eup %2742  ;;  %v1762_v63 = vadd.f32 1.0, %v2741_v58  ;;  %2762 = vpow2.f32 %v1640_v55  ;;  %v1162_v27 = vadd.f32 %v2611_v60, %v3432_v1  ;;  %v1445_v32 = vsub.f32 0.0, %v1141_v16 }
  0xfb   : > { %v1153_v0 = vpop.f32.mrb[9].mxu1  ;;  %v2548_v2 = vpop.f32.mrb[10].mxu0  ;;  %v1826_v4 = vadd.f32 1.0, %v2743_v62  ;;  %2764 = vpow2.f32 %v1518_v56  ;;  %v898_v33 = vadd.f32 %v3432_v1, %v897_v61  ;;  %v1514_v38 = vmul.f32 1.442695, %v1381_v19 }
  0xfc   : > { %v2745_v3 = vpop.eup %2744  ;;  %v2612_v6 = vpop.f32.mrb[10].mxu1  ;;  %2766 = vrcp.f32 %v1762_v63  ;;  %v1154_v39 = vadd.f32 %v3432_v1, %v1153_v0  ;;  %v1386_v44 = vsub.f32 0.0, %v906_v22  ;;  %v909_v45 = vadd.f32 %v2548_v2, %v3432_v1 }
  0xfd   : > { %v900_v7 = vpop.f32.mrb[11].mxu0  ;;  %v2747_v8 = vpop.eup %2746  ;;  %v1760_v9 = vadd.f32 1.0, %v2745_v3  ;;  %2768 = vrcp.f32 %v1826_v4  ;;  %v1450_v49 = vsub.f32 0.0, %v1162_v27  ;;  %v1165_v50 = vadd.f32 %v2612_v6, %v3432_v1 }
  0xfe   : > { %v3449_v10 = vpop.f32.mrb[11].mxu1  ;;  %v2749_v11 = vpop.eup %2748  ;;  %v1824_v12 = vadd.f32 1.0, %v2747_v8  ;;  %v1384_v53 = vsub.f32 0.0, %v898_v33  ;;  %v901_v54 = vadd.f32 %v3432_v1, %v900_v7  ;;  %v1642_v56 = vmul.f32 1.442695, %v1445_v32 }
  0xff   : > { %v2751_v14 = vpop.eup %2750  ;;  %2770 = vrcp.f32 %v1760_v9  ;;  %v1763_v15 = vadd.f32 1.0, %v2749_v11  ;;  %v1448_v57 = vsub.f32 0.0, %v1154_v39  ;;  %v1157_v58 = vadd.f32 %v3432_v1, %v3449_v10 }
 0x100   : > { %v2753_v17 = vpop.eup %2752  ;;  %2772 = vrcp.f32 %v1824_v12  ;;  %v1827_v18 = vadd.f32 1.0, %v2751_v14  ;;  %v2551_v23 = vpop.f32.mrb[12].mxu0  ;;  %v1524_v60 = vmul.f32 1.442695, %v1386_v44  ;;  %v1387_v61 = vsub.f32 0.0, %v909_v45 }
 0x101   : > { %v2755_v20 = vpop.eup %2754  ;;  %2774 = vrcp.f32 %v1763_v15  ;;  %v1761_v21 = vadd.f32 1.0, %v2753_v17  ;;  %v2615_v28 = vpop.f32.mrb[12].mxu1  ;;  %v922_v62 = vadd.f32 %v2551_v23, %v3432_v1  ;;  %v1652_v2 = vmul.f32 1.442695, %v1450_v49 }
 0x102   : > { %v2757_v24 = vpop.eup %2756  ;;  %2776 = vrcp.f32 %v1827_v18  ;;  %v1825_v25 = vadd.f32 1.0, %v2755_v20  ;;  %v3455_v29 = vpop.f32.mrb[13].mxu0  ;;  %v1451_v3 = vsub.f32 0.0, %v1165_v50  ;;  %v1178_v4 = vadd.f32 %v2615_v28, %v3432_v1 }
 0x103   : > { %v2759_v30 = vpop.eup %2758  ;;  %2778 = vrcp.f32 %v1761_v21  ;;  %v1766_v31 = vadd.f32 1.0, %v2757_v24  ;;  %v3458_v34 = vpop.f32.mrb[13].mxu1  ;;  %v1520_v8 = vmul.f32 1.442695, %v1384_v53  ;;  %v1385_v9 = vsub.f32 0.0, %v901_v54 }
 0x104   : > { %v3460_v35 = vpop.f32.mrb[14].mxu0  ;;  %v2761_v36 = vpop.eup %2760  ;;  %2780 = vrcp.f32 %v1825_v25  ;;  %v1830_v37 = vadd.f32 1.0, %v2759_v30  ;;  %v1648_v13 = vmul.f32 1.442695, %v1448_v57  ;;  %v1449_v14 = vsub.f32 0.0, %v1157_v58 }
 0x105   : > { %v3463_v40 = vpop.f32.mrb[14].mxu1  ;;  %v3465_v41 = vpop.f32.mrb[15].mxu0  ;;  %2782 = vrcp.f32 %v1766_v31  ;;  %v1764_v43 = vadd.f32 1.0, %v2761_v36  ;;  %v1526_v18 = vmul.f32 1.442695, %v1387_v61  ;;  %v1390_v19 = vsub.f32 0.0, %v922_v62 }
 0x106   : > { %v2763_v42 = vpop.eup %2762  ;;  %v3473_v46 = vpop.f32.mrb[15].mxu1  ;;  %2784 = vrcp.f32 %v1830_v37  ;;  %v1654_v22 = vmul.f32 1.442695, %v1451_v3  ;;  %v1454_v23 = vsub.f32 0.0, %v1178_v4  ;;  %v1522_v25 = vmul.f32 1.442695, %v1385_v9 }
 0x107   : > { %v2765_v47 = vpop.eup %2764  ;;  %v1828_v48 = vadd.f32 1.0, %v2763_v42  ;;  %2786 = vrcp.f32 %v1764_v43  ;;  %v1650_v27 = vmul.f32 1.442695, %v1449_v14  ;;  %v1532_v30 = vmul.f32 1.442695, %v1390_v19 }
 0x108   : > { %v2767_v51 = vpop.eup %2766  ;;  %v1767_v52 = vadd.f32 1.0, %v2765_v47  ;;  %v3484_v63 = vpop.f32.mrb[16].mxu0  ;;  %v1660_v33 = vmul.f32 1.442695, %v1454_v23  ;;  %v914_v44 = vadd.f32 %v3432_v1, %v3455_v29  ;;  %v1170_v53 = vadd.f32 %v3432_v1, %v3458_v34 }
 0x109   : > { %v2769_v55 = vpop.eup %2768  ;;  %2147 = vst.msk [vmem:[%s3470_s26 + $0x10] sm:$0xff] %vm2144_vm1, %v2767_v51  ;;  %2788 = vrcp.f32 %v1828_v48  ;;  %v3489_v5 = vpop.f32.mrb[16].mxu1 }
 0x10a   : > { %v2771_v59 = vpop.eup %2770  ;;  %2211 = vst.msk [vmem:[%s3470_s26 + $0x210] sm:$0xff] %vm2144_vm1, %v2769_v55  ;;  %2790 = vrcp.f32 %v1767_v52  ;;  %v3491_v6 = vpop.f32.mrb[17].mxu0  ;;  %v1388_v57 = vsub.f32 0.0, %v914_v44 }
 0x10b   : > { %v2773_v0 = vpop.eup %2772  ;;  %2145 = vst.msk [vmem:[%s3470_s26] sm:$0xff] %vm2144_vm1, %v2771_v59  ;;  %2792 = vpow2.f32 %v1646_v26  ;;  %v3495_v10 = vpop.f32.mrb[17].mxu1  ;;  %v930_v44 = vadd.f32 %v3432_v1, %v3491_v6 }
 0x10c   : > { %v2775_v7 = vpop.eup %2774  ;;  %2209 = vst.msk [vmem:[%s3470_s26 + $0x200] sm:$0xff] %vm2144_vm1, %v2773_v0  ;;  %2794 = vpow2.f32 %v1514_v38  ;;  %v3497_v11 = vpop.f32.mrb[18].mxu0  ;;  %v1528_v14 = vmul.f32 1.442695, %v1388_v57 }
 0x10d   : > { %v2777_v12 = vpop.eup %2776  ;;  %2148 = vst.msk [vmem:[%s3470_s26 + $0x18] sm:$0xff] %vm2144_vm1, %v2775_v7  ;;  %2796 = vpow2.f32 %v1642_v56  ;;  %v3501_v15 = vpop.f32.mrb[18].mxu1  ;;  %v941_v6 = vadd.f32 %v3497_v11, %v3432_v1 }
 0x10e   : > { %v3503_v16 = vpop.f32.mrb[19].mxu0  ;;  %v2779_v17 = vpop.eup %2778  ;;  %2212 = vst.msk [vmem:[%s3470_s26 + $0x218] sm:$0xff] %vm2144_vm1, %v2777_v12  ;;  %2798 = vpow2.f32 %v1524_v60  ;;  %v925_v60 = vadd.f32 %v3460_v35, %v3432_v1 }
 0x10f   : > { %v3507_v20 = vpop.f32.mrb[19].mxu1  ;;  %v2781_v21 = vpop.eup %2780  ;;  %2146 = vst.msk [vmem:[%s3470_s26 + $0x8] sm:$0xff] %vm2144_vm1, %v2779_v17  ;;  %2800 = vpow2.f32 %v1652_v2  ;;  %v1452_v2 = vsub.f32 0.0, %v1170_v53  ;;  %v917_v17 = vadd.f32 %v3432_v1, %v3465_v41  ;;  %v938_v41 = vadd.f32 %v3484_v63, %v3432_v1 }
 0x110   : > { %v2783_v24 = vpop.eup %2782  ;;  %2210 = vst.msk [vmem:[%s3470_s26 + $0x208] sm:$0xff] %vm2144_vm1, %v2781_v21  ;;  %2802 = vpow2.f32 %v1520_v8  ;;  %v3517_v31 = vpop.f32.mrb[20].mxu0  ;;  %v1181_v8 = vadd.f32 %v3463_v40, %v3432_v1  ;;  %v1391_v23 = vsub.f32 0.0, %v925_v60  ;;  %v1173_v40 = vadd.f32 %v3432_v1, %v3473_v46 }
 0x111   : > { %v2785_v26 = vpop.eup %2784  ;;  %2151 = vst.msk [vmem:[%s3470_s26 + $0x30] sm:$0xff] %vm2144_vm1, %v2783_v24  ;;  %2804 = vpow2.f32 %v1648_v13  ;;  %v3521_v36 = vpop.f32.mrb[20].mxu1 }
 0x112   : > { %v2787_v28 = vpop.eup %2786  ;;  %2215 = vst.msk [vmem:[%s3470_s26 + $0x230] sm:$0xff] %vm2144_vm1, %v2785_v26  ;;  %2806 = vpow2.f32 %v1526_v18  ;;  %v3523_v37 = vpop.f32.mrb[21].mxu0  ;;  %v1453_v63 = vsub.f32 0.0, %v1173_v40 }
 0x113   : > { %v2789_v32 = vpop.eup %2788  ;;  %2149 = vst.msk [vmem:[%s3470_s26 + $0x20] sm:$0xff] %vm2144_vm1, %v2787_v28  ;;  %2808 = vpow2.f32 %v1654_v22  ;;  %v3527_v39 = vpop.f32.mrb[21].mxu1 }
 0x114   : > { %v2791_v38 = vpop.eup %2790  ;;  %2213 = vst.msk [vmem:[%s3470_s26 + $0x220] sm:$0xff] %vm2144_vm1, %v2789_v32  ;;  %2810 = vpow2.f32 %v1522_v25  ;;  %v3529_v42 = vpop.f32.mrb[22].mxu0  ;;  %v1455_v32 = vsub.f32 0.0, %v1181_v8  ;;  %v1658_v8 = vmul.f32 1.442695, %v1453_v63 }
 0x115   : > { %v2793_v43 = vpop.eup %2792  ;;  %2152 = vst.msk [vmem:[%s3470_s26 + $0x38] sm:$0xff] %vm2144_vm1, %v2791_v38  ;;  %2812 = vpow2.f32 %v1650_v27  ;;  %v3535_v45 = vpop.f32.mrb[22].mxu1  ;;  %v1656_v27 = vmul.f32 1.442695, %v1452_v2  ;;  %v933_v2 = vadd.f32 %v3432_v1, %v3503_v16  ;;  %v1395_v16 = vsub.f32 0.0, %v941_v6 }
 0x116   : > { %v3537_v47 = vpop.f32.mrb[23].mxu0  ;;  %v2795_v48 = vpop.eup %2794  ;;  %v1831_v49 = vadd.f32 1.0, %v2793_v43  ;;  %2814 = vpow2.f32 %v1532_v30  ;;  %v1389_v43 = vsub.f32 0.0, %v917_v17 }
 0x117   : > { %v3539_v50 = vpop.f32.mrb[23].mxu1  ;;  %v2797_v51 = vpop.eup %2796  ;;  %v1765_v52 = vadd.f32 1.0, %v2795_v48  ;;  %2816 = vpow2.f32 %v1660_v33  ;;  %v1194_v33 = vadd.f32 %v3489_v5, %v3432_v1  ;;  %v1534_v5 = vmul.f32 1.442695, %v1391_v23 }
 0x118   : > { %v2799_v54 = vpop.eup %2798  ;;  %2818 = vrcp.f32 %v1831_v49  ;;  %v1829_v55 = vadd.f32 1.0, %v2797_v51  ;;  %v3545_v61 = vpop.f32.mrb[24].mxu0  ;;  %v1186_v51 = vadd.f32 %v3432_v1, %v3495_v10  ;;  %v1662_v10 = vmul.f32 1.442695, %v1455_v32 }
 0x119   : > { %v2801_v56 = vpop.eup %2800  ;;  %2820 = vrcp.f32 %v1765_v52  ;;  %v1770_v29 = vadd.f32 1.0, %v2799_v54  ;;  %v3547_v34 = vpop.f32.mrb[24].mxu1  ;;  %v1394_v54 = vsub.f32 0.0, %v938_v41  ;;  %v1458_v57 = vsub.f32 0.0, %v1194_v33 }
 0x11a   : > { %v2803_v58 = vpop.eup %2802  ;;  %2822 = vrcp.f32 %v1829_v55  ;;  %v1834_v59 = vadd.f32 1.0, %v2801_v56  ;;  %v3549_v3 = vpop.f32.mrb[25].mxu0  ;;  %v1542_v32 = vmul.f32 1.442695, %v1395_v16 }
 0x11b   : > { %v2805_v62 = vpop.eup %2804  ;;  %2824 = vrcp.f32 %v1770_v29  ;;  %v1768_v0 = vadd.f32 1.0, %v2803_v58  ;;  %v3553_v9 = vpop.f32.mrb[25].mxu1  ;;  %v1197_v58 = vadd.f32 %v3501_v15, %v3432_v1  ;;  %v1540_v17 = vmul.f32 1.442695, %v1394_v54 }
 0x11c   : > { %v2807_v4 = vpop.eup %2806  ;;  %2826 = vrcp.f32 %v1834_v59  ;;  %v1832_v7 = vadd.f32 1.0, %v2805_v62  ;;  %v3555_v12 = vpop.f32.mrb[26].mxu0  ;;  %v1530_v62 = vmul.f32 1.442695, %v1389_v43 }
 0x11d   : > { %v2809_v35 = vpop.eup %2808  ;;  %2828 = vrcp.f32 %v1768_v0  ;;  %v1771_v13 = vadd.f32 1.0, %v2807_v4  ;;  %v3559_v18 = vpop.f32.mrb[26].mxu1  ;;  %v1392_v0 = vsub.f32 0.0, %v930_v44  ;;  %v1459_v23 = vsub.f32 0.0, %v1197_v58 }
 0x11e   : > { %v3561_v19 = vpop.f32.mrb[27].mxu0  ;;  %v2811_v21 = vpop.eup %2810  ;;  %2830 = vrcp.f32 %v1832_v7  ;;  %v1835_v22 = vadd.f32 1.0, %v2809_v35  ;;  %v1456_v35 = vsub.f32 0.0, %v1186_v51 }
 0x11f   : > { %v3565_v24 = vpop.f32.mrb[27].mxu1  ;;  %v2813_v25 = vpop.eup %2812  ;;  %2832 = vrcp.f32 %v1771_v13  ;;  %v1769_v26 = vadd.f32 1.0, %v2811_v21  ;;  %v1670_v43 = vmul.f32 1.442695, %v1459_v23 }
 0x120   : > { %v2815_v28 = vpop.eup %2814  ;;  %2834 = vrcp.f32 %v1835_v22  ;;  %v1833_v30 = vadd.f32 1.0, %v2813_v25  ;;  %v3575_v52 = vpop.f32.mrb[28].mxu0  ;;  %v1668_v22 = vmul.f32 1.442695, %v1458_v57  ;;  %v1536_v25 = vmul.f32 1.442695, %v1392_v0 }
 0x121   : > { %v2817_v38 = vpop.eup %2816  ;;  %2836 = vrcp.f32 %v1769_v26  ;;  %v1774_v46 = vadd.f32 1.0, %v2815_v28  ;;  %v3581_v55 = vpop.f32.mrb[28].mxu1  ;;  %v1393_v26 = vsub.f32 0.0, %v933_v2  ;;  %v1664_v41 = vmul.f32 1.442695, %v1456_v35 }
 0x122   : > { %v2819_v48 = vpop.eup %2818  ;;  %2838 = vrcp.f32 %v1833_v30  ;;  %v1838_v49 = vadd.f32 1.0, %v2817_v38  ;;  %v3583_v56 = vpop.f32.mrb[29].mxu0 }
 0x123   : > { %v2821_v53 = vpop.eup %2820  ;;  %2216 = vst.msk [vmem:[%s3470_s26 + $0x238] sm:$0xff] %vm2144_vm1, %v2819_v48  ;;  %2840 = vrcp.f32 %v1774_v46  ;;  %v3589_v59 = vpop.f32.mrb[29].mxu1  ;;  %v1538_v63 = vmul.f32 1.442695, %v1393_v26 }
 0x124   : > { %v2823_v29 = vpop.eup %2822  ;;  %2150 = vst.msk [vmem:[%s3470_s26 + $0x28] sm:$0xff] %vm2144_vm1, %v2821_v53  ;;  %2842 = vrcp.f32 %v1838_v49  ;;  %v3591_v60 = vpop.f32.mrb[30].mxu0 }
 0x125   : > { %v2825_v11 = vpop.eup %2824  ;;  %2214 = vst.msk [vmem:[%s3470_s26 + $0x228] sm:$0xff] %vm2144_vm1, %v2823_v29  ;;  %2844 = vpow2.f32 %v1528_v14  ;;  %v3597_v4 = vpop.f32.mrb[30].mxu1  ;;  %v1189_v29 = vadd.f32 %v3432_v1, %v3507_v20 }
 0x126   : > { %v3599_v7 = vpop.f32.mrb[31].mxu0  ;;  %v2827_v15 = vpop.eup %2826  ;;  %2155 = vst.msk [vmem:[%s3470_s26 + $0x50] sm:$0xff] %vm2144_vm1, %v2825_v11  ;;  %2846 = vpow2.f32 %v1656_v27 }
 0x127   : > { %v3603_v13 = vpop.f32.mrb[31].mxu1  ;;  %v2829_v14 = vpop.eup %2828  ;;  %2219 = vst.msk [vmem:[%s3470_s26 + $0x250] sm:$0xff] %vm2144_vm1, %v2827_v15  ;;  %2848 = vpow2.f32 %v1534_v5 }
 0x128   : > { %v2831_v21 = vpop.eup %2830  ;;  %2153 = vst.msk [vmem:[%s3470_s26 + $0x40] sm:$0xff] %vm2144_vm1, %v2829_v14  ;;  %2850 = vpow2.f32 %v1662_v10  ;;  %v3613_v28 = vpop.f32.mrb[32].mxu0  ;;  %v1457_v14 = vsub.f32 0.0, %v1189_v29 }
 0x129   : > { %v2833_v40 = vpop.eup %2832  ;;  %2217 = vst.msk [vmem:[%s3470_s26 + $0x240] sm:$0xff] %vm2144_vm1, %v2831_v21  ;;  %2852 = vpow2.f32 %v1530_v62  ;;  %v3617_v33 = vpop.f32.mrb[32].mxu1  ;;  %v954_v62 = vadd.f32 %v3517_v31, %v3432_v1 }
 0x12a   : > { %v2835_v27 = vpop.eup %2834  ;;  %2156 = vst.msk [vmem:[%s3470_s26 + $0x58] sm:$0xff] %vm2144_vm1, %v2833_v40  ;;  %2854 = vpow2.f32 %v1658_v8  ;;  %v3619_v38 = vpop.f32.mrb[33].mxu0 }
 0x12b   : > { %v2837_v30 = vpop.eup %2836  ;;  %2220 = vst.msk [vmem:[%s3470_s26 + $0x258] sm:$0xff] %vm2144_vm1, %v2835_v27  ;;  %2856 = vpow2.f32 %v1540_v17  ;;  %v3623_v44 = vpop.f32.mrb[33].mxu1  ;;  %v1398_v26 = vsub.f32 0.0, %v954_v62  ;;  %v1213_v62 = vadd.f32 %v3535_v45, %v3432_v1 }
 0x12c   : > { %v2839_v46 = vpop.eup %2838  ;;  %2154 = vst.msk [vmem:[%s3470_s26 + $0x48] sm:$0xff] %vm2144_vm1, %v2837_v30  ;;  %2858 = vpow2.f32 %v1668_v22  ;;  %v3625_v48 = vpop.f32.mrb[34].mxu0  ;;  %v1210_v22 = vadd.f32 %v3521_v36, %v3432_v1 }
 0x12d   : > { %v2841_v49 = vpop.eup %2840  ;;  %2218 = vst.msk [vmem:[%s3470_s26 + $0x248] sm:$0xff] %vm2144_vm1, %v2839_v46  ;;  %2860 = vpow2.f32 %v1536_v25  ;;  %v3629_v51 = vpop.f32.mrb[34].mxu1  ;;  %v946_v46 = vadd.f32 %v3432_v1, %v3523_v37  ;;  %v1548_v37 = vmul.f32 1.442695, %v1398_v26 }
 0x12e   : > { %v3631_v53 = vpop.f32.mrb[35].mxu0  ;;  %v2843_v5 = vpop.eup %2842  ;;  %2159 = vst.msk [vmem:[%s3470_s26 + $0x70] sm:$0xff] %vm2144_vm1, %v2841_v49  ;;  %2862 = vpow2.f32 %v1664_v41 }
 0x12f   : > { %v3635_v54 = vpop.f32.mrb[35].mxu1  ;;  %v2845_v6 = vpop.eup %2844  ;;  %2223 = vst.msk [vmem:[%s3470_s26 + $0x270] sm:$0xff] %vm2144_vm1, %v2843_v5  ;;  %2864 = vpow2.f32 %v1542_v32  ;;  %v1202_v5 = vadd.f32 %v3432_v1, %v3527_v39  ;;  %v949_v39 = vadd.f32 %v3432_v1, %v3537_v47  ;;  %v970_v47 = vadd.f32 %v3545_v61, %v3432_v1 }
 0x130   : > { %v2847_v10 = vpop.eup %2846  ;;  %v1772_v57 = vadd.f32 1.0, %v2845_v6  ;;  %2866 = vpow2.f32 %v1670_v43  ;;  %v3643_v15 = vpop.f32.mrb[36].mxu0 }
 0x131   : > { %v2849_v58 = vpop.eup %2848  ;;  %v1836_v11 = vadd.f32 1.0, %v2847_v10  ;;  %2868 = vpow2.f32 %v1538_v63  ;;  %v3645_v17 = vpop.f32.mrb[36].mxu1  ;;  %v1666_v63 = vmul.f32 1.442695, %v1457_v14  ;;  %v1462_v10 = vsub.f32 0.0, %v1210_v22 }
 0x132   : > { %v2851_v0 = vpop.eup %2850  ;;  %2870 = vrcp.f32 %v1772_v57  ;;  %v1775_v2 = vadd.f32 1.0, %v2849_v58  ;;  %v3647_v20 = vpop.f32.mrb[37].mxu0  ;;  %v957_v57 = vadd.f32 %v3529_v42, %v3432_v1 }
 0x133   : > { %v2853_v8 = vpop.eup %2852  ;;  %2872 = vrcp.f32 %v1836_v11  ;;  %v1839_v35 = vadd.f32 1.0, %v2851_v0  ;;  %v3651_v31 = vpop.f32.mrb[37].mxu1 }
 0x134   : > { %v2855_v16 = vpop.eup %2854  ;;  %2874 = vrcp.f32 %v1775_v2  ;;  %v1773_v21 = vadd.f32 1.0, %v2853_v8  ;;  %v3653_v23 = vpop.f32.mrb[38].mxu0  ;;  %v1396_v8 = vsub.f32 0.0, %v946_v46  ;;  %v1399_v26 = vsub.f32 0.0, %v957_v57 }
 0x135   : > { %v2857_v40 = vpop.eup %2856  ;;  %2876 = vrcp.f32 %v1839_v35  ;;  %v1837_v25 = vadd.f32 1.0, %v2855_v16  ;;  %v3655_v27 = vpop.f32.mrb[38].mxu1  ;;  %v1460_v16 = vsub.f32 0.0, %v1202_v5  ;;  %v1397_v57 = vsub.f32 0.0, %v949_v39 }
 0x136   : > { %v3657_v41 = vpop.f32.mrb[39].mxu0  ;;  %v2859_v30 = vpop.eup %2858  ;;  %2878 = vrcp.f32 %v1773_v21  ;;  %v1778_v32 = vadd.f32 1.0, %v2857_v40  ;;  %v1205_v21 = vadd.f32 %v3432_v1, %v3539_v50  ;;  %v1676_v50 = vmul.f32 1.442695, %v1462_v10 }
 0x137   : > { %v3661_v43 = vpop.f32.mrb[39].mxu1  ;;  %v2861_v36 = vpop.eup %2860  ;;  %2880 = vrcp.f32 %v1837_v25  ;;  %v1842_v49 = vadd.f32 1.0, %v2859_v30  ;;  %v1402_v39 = vsub.f32 0.0, %v970_v47 }
 0x138   : > { %v2863_v6 = vpop.eup %2862  ;;  %2882 = vrcp.f32 %v1778_v32  ;;  %v1776_v29 = vadd.f32 1.0, %v2861_v36  ;;  %v3671_v35 = vpop.f32.mrb[40].mxu0  ;;  %v1463_v36 = vsub.f32 0.0, %v1213_v62  ;;  %v1461_v62 = vsub.f32 0.0, %v1205_v21 }
 0x139   : > { %v2865_v58 = vpop.eup %2864  ;;  %2884 = vrcp.f32 %v1842_v49  ;;  %v1840_v11 = vadd.f32 1.0, %v2863_v6  ;;  %v3675_v22 = vpop.f32.mrb[40].mxu1  ;;  %v1226_v49 = vadd.f32 %v3547_v34, %v3432_v1  ;;  %v1672_v34 = vmul.f32 1.442695, %v1460_v16 }
 0x13a   : > { %v2867_v0 = vpop.eup %2866  ;;  %2886 = vrcp.f32 %v1776_v29  ;;  %v1779_v2 = vadd.f32 1.0, %v2865_v58  ;;  %v3677_v45 = vpop.f32.mrb[41].mxu0  ;;  %v1544_v29 = vmul.f32 1.442695, %v1396_v8  ;;  %v962_v58 = vadd.f32 %v3432_v1, %v3549_v3 }
 0x13b   : > { %v2869_v14 = vpop.eup %2868  ;;  %2888 = vrcp.f32 %v1840_v11  ;;  %v1843_v42 = vadd.f32 1.0, %v2867_v0  ;;  %v3681_v30 = vpop.f32.mrb[41].mxu1  ;;  %v1218_v0 = vadd.f32 %v3432_v1, %v3553_v9  ;;  %v1550_v8 = vmul.f32 1.442695, %v1399_v26 }
 0x13c   : > { %v2871_v40 = vpop.eup %2870  ;;  %2890 = vrcp.f32 %v1779_v2  ;;  %v1777_v25 = vadd.f32 1.0, %v2869_v14  ;;  %v3683_v32 = vpop.f32.mrb[42].mxu0  ;;  %v1678_v14 = vmul.f32 1.442695, %v1463_v36  ;;  %v1546_v16 = vmul.f32 1.442695, %v1397_v57 }
 0x13d   : > { %v2873_v46 = vpop.eup %2872  ;;  %2157 = vst.msk [vmem:[%s3470_s26 + $0x60] sm:$0xff] %vm2144_vm1, %v2871_v40  ;;  %2892 = vrcp.f32 %v1843_v42  ;;  %v3689_v5 = vpop.f32.mrb[42].mxu1  ;;  %v1466_v42 = vsub.f32 0.0, %v1226_v49  ;;  %v1400_v9 = vsub.f32 0.0, %v962_v58 }
 0x13e   : > { %v3691_v6 = vpop.f32.mrb[43].mxu0  ;;  %v2875_v61 = vpop.eup %2874  ;;  %2221 = vst.msk [vmem:[%s3470_s26 + $0x260] sm:$0xff] %vm2144_vm1, %v2873_v46  ;;  %2894 = vrcp.f32 %v1777_v25  ;;  %v1464_v25 = vsub.f32 0.0, %v1218_v0 }
 0x13f   : > { %v3697_v10 = vpop.f32.mrb[43].mxu1  ;;  %v2877_v11 = vpop.eup %2876  ;;  %2160 = vst.msk [vmem:[%s3470_s26 + $0x78] sm:$0xff] %vm2144_vm1, %v2875_v61  ;;  %2896 = vpow2.f32 %v1666_v63 }
 0x140   : > { %v2879_v2 = vpop.eup %2878  ;;  %2224 = vst.msk [vmem:[%s3470_s26 + $0x278] sm:$0xff] %vm2144_vm1, %v2877_v11  ;;  %2898 = vpow2.f32 %v1548_v37  ;;  %v3709_v21 = vpop.f32.mrb[44].mxu0  ;;  %v1674_v37 = vmul.f32 1.442695, %v1461_v62 }
 0x141   : > { %v2881_v3 = vpop.eup %2880  ;;  %2158 = vst.msk [vmem:[%s3470_s26 + $0x68] sm:$0xff] %vm2144_vm1, %v2879_v2  ;;  %2900 = vpow2.f32 %v1676_v50  ;;  %v3713_v26 = vpop.f32.mrb[44].mxu1  ;;  %v1556_v50 = vmul.f32 1.442695, %v1402_v39  ;;  %v1680_v2 = vmul.f32 1.442695, %v1464_v25 }
 0x142   : > { %v2883_v63 = vpop.eup %2882  ;;  %2222 = vst.msk [vmem:[%s3470_s26 + $0x268] sm:$0xff] %vm2144_vm1, %v2881_v3  ;;  %2902 = vpow2.f32 %v1544_v29  ;;  %v3715_v47 = vpop.f32.mrb[45].mxu0  ;;  %v1684_v29 = vmul.f32 1.442695, %v1466_v42  ;;  %v973_v3 = vadd.f32 %v3555_v12, %v3432_v1 }
 0x143   : > { %v2885_v40 = vpop.eup %2884  ;;  %2163 = vst.msk [vmem:[%s3470_s26 + $0x90] sm:$0xff] %vm2144_vm1, %v2883_v63  ;;  %2904 = vpow2.f32 %v1672_v34  ;;  %v3719_v36 = vpop.f32.mrb[45].mxu1  ;;  %v1552_v34 = vmul.f32 1.442695, %v1400_v9 }
 0x144   : > { %v2887_v46 = vpop.eup %2886  ;;  %2227 = vst.msk [vmem:[%s3470_s26 + $0x290] sm:$0xff] %vm2144_vm1, %v2885_v40  ;;  %2906 = vpow2.f32 %v1550_v8  ;;  %v3721_v49 = vpop.f32.mrb[46].mxu0 }
 0x145   : > { %v2889_v61 = vpop.eup %2888  ;;  %2161 = vst.msk [vmem:[%s3470_s26 + $0x80] sm:$0xff] %vm2144_vm1, %v2887_v46  ;;  %2908 = vpow2.f32 %v1678_v14  ;;  %v3725_v57 = vpop.f32.mrb[46].mxu1 }
 0x146   : > { %v3727_v58 = vpop.f32.mrb[47].mxu0  ;;  %v2891_v11 = vpop.eup %2890  ;;  %2225 = vst.msk [vmem:[%s3470_s26 + $0x280] sm:$0xff] %vm2144_vm1, %v2889_v61  ;;  %2910 = vpow2.f32 %v1546_v16 }
 0x147   : > { %v3731_v62 = vpop.f32.mrb[47].mxu1  ;;  %v2893_v0 = vpop.eup %2892  ;;  %2164 = vst.msk [vmem:[%s3470_s26 + $0x98] sm:$0xff] %vm2144_vm1, %v2891_v11  ;;  %2912 = vpow2.f32 %v1674_v37 }
 0x148   : > { %v2895_v8 = vpop.eup %2894  ;;  %2228 = vst.msk [vmem:[%s3470_s26 + $0x298] sm:$0xff] %vm2144_vm1, %v2893_v0  ;;  %2914 = vpow2.f32 %v1556_v50  ;;  %v3741_v63 = vpop.f32.mrb[48].mxu0  ;;  %v3750_v50 = vld [vmem:[%s4148_s2] ss:$0 sm:$0xff] }
 0x149   : > { %v2897_v39 = vpop.eup %2896  ;;  %2162 = vst.msk [vmem:[%s3470_s26 + $0x88] sm:$0xff] %vm2144_vm1, %v2895_v8  ;;  %2916 = vpow2.f32 %v1684_v29  ;;  %v3743_v40 = vpop.f32.mrb[48].mxu1  ;;  %v1229_v1 = vadd.f32 %v3750_v50, %v3559_v18 }
 0x14a   : > { %v2899_v14 = vpop.eup %2898  ;;  %v1841_v42 = vadd.f32 1.0, %v2897_v39  ;;  %2918 = vpow2.f32 %v1552_v34  ;;  %v3745_v37 = vpop.f32.mrb[49].mxu0  ;;  %v1403_v34 = vsub.f32 0.0, %v973_v3 }
 0x14b   : > { %v2901_v16 = vpop.eup %2900  ;;  %v1782_v9 = vadd.f32 1.0, %v2899_v14  ;;  %2920 = vpow2.f32 %v1680_v2  ;;  %v3754_v12 = vpop.f32.mrb[49].mxu1  ;;  %v965_v14 = vadd.f32 %v3750_v50, %v3561_v19 }
 0x14c   : > { %v2903_v25 = vpop.eup %2902  ;;  %2922 = vrcp.f32 %v1841_v42  ;;  %v1846_v46 = vadd.f32 1.0, %v2901_v16  ;;  %4150 = vst [vmem:[#allocation2_spill] sm:$0xff] %v3754_v12  ;;  %v3756_v61 = vpop.f32.mrb[50].mxu0 }
 0x14d   : > { %4151 = vst [vmem:[#allocation3_spill] sm:$0xff] %v3756_v61  ;;  %v2905_v29 = vpop.eup %2904  ;;  %2924 = vrcp.f32 %v1782_v9  ;;  %v1780_v11 = vadd.f32 1.0, %v2903_v25  ;;  %v3758_v0 = vpop.f32.mrb[50].mxu1  ;;  %v1221_v9 = vadd.f32 %v3750_v50, %v3565_v24  ;;  %v1401_v12 = vsub.f32 0.0, %v965_v14 }
 0x14e   : > { %4152 = vst [vmem:[#allocation4_spill] sm:$0xff] %v3758_v0  ;;  %v3760_v2 = vpop.f32.mrb[51].mxu0  ;;  %v2907_v8 = vpop.eup %2906  ;;  %2926 = vrcp.f32 %v1846_v46  ;;  %v1844_v39 = vadd.f32 1.0, %v2905_v29  ;;  %v1467_v0 = vsub.f32 0.0, %v1229_v1  ;;  %v1558_v46 = vmul.f32 1.442695, %v1403_v34 }
 0x14f   : > { %4153 = vst [vmem:[#allocation5_spill] sm:$0xff] %v3760_v2  ;;  %v3764_v42 = vpop.f32.mrb[51].mxu1  ;;  %v2909_v18 = vpop.eup %2908  ;;  %2928 = vrcp.f32 %v1780_v11  ;;  %v1783_v16 = vadd.f32 1.0, %v2907_v8  ;;  %v986_v29 = vadd.f32 %v3750_v50, %v3575_v52  ;;  %v1242_v11 = vadd.f32 %v3750_v50, %v3581_v55 }
 0x150   : > { %4154 = vst [vmem:[#allocation6_spill] sm:$0xff] %v3764_v42  ;;  %v2911_v25 = vpop.eup %2910  ;;  %2930 = vrcp.f32 %v1844_v39  ;;  %v1847_v3 = vadd.f32 1.0, %v2909_v18  ;;  %v3772_v8 = vpop.f32.mrb[52].mxu0  ;;  %v1465_v1 = vsub.f32 0.0, %v1221_v9  ;;  %v978_v18 = vadd.f32 %v3750_v50, %v3583_v56 }
 0x151   : > { %v2913_v61 = vpop.eup %2912  ;;  %2932 = vrcp.f32 %v1783_v16  ;;  %v1781_v2 = vadd.f32 1.0, %v2911_v25  ;;  %v3776_v34 = vpop.f32.mrb[52].mxu1  ;;  %v1686_v14 = vmul.f32 1.442695, %v1467_v0  ;;  %v1234_v55 = vadd.f32 %v3750_v50, %v3589_v59 }
 0x152   : > { %v2915_v19 = vpop.eup %2914  ;;  %2934 = vrcp.f32 %v1847_v3  ;;  %v1845_v42 = vadd.f32 1.0, %v2913_v61  ;;  %v3778_v16 = vpop.f32.mrb[53].mxu0  ;;  %v1406_v56 = vsub.f32 0.0, %v986_v29  ;;  %v1404_v29 = vsub.f32 0.0, %v978_v18 }
 0x153   : > { %v2917_v24 = vpop.eup %2916  ;;  %2936 = vrcp.f32 %v1781_v2  ;;  %v1786_v39 = vadd.f32 1.0, %v2915_v19  ;;  %4155 = vst [vmem:[#allocation7_spill] sm:$0xff] %v3778_v16  ;;  %v3782_v25 = vpop.f32.mrb[53].mxu1  ;;  %v989_v19 = vadd.f32 %v3750_v50, %v3591_v60  ;;  %v1554_v60 = vmul.f32 1.442695, %v1401_v12 }
 0x154   : > { %v2919_v52 = vpop.eup %2918  ;;  %2938 = vrcp.f32 %v1845_v42  ;;  %v1850_v61 = vadd.f32 1.0, %v2917_v24  ;;  %4156 = vst [vmem:[#allocation8_spill] sm:$0xff] %v3782_v25  ;;  %v3784_v2 = vpop.f32.mrb[54].mxu0  ;;  %v1470_v24 = vsub.f32 0.0, %v1242_v11  ;;  %v1682_v11 = vmul.f32 1.442695, %v1465_v1 }
 0x155   : > { %4157 = vst [vmem:[#allocation9_spill] sm:$0xff] %v3784_v2  ;;  %v2921_v9 = vpop.eup %2920  ;;  %2940 = vrcp.f32 %v1786_v39  ;;  %v1784_v3 = vadd.f32 1.0, %v2919_v52  ;;  %v3788_v16 = vpop.f32.mrb[54].mxu1  ;;  %v1245_v2 = vadd.f32 %v3750_v50, %v3597_v4  ;;  %v981_v52 = vadd.f32 %v3750_v50, %v3599_v7 }
 0x156   : > { %v3790_v42 = vpop.f32.mrb[55].mxu0  ;;  %v2923_v0 = vpop.eup %2922  ;;  %2942 = vrcp.f32 %v1850_v61  ;;  %v1848_v59 = vadd.f32 1.0, %v2921_v9  ;;  %v1468_v61 = vsub.f32 0.0, %v1234_v55  ;;  %v1237_v4 = vadd.f32 %v3750_v50, %v3603_v13 }
 0x157   : > { %4158 = vst [vmem:[#allocation10_spill] sm:$0xff] %v3790_v42  ;;  %v3794_v25 = vpop.f32.mrb[55].mxu1  ;;  %v2925_v39 = vpop.eup %2924  ;;  %2226 = vst.msk [vmem:[%s3470_s26 + $0x288] sm:$0xff] %vm2144_vm1, %v2923_v0  ;;  %2944 = vrcp.f32 %v1784_v3  ;;  %v1564_v12 = vmul.f32 1.442695, %v1406_v56  ;;  %v1407_v3 = vsub.f32 0.0, %v989_v19  ;;  %v1002_v7 = vadd.f32 %v3750_v50, %v3613_v28 }
 0x158   : > { %v2927_v42 = vpop.eup %2926  ;;  %2167 = vst.msk [vmem:[%s3470_s26 + $0xb0] sm:$0xff] %vm2144_vm1, %v2925_v39  ;;  %2946 = vrcp.f32 %v1848_v59  ;;  %v1692_v1 = vmul.f32 1.442695, %v1470_v24  ;;  %v1471_v0 = vsub.f32 0.0, %v1245_v2  ;;  %v3810_v55 = vpop.f32.mrb[56].mxu0  ;;  %v1405_v56 = vsub.f32 0.0, %v981_v52 }
 0x159   : > { %v2929_v9 = vpop.eup %2928  ;;  %2231 = vst.msk [vmem:[%s3470_s26 + $0x2b0] sm:$0xff] %vm2144_vm1, %v2927_v42  ;;  %2948 = vpow2.f32 %v1558_v46  ;;  %v1560_v46 = vmul.f32 1.442695, %v1404_v29  ;;  %v3814_v19 = vpop.f32.mrb[56].mxu1  ;;  %v1469_v2 = vsub.f32 0.0, %v1237_v4  ;;  %v1410_v29 = vsub.f32 0.0, %v1002_v7 }
 0x15a   : > { %v2931_v18 = vpop.eup %2930  ;;  %2165 = vst.msk [vmem:[%s3470_s26 + $0xa0] sm:$0xff] %vm2144_vm1, %v2929_v9  ;;  %2950 = vpow2.f32 %v1686_v14  ;;  %v3816_v42 = vpop.f32.mrb[57].mxu0  ;;  %v1688_v14 = vmul.f32 1.442695, %v1468_v61  ;;  %v1694_v61 = vmul.f32 1.442695, %v1471_v0 }
 0x15b   : > { %v2933_v13 = vpop.eup %2932  ;;  %2229 = vst.msk [vmem:[%s3470_s26 + $0x2a0] sm:$0xff] %vm2144_vm1, %v2931_v18  ;;  %2952 = vpow2.f32 %v1554_v60  ;;  %v3820_v59 = vpop.f32.mrb[57].mxu1  ;;  %v1566_v60 = vmul.f32 1.442695, %v1407_v3  ;;  %v1690_v7 = vmul.f32 1.442695, %v1469_v2 }
 0x15c   : > { %v2935_v28 = vpop.eup %2934  ;;  %2168 = vst.msk [vmem:[%s3470_s26 + $0xb8] sm:$0xff] %vm2144_vm1, %v2933_v13  ;;  %2954 = vpow2.f32 %v1682_v11  ;;  %v3822_v24 = vpop.f32.mrb[58].mxu0 }
 0x15d   : > { %v2937_v39 = vpop.eup %2936  ;;  %2232 = vst.msk [vmem:[%s3470_s26 + $0x2b8] sm:$0xff] %vm2144_vm1, %v2935_v28  ;;  %2956 = vpow2.f32 %v1564_v12  ;;  %v3826_v52 = vpop.f32.mrb[58].mxu1  ;;  %v1562_v12 = vmul.f32 1.442695, %v1405_v56 }
 0x15e   : > { %v3828_v9 = vpop.f32.mrb[59].mxu0  ;;  %v2939_v11 = vpop.eup %2938  ;;  %2166 = vst.msk [vmem:[%s3470_s26 + $0xa8] sm:$0xff] %vm2144_vm1, %v2937_v39  ;;  %2958 = vpow2.f32 %v1692_v1  ;;  %v1572_v1 = vmul.f32 1.442695, %v1410_v29  ;;  %v994_v29 = vadd.f32 %v3750_v50, %v3619_v38 }
 0x15f   : > { %v3832_v4 = vpop.f32.mrb[59].mxu1  ;;  %v2941_v18 = vpop.eup %2940  ;;  %2230 = vst.msk [vmem:[%s3470_s26 + $0x2a8] sm:$0xff] %vm2144_vm1, %v2939_v11  ;;  %2960 = vpow2.f32 %v1560_v46  ;;  %v1258_v46 = vadd.f32 %v3750_v50, %v3617_v33 }
 0x160   : > { %v2943_v3 = vpop.eup %2942  ;;  %2171 = vst.msk [vmem:[%s3470_s26 + $0xd0] sm:$0xff] %vm2144_vm1, %v2941_v18  ;;  %2962 = vpow2.f32 %v1688_v14  ;;  %v3842_v0 = vpop.f32.mrb[60].mxu0 }
 0x161   : > { %v2945_v13 = vpop.eup %2944  ;;  %2235 = vst.msk [vmem:[%s3470_s26 + $0x2d0] sm:$0xff] %vm2144_vm1, %v2943_v3  ;;  %2964 = vpow2.f32 %v1566_v60  ;;  %4159 = vst [vmem:[#allocation11_spill] sm:$0xff] %v3842_v0  ;;  %v3848_v56 = vpop.f32.mrb[60].mxu1  ;;  %v1474_v38 = vsub.f32 0.0, %v1258_v46 }
 0x162   : > { %v2947_v28 = vpop.eup %2946  ;;  %2169 = vst.msk [vmem:[%s3470_s26 + $0xc0] sm:$0xff] %vm2144_vm1, %v2945_v13  ;;  %2966 = vpow2.f32 %v1694_v61  ;;  %4160 = vst [vmem:[#allocation12_spill] sm:$0xff] %v3848_v56  ;;  %v3850_v14 = vpop.f32.mrb[61].mxu0 }
 0x163   : > { %v2949_v39 = vpop.eup %2948  ;;  %2233 = vst.msk [vmem:[%s3470_s26 + $0x2c0] sm:$0xff] %vm2144_vm1, %v2947_v28  ;;  %2968 = vpow2.f32 %v1562_v12  ;;  %4161 = vst [vmem:[#allocation13_spill] sm:$0xff] %v3850_v14  ;;  %v3854_v11 = vpop.f32.mrb[61].mxu1  ;;  %v1700_v46 = vmul.f32 1.442695, %v1474_v38 }
 0x164   : > { %v2951_v2 = vpop.eup %2950  ;;  %v1787_v60 = vadd.f32 1.0, %v2949_v39  ;;  %2970 = vpow2.f32 %v1690_v7  ;;  %4162 = vst [vmem:[#allocation14_spill] sm:$0xff] %v3854_v11  ;;  %v3856_v61 = vpop.f32.mrb[62].mxu0 }
 0x165   : > { %4163 = vst [vmem:[#allocation15_spill] sm:$0xff] %v3856_v61  ;;  %v2953_v18 = vpop.eup %2952  ;;  %v1851_v3 = vadd.f32 1.0, %v2951_v2  ;;  %2972 = vpow2.f32 %v1572_v1  ;;  %v3858_v12 = vpop.f32.mrb[62].mxu1  ;;  %v1408_v61 = vsub.f32 0.0, %v994_v29  ;;  %v1250_v2 = vadd.f32 %v3750_v50, %v3623_v44 }
 0x166   : > { %v3860_v33 = vpop.f32.mrb[63].mxu0  ;;  %v2955_v13 = vpop.eup %2954  ;;  %2974 = vrcp.f32 %v1787_v60  ;;  %v1785_v28 = vadd.f32 1.0, %v2953_v18  ;;  %v1005_v18 = vadd.f32 %v3750_v50, %v3625_v48  ;;  %v997_v44 = vadd.f32 %v3750_v50, %v3631_v53 }
 0x167   : > { %4164 = vst [vmem:[#allocation16_spill] sm:$0xff] %v3860_v33  ;;  %v3862_v14 = vpop.f32.mrb[63].mxu1  ;;  %v2957_v7 = vpop.eup %2956  ;;  %2976 = vrcp.f32 %v1851_v3  ;;  %v1849_v39 = vadd.f32 1.0, %v2955_v13  ;;  %v1261_v13 = vadd.f32 %v3750_v50, %v3629_v51  ;;  %v1253_v48 = vadd.f32 %v3750_v50, %v3635_v54 }
 0x168   : > { %4165 = vst [vmem:[#allocation17_spill] sm:$0xff] %v3862_v14  ;;  %v2959_v56 = vpop.eup %2958  ;;  %2978 = vrcp.f32 %v1785_v28  ;;  %v1790_v11 = vadd.f32 1.0, %v2957_v7  ;;  %v1411_v38 = vsub.f32 0.0, %v1005_v18  ;;  %v1018_v51 = vadd.f32 %v3750_v50, %v3643_v15 }
 0x169   : > { %v2961_v0 = vpop.eup %2960  ;;  %2980 = vrcp.f32 %v1849_v39  ;;  %v1854_v1 = vadd.f32 1.0, %v2959_v56  ;;  %v1568_v56 = vmul.f32 1.442695, %v1408_v61  ;;  %v1475_v53 = vsub.f32 0.0, %v1261_v13 }
 0x16a   : > { %v2963_v33 = vpop.eup %2962  ;;  %2982 = vrcp.f32 %v1790_v11  ;;  %v1788_v60 = vadd.f32 1.0, %v2961_v0  ;;  %v1472_v11 = vsub.f32 0.0, %v1250_v2  ;;  %v1409_v54 = vsub.f32 0.0, %v997_v44 }
 0x16b   : > { %v2965_v14 = vpop.eup %2964  ;;  %2984 = vrcp.f32 %v1854_v1  ;;  %v1852_v3 = vadd.f32 1.0, %v2963_v33  ;;  %v1274_v1 = vadd.f32 %v3750_v50, %v3645_v17  ;;  %v1266_v13 = vadd.f32 %v3750_v50, %v3651_v31 }
 0x16c   : > { %v2967_v29 = vpop.eup %2966  ;;  %2986 = vrcp.f32 %v1788_v60  ;;  %v1791_v28 = vadd.f32 1.0, %v2965_v14  ;;  %v1696_v15 = vmul.f32 1.442695, %v1472_v11  ;;  %v1574_v17 = vmul.f32 1.442695, %v1411_v38 }
 0x16d   : > { %v2969_v7 = vpop.eup %2968  ;;  %2988 = vrcp.f32 %v1852_v3  ;;  %v1855_v0 = vadd.f32 1.0, %v2967_v29  ;;  %v1010_v3 = vadd.f32 %v3750_v50, %v3647_v20  ;;  %v1473_v29 = vsub.f32 0.0, %v1253_v48 }
 0x16e   : > { %v2971_v39 = vpop.eup %2970  ;;  %2990 = vrcp.f32 %v1791_v28  ;;  %v1789_v33 = vadd.f32 1.0, %v2969_v7  ;;  %v1414_v44 = vsub.f32 0.0, %v1018_v51  ;;  %v1021_v20 = vadd.f32 %v3750_v50, %v3653_v23 }
 0x16f   : > { %v2973_v14 = vpop.eup %2972  ;;  %2992 = vrcp.f32 %v1855_v0  ;;  %v1853_v61 = vadd.f32 1.0, %v2971_v39  ;;  %v1702_v0 = vmul.f32 1.442695, %v1475_v53  ;;  %v1478_v11 = vsub.f32 0.0, %v1274_v1 }
 0x170   : > { %v2975_v2 = vpop.eup %2974  ;;  %2994 = vrcp.f32 %v1789_v33  ;;  %v1794_v60 = vadd.f32 1.0, %v2973_v14  ;;  %v1277_v31 = vadd.f32 %v3750_v50, %v3655_v27  ;;  %v1570_v39 = vmul.f32 1.442695, %v1409_v54 }
 0x171   : > { %v2977_v18 = vpop.eup %2976  ;;  %2172 = vst.msk [vmem:[%s3470_s26 + $0xd8] sm:$0xff] %vm2144_vm1, %v2975_v2  ;;  %2996 = vrcp.f32 %v1853_v61  ;;  %v1412_v33 = vsub.f32 0.0, %v1010_v3  ;;  %v1698_v23 = vmul.f32 1.442695, %v1473_v29  ;;  %v1476_v51 = vsub.f32 0.0, %v1266_v13 }
 0x172   : > { %v2979_v28 = vpop.eup %2978  ;;  %2236 = vst.msk [vmem:[%s3470_s26 + $0x2d8] sm:$0xff] %vm2144_vm1, %v2977_v18  ;;  %2998 = vrcp.f32 %v1794_v60  ;;  %v1580_v27 = vmul.f32 1.442695, %v1414_v44  ;;  %v1415_v14 = vsub.f32 0.0, %v1021_v20  ;;  %v1479_v53 = vsub.f32 0.0, %v1277_v31 }
 0x173   : > { %v2981_v7 = vpop.eup %2980  ;;  %2170 = vst.msk [vmem:[%s3470_s26 + $0xc8] sm:$0xff] %vm2144_vm1, %v2979_v28  ;;  %3000 = vpow2.f32 %v1700_v46  ;;  %v1576_v2 = vmul.f32 1.442695, %v1412_v33  ;;  %v1704_v54 = vmul.f32 1.442695, %v1476_v51 }
 0x174   : > { %v2983_v48 = vpop.eup %2982  ;;  %2234 = vst.msk [vmem:[%s3470_s26 + $0x2c8] sm:$0xff] %vm2144_vm1, %v2981_v7  ;;  %3002 = vpow2.f32 %v1568_v56  ;;  %v1708_v56 = vmul.f32 1.442695, %v1478_v11  ;;  %v1582_v18 = vmul.f32 1.442695, %v1415_v14  ;;  %v1269_v11 = vadd.f32 %v3750_v50, %v3661_v43 }
 0x175   : > { %v2985_v38 = vpop.eup %2984  ;;  %2175 = vst.msk [vmem:[%s3470_s26 + $0xf0] sm:$0xff] %vm2144_vm1, %v2983_v48  ;;  %3004 = vpow2.f32 %v1696_v15  ;;  %v1710_v29 = vmul.f32 1.442695, %v1479_v53 }
 0x176   : > { %v2987_v46 = vpop.eup %2986  ;;  %2239 = vst.msk [vmem:[%s3470_s26 + $0x2f0] sm:$0xff] %vm2144_vm1, %v2985_v38  ;;  %3006 = vpow2.f32 %v1574_v17  ;;  %v1013_v17 = vadd.f32 %v3750_v50, %v3657_v41  ;;  %v1034_v41 = vadd.f32 %v3750_v50, %v3671_v35  ;;  %v1477_v14 = vsub.f32 0.0, %v1269_v11 }
 0x177   : > { %v2989_v61 = vpop.eup %2988  ;;  %2173 = vst.msk [vmem:[%s3470_s26 + $0xe0] sm:$0xff] %vm2144_vm1, %v2987_v46  ;;  %3008 = vpow2.f32 %v1702_v0 }
 0x178   : > { %v2991_v1 = vpop.eup %2990  ;;  %2237 = vst.msk [vmem:[%s3470_s26 + $0x2e0] sm:$0xff] %vm2144_vm1, %v2989_v61  ;;  %3010 = vpow2.f32 %v1570_v39  ;;  %v1413_v38 = vsub.f32 0.0, %v1013_v17 }
 0x179   : > { %v2993_v60 = vpop.eup %2992  ;;  %2176 = vst.msk [vmem:[%s3470_s26 + $0xf8] sm:$0xff] %vm2144_vm1, %v2991_v1  ;;  %3012 = vpow2.f32 %v1698_v23 }
 0x17a   : > { %v2995_v3 = vpop.eup %2994  ;;  %2240 = vst.msk [vmem:[%s3470_s26 + $0x2f8] sm:$0xff] %vm2144_vm1, %v2993_v60  ;;  %3014 = vpow2.f32 %v1580_v27  ;;  %v1026_v60 = vadd.f32 %v3750_v50, %v3677_v45  ;;  %v1293_v45 = vadd.f32 %v3750_v50, %v3689_v5 }
 0x17b   : > { %v2997_v15 = vpop.eup %2996  ;;  %2174 = vst.msk [vmem:[%s3470_s26 + $0xe8] sm:$0xff] %vm2144_vm1, %v2995_v3  ;;  %3016 = vpow2.f32 %v1708_v56  ;;  %v1290_v56 = vadd.f32 %v3750_v50, %v3675_v22  ;;  %v1418_v3 = vsub.f32 0.0, %v1034_v41  ;;  %v1037_v22 = vadd.f32 %v3750_v50, %v3683_v32 }
 0x17c   : > { %v2999_v13 = vpop.eup %2998  ;;  %2238 = vst.msk [vmem:[%s3470_s26 + $0x2e8] sm:$0xff] %vm2144_vm1, %v2997_v15  ;;  %3018 = vpow2.f32 %v1576_v2  ;;  %v1578_v2 = vmul.f32 1.442695, %v1413_v38  ;;  %v1050_v38 = vadd.f32 %v3750_v50, %v3709_v21  ;;  %v1042_v21 = vadd.f32 %v3750_v50, %v3715_v47 }
 0x17d   : > { %v3001_v28 = vpop.eup %3000  ;;  %2179 = vst.msk [vmem:[%s3470_s26 + $0x110] sm:$0xff] %vm2144_vm1, %v2999_v13  ;;  %3020 = vpow2.f32 %v1704_v54  ;;  %v1706_v13 = vmul.f32 1.442695, %v1477_v14  ;;  %v1588_v5 = vmul.f32 1.442695, %v1418_v3 }
 0x17e   : > { %v3003_v44 = vpop.eup %3002  ;;  %v1858_v20 = vadd.f32 1.0, %v3001_v28  ;;  %3022 = vpow2.f32 %v1582_v18  ;;  %v1282_v18 = vadd.f32 %v3750_v50, %v3681_v30  ;;  %v1416_v30 = vsub.f32 0.0, %v1026_v60 }
 0x17f   : > { %v3005_v7 = vpop.eup %3004  ;;  %v1792_v0 = vadd.f32 1.0, %v3003_v44  ;;  %3024 = vpow2.f32 %v1710_v29  ;;  %v1482_v44 = vsub.f32 0.0, %v1290_v56 }
 0x180   : > { %v3007_v31 = vpop.eup %3006  ;;  %3026 = vrcp.f32 %v1858_v20  ;;  %v1856_v48 = vadd.f32 1.0, %v3005_v7  ;;  %v1480_v32 = vsub.f32 0.0, %v1282_v18 }
 0x181   : > { %v3009_v39 = vpop.eup %3008  ;;  %3028 = vrcp.f32 %v1792_v0  ;;  %v1795_v33 = vadd.f32 1.0, %v3007_v31  ;;  %v1029_v0 = vadd.f32 %v3750_v50, %v3691_v6  ;;  %v1716_v6 = vmul.f32 1.442695, %v1482_v44 }
 0x182   : > { %v3011_v23 = vpop.eup %3010  ;;  %3030 = vrcp.f32 %v1856_v48  ;;  %v1859_v51 = vadd.f32 1.0, %v3009_v39  ;;  %v1285_v48 = vadd.f32 %v3750_v50, %v3697_v10  ;;  %v1306_v10 = vadd.f32 %v3750_v50, %v3713_v26 }
 0x183   : > { %v3013_v46 = vpop.eup %3012  ;;  %3032 = vrcp.f32 %v1795_v33  ;;  %v1793_v27 = vadd.f32 1.0, %v3011_v23  ;;  %v1419_v33 = vsub.f32 0.0, %v1037_v22 }
 0x184   : > { %v3015_v61 = vpop.eup %3014  ;;  %3034 = vrcp.f32 %v1859_v51  ;;  %v1857_v43 = vadd.f32 1.0, %v3013_v46  ;;  %v1483_v51 = vsub.f32 0.0, %v1293_v45  ;;  %v1584_v46 = vmul.f32 1.442695, %v1416_v30 }
 0x185   : > { %v3017_v53 = vpop.eup %3016  ;;  %3036 = vrcp.f32 %v1793_v27  ;;  %v1798_v1 = vadd.f32 1.0, %v3015_v61  ;;  %v1417_v27 = vsub.f32 0.0, %v1029_v0  ;;  %v1712_v61 = vmul.f32 1.442695, %v1480_v32 }
 0x186   : > { %v3019_v54 = vpop.eup %3018  ;;  %3038 = vrcp.f32 %v1857_v43  ;;  %v1862_v35 = vadd.f32 1.0, %v3017_v53  ;;  %v1481_v43 = vsub.f32 0.0, %v1285_v48  ;;  %v1590_v26 = vmul.f32 1.442695, %v1419_v33 }
 0x187   : > { %v3021_v15 = vpop.eup %3020  ;;  %3040 = vrcp.f32 %v1798_v1  ;;  %v1796_v29 = vadd.f32 1.0, %v3019_v54  ;;  %v1422_v53 = vsub.f32 0.0, %v1050_v38  ;;  %v1718_v47 = vmul.f32 1.442695, %v1483_v51 }
 0x188   : > { %v3023_v28 = vpop.eup %3022  ;;  %3042 = vrcp.f32 %v1862_v35  ;;  %v1860_v17 = vadd.f32 1.0, %v3021_v15  ;;  %v1586_v54 = vmul.f32 1.442695, %v1417_v27  ;;  %v1420_v35 = vsub.f32 0.0, %v1042_v21 }
 0x189   : > { %v3025_v20 = vpop.eup %3024  ;;  %3044 = vrcp.f32 %v1796_v29  ;;  %v1799_v7 = vadd.f32 1.0, %v3023_v28  ;;  %v1714_v18 = vmul.f32 1.442695, %v1481_v43  ;;  %v1596_v29 = vmul.f32 1.442695, %v1422_v53 }
 0x18a   : > { %v3027_v11 = vpop.eup %3026  ;;  %3046 = vrcp.f32 %v1860_v17  ;;  %v1863_v31 = vadd.f32 1.0, %v3025_v20  ;;  %v1592_v17 = vmul.f32 1.442695, %v1420_v35  ;;  %v1298_v20 = vadd.f32 %v3750_v50, %v3719_v36 }
 0x18b   : > { %v3029_v39 = vpop.eup %3028  ;;  %2243 = vst.msk [vmem:[%s3470_s26 + $0x310] sm:$0xff] %vm2144_vm1, %v3027_v11  ;;  %3048 = vrcp.f32 %v1799_v7  ;;  %v1309_v36 = vadd.f32 %v3750_v50, %v3725_v57 }
 0x18c   : > { %v3031_v23 = vpop.eup %3030  ;;  %2177 = vst.msk [vmem:[%s3470_s26 + $0x100] sm:$0xff] %vm2144_vm1, %v3029_v39  ;;  %3050 = vrcp.f32 %v1863_v31  ;;  %v1053_v31 = vadd.f32 %v3750_v50, %v3721_v49  ;;  %v1484_v33 = vsub.f32 0.0, %v1298_v20 }
 0x18d   : > { %v3033_v41 = vpop.eup %3032  ;;  %2241 = vst.msk [vmem:[%s3470_s26 + $0x300] sm:$0xff] %vm2144_vm1, %v3031_v23  ;;  %3052 = vpow2.f32 %v1578_v2  ;;  %v1486_v2 = vsub.f32 0.0, %v1306_v10 }
 0x18e   : > { %v3035_v14 = vpop.eup %3034  ;;  %2180 = vst.msk [vmem:[%s3470_s26 + $0x118] sm:$0xff] %vm2144_vm1, %v3033_v41  ;;  %3054 = vpow2.f32 %v1706_v13  ;;  %v1423_v10 = vsub.f32 0.0, %v1053_v31 }
 0x18f   : > { %v3037_v56 = vpop.eup %3036  ;;  %2244 = vst.msk [vmem:[%s3470_s26 + $0x318] sm:$0xff] %vm2144_vm1, %v3035_v14  ;;  %3056 = vpow2.f32 %v1588_v5  ;;  %v1724_v22 = vmul.f32 1.442695, %v1486_v2  ;;  %v1720_v14 = vmul.f32 1.442695, %v1484_v33 }
 0x190   : > { %v3039_v1 = vpop.eup %3038  ;;  %2178 = vst.msk [vmem:[%s3470_s26 + $0x108] sm:$0xff] %vm2144_vm1, %v3037_v56  ;;  %3058 = vpow2.f32 %v1716_v6  ;;  %v1487_v56 = vsub.f32 0.0, %v1309_v36 }
 0x191   : > { %v3041_v60 = vpop.eup %3040  ;;  %2242 = vst.msk [vmem:[%s3470_s26 + $0x308] sm:$0xff] %vm2144_vm1, %v3039_v1  ;;  %3060 = vpow2.f32 %v1584_v46  ;;  %v1045_v46 = vadd.f32 %v3750_v50, %v3727_v58  ;;  %v1322_v58 = vadd.f32 %v3750_v50, %v3743_v40 }
 0x192   : > { %v3043_v3 = vpop.eup %3042  ;;  %2183 = vst.msk [vmem:[%s3470_s26 + $0x130] sm:$0xff] %vm2144_vm1, %v3041_v60  ;;  %3062 = vpow2.f32 %v1712_v61  ;;  %v1301_v61 = vadd.f32 %v3750_v50, %v3731_v62  ;;  %v1058_v62 = vadd.f32 %v3750_v50, %v3745_v37  ;;  %v1726_v37 = vmul.f32 1.442695, %v1487_v56 }
 0x193   : > { %v3045_v15 = vpop.eup %3044  ;;  %2247 = vst.msk [vmem:[%s3470_s26 + $0x330] sm:$0xff] %vm2144_vm1, %v3043_v3  ;;  %3064 = vpow2.f32 %v1590_v26  ;;  %v1066_v26 = vadd.f32 %v3750_v50, %v3741_v63 }
 0x194   : > { %v3047_v13 = vpop.eup %3046  ;;  %2181 = vst.msk [vmem:[%s3470_s26 + $0x120] sm:$0xff] %vm2144_vm1, %v3045_v15  ;;  %3066 = vpow2.f32 %v1718_v47  ;;  %v1598_v47 = vmul.f32 1.442695, %v1423_v10  ;;  %v1485_v63 = vsub.f32 0.0, %v1301_v61 }
 0x195   : > { %v3049_v28 = vpop.eup %3048  ;;  %2245 = vst.msk [vmem:[%s3470_s26 + $0x320] sm:$0xff] %vm2144_vm1, %v3047_v13  ;;  %3068 = vpow2.f32 %v1586_v54  ;;  %v1421_v54 = vsub.f32 0.0, %v1045_v46  ;;  %v1426_v40 = vsub.f32 0.0, %v1066_v26 }
 0x196   : > { %v3051_v44 = vpop.eup %3050  ;;  %2184 = vst.msk [vmem:[%s3470_s26 + $0x138] sm:$0xff] %vm2144_vm1, %v3049_v28  ;;  %3070 = vpow2.f32 %v1714_v18  ;;  %v4166_v18 = vld [vmem:[#allocation2_spill] sm:$0xff] }
 0x197   : > { %v3053_v45 = vpop.eup %3052  ;;  %2248 = vst.msk [vmem:[%s3470_s26 + $0x338] sm:$0xff] %vm2144_vm1, %v3051_v44  ;;  %3072 = vpow2.f32 %v1596_v29  ;;  %v1314_v15 = vadd.f32 %v3750_v50, %v4166_v18  ;;  %v1490_v44 = vsub.f32 0.0, %v1322_v58 }
 0x198   : > { %v3055_v7 = vpop.eup %3054  ;;  %v1797_v30 = vadd.f32 1.0, %v3053_v45  ;;  %3074 = vpow2.f32 %v1724_v22  ;;  %v4167_v22 = vld [vmem:[#allocation3_spill] sm:$0xff]  ;;  %v4168_v45 = vld [vmem:[#allocation4_spill] sm:$0xff] }
 0x199   : > { %v3057_v0 = vpop.eup %3056  ;;  %v1861_v11 = vadd.f32 1.0, %v3055_v7  ;;  %3076 = vpow2.f32 %v1592_v17  ;;  %v1069_v28 = vadd.f32 %v3750_v50, %v4167_v22  ;;  %v1325_v20 = vadd.f32 %v3750_v50, %v4168_v45 }
 0x19a   : > { %v3059_v32 = vpop.eup %3058  ;;  %3078 = vrcp.f32 %v1797_v30  ;;  %v1802_v48 = vadd.f32 1.0, %v3057_v0  ;;  %v1594_v30 = vmul.f32 1.442695, %v1421_v54  ;;  %v1424_v0 = vsub.f32 0.0, %v1058_v62 }
 0x19b   : > { %v3061_v39 = vpop.eup %3060  ;;  %3080 = vrcp.f32 %v1861_v11  ;;  %v1866_v5 = vadd.f32 1.0, %v3059_v32  ;;  %v4169_v11 = vld [vmem:[#allocation5_spill] sm:$0xff]  ;;  %v1427_v36 = vsub.f32 0.0, %v1069_v28  ;;  %v1491_v10 = vsub.f32 0.0, %v1325_v20 }
 0x19c   : > { %v3063_v38 = vpop.eup %3062  ;;  %3082 = vrcp.f32 %v1802_v48  ;;  %v1800_v23 = vadd.f32 1.0, %v3061_v39  ;;  %v1061_v31 = vadd.f32 %v3750_v50, %v4169_v11  ;;  %v1722_v48 = vmul.f32 1.442695, %v1485_v63 }
 0x19d   : > { %v3065_v6 = vpop.eup %3064  ;;  %3084 = vrcp.f32 %v1866_v5  ;;  %v1864_v51 = vadd.f32 1.0, %v3063_v38  ;;  %v1488_v39 = vsub.f32 0.0, %v1314_v15  ;;  %v4170_v5 = vld [vmem:[#allocation6_spill] sm:$0xff]  ;;  %v1734_v56 = vmul.f32 1.442695, %v1491_v10 }
 0x19e   : > { %v3067_v41 = vpop.eup %3066  ;;  %3086 = vrcp.f32 %v1800_v23  ;;  %v1803_v49 = vadd.f32 1.0, %v3065_v6  ;;  %v1317_v33 = vadd.f32 %v3750_v50, %v4170_v5  ;;  %v1604_v23 = vmul.f32 1.442695, %v1426_v40 }
 0x19f   : > { %v3069_v27 = vpop.eup %3068  ;;  %3088 = vrcp.f32 %v1864_v51  ;;  %v1867_v21 = vadd.f32 1.0, %v3067_v41  ;;  %v1732_v51 = vmul.f32 1.442695, %v1490_v44  ;;  %v1425_v46 = vsub.f32 0.0, %v1061_v31 }
 0x1a0   : > { %v3071_v43 = vpop.eup %3070  ;;  %3090 = vrcp.f32 %v1803_v49  ;;  %v1801_v57 = vadd.f32 1.0, %v3069_v27  ;;  %v1600_v49 = vmul.f32 1.442695, %v1424_v0  ;;  %v1338_v63 = vadd.f32 %v3750_v50, %v3776_v34 }
 0x1a1   : > { %v3073_v53 = vpop.eup %3072  ;;  %3092 = vrcp.f32 %v1867_v21  ;;  %v1865_v1 = vadd.f32 1.0, %v3071_v43  ;;  %v1728_v21 = vmul.f32 1.442695, %v1488_v39  ;;  %v1606_v43 = vmul.f32 1.442695, %v1427_v36 }
 0x1a2   : > { %v3075_v2 = vpop.eup %3074  ;;  %3094 = vrcp.f32 %v1801_v57  ;;  %v1806_v60 = vadd.f32 1.0, %v3073_v53  ;;  %v1602_v53 = vmul.f32 1.442695, %v1425_v46  ;;  %v1494_v45 = vsub.f32 0.0, %v1338_v63 }
 0x1a3   : > { %v3077_v35 = vpop.eup %3076  ;;  %3096 = vrcp.f32 %v1865_v1  ;;  %v1870_v3 = vadd.f32 1.0, %v3075_v2 }
 0x1a4   : > { %v3079_v29 = vpop.eup %3078  ;;  %3098 = vrcp.f32 %v1806_v60  ;;  %v1804_v13 = vadd.f32 1.0, %v3077_v35  ;;  %v1082_v60 = vadd.f32 %v3750_v50, %v3772_v8  ;;  %v4171_v8 = vld [vmem:[#allocation7_spill] sm:$0xff] }
 0x1a5   : > { %v3081_v17 = vpop.eup %3080  ;;  %2182 = vst.msk [vmem:[%s3470_s26 + $0x128] sm:$0xff] %vm2144_vm1, %v3079_v29  ;;  %3100 = vrcp.f32 %v1870_v3 }
 0x1a6   : > { %v3083_v7 = vpop.eup %3082  ;;  %2246 = vst.msk [vmem:[%s3470_s26 + $0x328] sm:$0xff] %vm2144_vm1, %v3081_v17  ;;  %3102 = vrcp.f32 %v1804_v13  ;;  %v1430_v40 = vsub.f32 0.0, %v1082_v60  ;;  %v1074_v17 = vadd.f32 %v3750_v50, %v4171_v8  ;;  %v4173_v50 = vld [vmem:[#allocation9_spill] sm:$0xff] }
 0x1a7   : > { %v3085_v32 = vpop.eup %3084  ;;  %2187 = vst.msk [vmem:[%s3470_s26 + $0x150] sm:$0xff] %vm2144_vm1, %v3083_v7  ;;  %3104 = vpow2.f32 %v1720_v14  ;;  %v1489_v14 = vsub.f32 0.0, %v1317_v33  ;;  %v4025_v7 = vld [vmem:[%s4148_s2] ss:$0 sm:$0xff] }
 0x1a8   : > { %v3087_v38 = vpop.eup %3086  ;;  %2251 = vst.msk [vmem:[%s3470_s26 + $0x350] sm:$0xff] %vm2144_vm1, %v3085_v32  ;;  %3106 = vpow2.f32 %v1598_v47  ;;  %v1612_v32 = vmul.f32 1.442695, %v1430_v40  ;;  %v1428_v33 = vsub.f32 0.0, %v1074_v17 }
 0x1a9   : > { %v3089_v6 = vpop.eup %3088  ;;  %2185 = vst.msk [vmem:[%s3470_s26 + $0x140] sm:$0xff] %vm2144_vm1, %v3087_v38  ;;  %3108 = vpow2.f32 %v1726_v37  ;;  %v1730_v47 = vmul.f32 1.442695, %v1489_v14  ;;  %v1341_v38 = vadd.f32 %v4025_v7, %v3788_v16 }
 0x1aa   : > { %v3091_v41 = vpop.eup %3090  ;;  %2249 = vst.msk [vmem:[%s3470_s26 + $0x340] sm:$0xff] %vm2144_vm1, %v3089_v6  ;;  %3110 = vpow2.f32 %v1594_v30  ;;  %v4172_v30 = vld [vmem:[#allocation8_spill] sm:$0xff]  ;;  %v1740_v6 = vmul.f32 1.442695, %v1494_v45 }
 0x1ab   : > { %v3093_v27 = vpop.eup %3092  ;;  %2188 = vst.msk [vmem:[%s3470_s26 + $0x158] sm:$0xff] %vm2144_vm1, %v3091_v41  ;;  %3112 = vpow2.f32 %v1722_v48  ;;  %v1330_v0 = vadd.f32 %v4025_v7, %v4172_v30  ;;  %v1085_v48 = vadd.f32 %v4025_v7, %v4173_v50 }
 0x1ac   : > { %v3095_v61 = vpop.eup %3094  ;;  %2252 = vst.msk [vmem:[%s3470_s26 + $0x358] sm:$0xff] %vm2144_vm1, %v3093_v27  ;;  %3114 = vpow2.f32 %v1604_v23  ;;  %v1333_v27 = vadd.f32 %v4025_v7, %v3794_v25  ;;  %v1608_v25 = vmul.f32 1.442695, %v1428_v33 }
 0x1ad   : > { %v3097_v57 = vpop.eup %3096  ;;  %2186 = vst.msk [vmem:[%s3470_s26 + $0x148] sm:$0xff] %vm2144_vm1, %v3095_v61  ;;  %3116 = vpow2.f32 %v1732_v51  ;;  %v4174_v51 = vld [vmem:[#allocation10_spill] sm:$0xff]  ;;  %v1492_v46 = vsub.f32 0.0, %v1330_v0  ;;  %v1431_v16 = vsub.f32 0.0, %v1085_v48  ;;  %v1098_v61 = vadd.f32 %v4025_v7, %v3810_v55 }
 0x1ae   : > { %v3099_v26 = vpop.eup %3098  ;;  %2250 = vst.msk [vmem:[%s3470_s26 + $0x348] sm:$0xff] %vm2144_vm1, %v3097_v57  ;;  %3118 = vpow2.f32 %v1600_v49  ;;  %v1077_v10 = vadd.f32 %v4025_v7, %v4174_v51 }
 0x1af   : > { %v3101_v1 = vpop.eup %3100  ;;  %2191 = vst.msk [vmem:[%s3470_s26 + $0x170] sm:$0xff] %vm2144_vm1, %v3099_v26  ;;  %3120 = vpow2.f32 %v1728_v21  ;;  %v1354_v26 = vadd.f32 %v4025_v7, %v3814_v19  ;;  %v1736_v55 = vmul.f32 1.442695, %v1492_v46  ;;  %v1346_v19 = vadd.f32 %v4025_v7, %v3820_v59  ;;  %v4175_v46 = vld [vmem:[#allocation11_spill] sm:$0xff] }
 0x1b0   : > { %v3103_v58 = vpop.eup %3102  ;;  %2255 = vst.msk [vmem:[%s3470_s26 + $0x370] sm:$0xff] %vm2144_vm1, %v3101_v1  ;;  %3122 = vpow2.f32 %v1606_v43  ;;  %v1429_v1 = vsub.f32 0.0, %v1077_v10 }
 0x1b1   : > { %v3105_v2 = vpop.eup %3104  ;;  %2189 = vst.msk [vmem:[%s3470_s26 + $0x160] sm:$0xff] %vm2144_vm1, %v3103_v58  ;;  %3124 = vpow2.f32 %v1734_v56  ;;  %v1495_v56 = vsub.f32 0.0, %v1341_v38  ;;  %v1498_v63 = vsub.f32 0.0, %v1354_v26  ;;  %v1093_v38 = vadd.f32 %v4025_v7, %v3828_v9 }
 0x1b2   : > { %v3107_v54 = vpop.eup %3106  ;;  %v1868_v62 = vadd.f32 1.0, %v3105_v2  ;;  %3126 = vpow2.f32 %v1602_v53  ;;  %v1493_v2 = vsub.f32 0.0, %v1333_v27  ;;  %v1610_v59 = vmul.f32 1.442695, %v1429_v1 }
 0x1b3   : > { %v3109_v35 = vpop.eup %3108  ;;  %v1807_v3 = vadd.f32 1.0, %v3107_v54  ;;  %3128 = vpow2.f32 %v1730_v47  ;;  %v1090_v47 = vadd.f32 %v4025_v7, %v3816_v42  ;;  %v1614_v54 = vmul.f32 1.442695, %v1431_v16 }
 0x1b4   : > { %v3111_v18 = vpop.eup %3110  ;;  %3130 = vrcp.f32 %v1868_v62  ;;  %v1871_v15 = vadd.f32 1.0, %v3109_v35  ;;  %v1434_v62 = vsub.f32 0.0, %v1098_v61  ;;  %v1101_v42 = vadd.f32 %v4025_v7, %v3822_v24 }
 0x1b5   : > { %v3113_v29 = vpop.eup %3112  ;;  %3132 = vrcp.f32 %v1807_v3  ;;  %v1805_v13 = vadd.f32 1.0, %v3111_v18  ;;  %v1742_v3 = vmul.f32 1.442695, %v1495_v56  ;;  %v1738_v24 = vmul.f32 1.442695, %v1493_v2  ;;  %v4178_v2 = vld [vmem:[#allocation14_spill] sm:$0xff] }
 0x1b6   : > { %v3115_v22 = vpop.eup %3114  ;;  %3134 = vrcp.f32 %v1871_v15  ;;  %v1869_v28 = vadd.f32 1.0, %v3113_v29  ;;  %v1432_v15 = vsub.f32 0.0, %v1090_v47  ;;  %v1748_v17 = vmul.f32 1.442695, %v1498_v63 }
 0x1b7   : > { %v3117_v37 = vpop.eup %3116  ;;  %3136 = vrcp.f32 %v1805_v13  ;;  %v1810_v44 = vadd.f32 1.0, %v3115_v22  ;;  %v1496_v13 = vsub.f32 0.0, %v1346_v19  ;;  %v1620_v22 = vmul.f32 1.442695, %v1434_v62 }
 0x1b8   : > { %v3119_v20 = vpop.eup %3118  ;;  %3138 = vrcp.f32 %v1869_v28  ;;  %v1874_v34 = vadd.f32 1.0, %v3117_v37  ;;  %v1435_v28 = vsub.f32 0.0, %v1101_v42  ;;  %v1114_v27 = vadd.f32 %v4025_v7, %v4175_v46  ;;  %v4179_v42 = vld [vmem:[#allocation15_spill] sm:$0xff] }
 0x1b9   : > { %v3121_v11 = vpop.eup %3120  ;;  %3140 = vrcp.f32 %v1810_v44  ;;  %v1808_v31 = vadd.f32 1.0, %v3119_v20  ;;  %v1616_v44 = vmul.f32 1.442695, %v1432_v15  ;;  %v1744_v20 = vmul.f32 1.442695, %v1496_v13  ;;  %v4180_v13 = vld [vmem:[#allocation16_spill] sm:$0xff] }
 0x1ba   : > { %v3123_v39 = vpop.eup %3122  ;;  %3142 = vrcp.f32 %v1874_v34  ;;  %v1872_v5 = vadd.f32 1.0, %v3121_v11  ;;  %v1622_v30 = vmul.f32 1.442695, %v1435_v28  ;;  %v1433_v9 = vsub.f32 0.0, %v1093_v38 }
 0x1bb   : > { %v3125_v23 = vpop.eup %3124  ;;  %3144 = vrcp.f32 %v1808_v31  ;;  %v1811_v36 = vadd.f32 1.0, %v3123_v39  ;;  %v1357_v31 = vadd.f32 %v4025_v7, %v3826_v52  ;;  %v1349_v52 = vadd.f32 %v4025_v7, %v3832_v4 }
 0x1bc   : > { %v3127_v41 = vpop.eup %3126  ;;  %3146 = vrcp.f32 %v1872_v5  ;;  %v1875_v49 = vadd.f32 1.0, %v3125_v23  ;;  %v1362_v19 = vadd.f32 %v4025_v7, %v4178_v2  ;;  %v1618_v62 = vmul.f32 1.442695, %v1433_v9 }
 0x1bd   : > { %v3129_v21 = vpop.eup %3128  ;;  %3148 = vrcp.f32 %v1811_v36  ;;  %v1809_v14 = vadd.f32 1.0, %v3127_v41 }
 0x1be   : > { %v3131_v43 = vpop.eup %3130  ;;  %3150 = vrcp.f32 %v1875_v49  ;;  %v1873_v57 = vadd.f32 1.0, %v3129_v21 }
 0x1bf   : > { %v3133_v53 = vpop.eup %3132  ;;  %2253 = vst.msk [vmem:[%s3470_s26 + $0x360] sm:$0xff] %vm2144_vm1, %v3131_v43  ;;  %3152 = vrcp.f32 %v1809_v14 }
 0x1c0   : > { %v3135_v58 = vpop.eup %3134  ;;  %2192 = vst.msk [vmem:[%s3470_s26 + $0x178] sm:$0xff] %vm2144_vm1, %v3133_v53  ;;  %3154 = vrcp.f32 %v1873_v57  ;;  %v4176_v57 = vld [vmem:[#allocation12_spill] sm:$0xff]  ;;  %v1497_v53 = vsub.f32 0.0, %v1349_v52 }
 0x1c1   : > { %v3137_v60 = vpop.eup %3136  ;;  %2256 = vst.msk [vmem:[%s3470_s26 + $0x378] sm:$0xff] %vm2144_vm1, %v3135_v58  ;;  %3156 = vpow2.f32 %v1612_v32  ;;  %v1370_v56 = vadd.f32 %v4025_v7, %v4176_v57 }
 0x1c2   : > { %v3139_v35 = vpop.eup %3138  ;;  %2190 = vst.msk [vmem:[%s3470_s26 + $0x168] sm:$0xff] %vm2144_vm1, %v3137_v60  ;;  %3158 = vpow2.f32 %v1740_v6  ;;  %v1499_v6 = vsub.f32 0.0, %v1357_v31  ;;  %v1746_v28 = vmul.f32 1.442695, %v1497_v53 }
 0x1c3   : > { %v3141_v18 = vpop.eup %3140  ;;  %2254 = vst.msk [vmem:[%s3470_s26 + $0x368] sm:$0xff] %vm2144_vm1, %v3139_v35  ;;  %3160 = vpow2.f32 %v1608_v25  ;;  %v4177_v25 = vld [vmem:[#allocation13_spill] sm:$0xff]  ;;  %v1117_v35 = vadd.f32 %v4025_v7, %v4179_v42 }
 0x1c4   : > { %v3143_v29 = vpop.eup %3142  ;;  %2195 = vst.msk [vmem:[%s3470_s26 + $0x190] sm:$0xff] %vm2144_vm1, %v3141_v18  ;;  %3162 = vpow2.f32 %v1736_v55  ;;  %v1750_v43 = vmul.f32 1.442695, %v1499_v6  ;;  %v1106_v1 = vadd.f32 %v4025_v7, %v4177_v25  ;;  %v1438_v55 = vsub.f32 0.0, %v1114_v27 }
 0x1c5   : > { %v3145_v40 = vpop.eup %3144  ;;  %2259 = vst.msk [vmem:[%s3470_s26 + $0x390] sm:$0xff] %vm2144_vm1, %v3143_v29  ;;  %3164 = vpow2.f32 %v1614_v54  ;;  %v1502_v18 = vsub.f32 0.0, %v1370_v56 }
 0x1c6   : > { %v3147_v8 = vpop.eup %3146  ;;  %2193 = vst.msk [vmem:[%s3470_s26 + $0x180] sm:$0xff] %vm2144_vm1, %v3145_v40  ;;  %3166 = vpow2.f32 %v1742_v3  ;;  %v1109_v40 = vadd.f32 %v4025_v7, %v4180_v13 }
 0x1c7   : > { %v3149_v37 = vpop.eup %3148  ;;  %2257 = vst.msk [vmem:[%s3470_s26 + $0x380] sm:$0xff] %vm2144_vm1, %v3147_v8  ;;  %3168 = vpow2.f32 %v1610_v59  ;;  %v1373_v59 = vadd.f32 %v4025_v7, %v3858_v12  ;;  %v1500_v8 = vsub.f32 0.0, %v1362_v19  ;;  %v1628_v12 = vmul.f32 1.442695, %v1438_v55 }
 0x1c8   : > { %v3151_v45 = vpop.eup %3150  ;;  %2196 = vst.msk [vmem:[%s3470_s26 + $0x198] sm:$0xff] %vm2144_vm1, %v3149_v37  ;;  %3170 = vpow2.f32 %v1738_v24  ;;  %v1436_v24 = vsub.f32 0.0, %v1106_v1 }
 0x1c9   : > { %v3153_v34 = vpop.eup %3152  ;;  %2260 = vst.msk [vmem:[%s3470_s26 + $0x398] sm:$0xff] %vm2144_vm1, %v3151_v45  ;;  %3172 = vpow2.f32 %v1620_v22  ;;  %v1439_v45 = vsub.f32 0.0, %v1117_v35 }
 0x1ca   : > { %v3155_v0 = vpop.eup %3154  ;;  %2194 = vst.msk [vmem:[%s3470_s26 + $0x188] sm:$0xff] %vm2144_vm1, %v3153_v34  ;;  %3174 = vpow2.f32 %v1748_v17  ;;  %v4181_v17 = vld [vmem:[#allocation17_spill] sm:$0xff]  ;;  %v1756_v34 = vmul.f32 1.442695, %v1502_v18 }
 0x1cb   : > { %v3157_v11 = vpop.eup %3156  ;;  %2258 = vst.msk [vmem:[%s3470_s26 + $0x388] sm:$0xff] %vm2144_vm1, %v3155_v0  ;;  %3176 = vpow2.f32 %v1616_v44  ;;  %v1365_v37 = vadd.f32 %v4025_v7, %v4181_v17  ;;  %v1624_v7 = vmul.f32 1.442695, %v1436_v24 }
 0x1cc   : > { %v3159_v32 = vpop.eup %3158  ;;  %v1814_v50 = vadd.f32 1.0, %v3157_v11  ;;  %3178 = vpow2.f32 %v1744_v20  ;;  %v1437_v11 = vsub.f32 0.0, %v1109_v40 }
 0x1cd   : > { %v3161_v48 = vpop.eup %3160  ;;  %v1878_v39 = vadd.f32 1.0, %v3159_v32  ;;  %3180 = vpow2.f32 %v1622_v30  ;;  %v1503_v30 = vsub.f32 0.0, %v1373_v59  ;;  %v1752_v32 = vmul.f32 1.442695, %v1500_v8 }
 0x1ce   : > { %v3163_v5 = vpop.eup %3162  ;;  %3182 = vrcp.f32 %v1814_v50  ;;  %v1812_v33 = vadd.f32 1.0, %v3161_v48  ;;  %v1501_v50 = vsub.f32 0.0, %v1365_v37 }
 0x1cf   : > { %v3165_v23 = vpop.eup %3164  ;;  %3184 = vrcp.f32 %v1878_v39  ;;  %v1876_v36 = vadd.f32 1.0, %v3163_v5  ;;  %v1630_v39 = vmul.f32 1.442695, %v1439_v45 }
 0x1d0   : > { %v3167_v51 = vpop.eup %3166  ;;  %3186 = vrcp.f32 %v1812_v33  ;;  %v1815_v10 = vadd.f32 1.0, %v3165_v23  ;;  %v1758_v33 = vmul.f32 1.442695, %v1503_v30  ;;  %v1626_v23 = vmul.f32 1.442695, %v1437_v11 }
 0x1d1   : > { %v3169_v41 = vpop.eup %3168  ;;  %3188 = vrcp.f32 %v1876_v36  ;;  %v1879_v49 = vadd.f32 1.0, %v3167_v51  ;;  %v1754_v6 = vmul.f32 1.442695, %v1501_v50 }
 0x1d2   : > { %v3171_v21 = vpop.eup %3170  ;;  %3190 = vrcp.f32 %v1815_v10  ;;  %v1813_v14 = vadd.f32 1.0, %v3169_v41 }
 0x1d3   : > { %v3173_v16 = vpop.eup %3172  ;;  %3192 = vrcp.f32 %v1879_v49  ;;  %v1877_v61 = vadd.f32 1.0, %v3171_v21 }
 0x1d4   : > { %v3175_v26 = vpop.eup %3174  ;;  %3194 = vrcp.f32 %v1813_v14  ;;  %v1818_v4 = vadd.f32 1.0, %v3173_v16 }
 0x1d5   : > { %v3177_v47 = vpop.eup %3176  ;;  %3196 = vrcp.f32 %v1877_v61  ;;  %v1882_v58 = vadd.f32 1.0, %v3175_v26 }
 0x1d6   : > { %v3179_v60 = vpop.eup %3178  ;;  %3198 = vrcp.f32 %v1818_v4  ;;  %v1816_v54 = vadd.f32 1.0, %v3177_v47 }
 0x1d7   : > { %v3181_v3 = vpop.eup %3180  ;;  %3200 = vrcp.f32 %v1882_v58  ;;  %v1880_v63 = vadd.f32 1.0, %v3179_v60 }
 0x1d8   : > { %v3183_v15 = vpop.eup %3182  ;;  %3202 = vrcp.f32 %v1816_v54  ;;  %v1819_v29 = vadd.f32 1.0, %v3181_v3 }
 0x1d9   : > { %v3185_v22 = vpop.eup %3184  ;;  %2199 = vst.msk [vmem:[%s3470_s26 + $0x1b0] sm:$0xff] %vm2144_vm1, %v3183_v15  ;;  %3204 = vrcp.f32 %v1880_v63 }
 0x1da   : > { %v3187_v44 = vpop.eup %3186  ;;  %2263 = vst.msk [vmem:[%s3470_s26 + $0x3b0] sm:$0xff] %vm2144_vm1, %v3185_v22  ;;  %3206 = vrcp.f32 %v1819_v29 }
 0x1db   : > { %v3189_v20 = vpop.eup %3188  ;;  %2197 = vst.msk [vmem:[%s3470_s26 + $0x1a0] sm:$0xff] %vm2144_vm1, %v3187_v44  ;;  %3208 = vpow2.f32 %v1750_v43 }
 0x1dc   : > { %v3191_v0 = vpop.eup %3190  ;;  %2261 = vst.msk [vmem:[%s3470_s26 + $0x3a0] sm:$0xff] %vm2144_vm1, %v3189_v20  ;;  %3210 = vpow2.f32 %v1618_v62 }
 0x1dd   : > { %v3193_v31 = vpop.eup %3192  ;;  %2200 = vst.msk [vmem:[%s3470_s26 + $0x1b8] sm:$0xff] %vm2144_vm1, %v3191_v0  ;;  %3212 = vpow2.f32 %v1746_v28 }
 0x1de   : > { %v3195_v48 = vpop.eup %3194  ;;  %2264 = vst.msk [vmem:[%s3470_s26 + $0x3b8] sm:$0xff] %vm2144_vm1, %v3193_v31  ;;  %3214 = vpow2.f32 %v1628_v12 }
 0x1df   : > { %v3197_v5 = vpop.eup %3196  ;;  %2198 = vst.msk [vmem:[%s3470_s26 + $0x1a8] sm:$0xff] %vm2144_vm1, %v3195_v48  ;;  %3216 = vpow2.f32 %v1756_v34 }
 0x1e0   : > { %v3199_v38 = vpop.eup %3198  ;;  %2262 = vst.msk [vmem:[%s3470_s26 + $0x3a8] sm:$0xff] %vm2144_vm1, %v3197_v5  ;;  %3218 = vpow2.f32 %v1624_v7 }
 0x1e1   : > { %v3201_v36 = vpop.eup %3200  ;;  %2203 = vst.msk [vmem:[%s3470_s26 + $0x1d0] sm:$0xff] %vm2144_vm1, %v3199_v38  ;;  %3220 = vpow2.f32 %v1752_v32 }
 0x1e2   : > { %v3203_v51 = vpop.eup %3202  ;;  %2267 = vst.msk [vmem:[%s3470_s26 + $0x3d0] sm:$0xff] %vm2144_vm1, %v3201_v36  ;;  %3222 = vpow2.f32 %v1630_v39 }
 0x1e3   : > { %v3205_v10 = vpop.eup %3204  ;;  %2201 = vst.msk [vmem:[%s3470_s26 + $0x1c0] sm:$0xff] %vm2144_vm1, %v3203_v51  ;;  %3224 = vpow2.f32 %v1758_v33 }
 0x1e4   : > { %v3207_v52 = vpop.eup %3206  ;;  %2265 = vst.msk [vmem:[%s3470_s26 + $0x3c0] sm:$0xff] %vm2144_vm1, %v3205_v10  ;;  %3226 = vpow2.f32 %v1626_v23 }
 0x1e5   : > { %v3209_v41 = vpop.eup %3208  ;;  %2204 = vst.msk [vmem:[%s3470_s26 + $0x1d8] sm:$0xff] %vm2144_vm1, %v3207_v52  ;;  %3228 = vpow2.f32 %v1754_v6 }
 0x1e6   : > { %v3211_v49 = vpop.eup %3210  ;;  %v1883_v46 = vadd.f32 1.0, %v3209_v41 }
 0x1e7   : > { %v3213_v27 = vpop.eup %3212  ;;  %v1817_v21 = vadd.f32 1.0, %v3211_v49 }
 0x1e8   : > { %v3215_v14 = vpop.eup %3214  ;;  %3230 = vrcp.f32 %v1883_v46  ;;  %v1881_v9 = vadd.f32 1.0, %v3213_v27 }
 0x1e9   : > { %v3217_v16 = vpop.eup %3216  ;;  %3232 = vrcp.f32 %v1817_v21  ;;  %v1822_v61 = vadd.f32 1.0, %v3215_v14 }
 0x1ea   : > { %v3219_v43 = vpop.eup %3218  ;;  %3234 = vrcp.f32 %v1881_v9  ;;  %v1886_v57 = vadd.f32 1.0, %v3217_v16 }
 0x1eb   : > { %v3221_v56 = vpop.eup %3220  ;;  %3236 = vrcp.f32 %v1822_v61  ;;  %v1820_v26 = vadd.f32 1.0, %v3219_v43 }
 0x1ec   : > { %v3223_v4 = vpop.eup %3222  ;;  %3238 = vrcp.f32 %v1886_v57  ;;  %v1884_v53 = vadd.f32 1.0, %v3221_v56 }
 0x1ed   : > { %v3225_v25 = vpop.eup %3224  ;;  %3240 = vrcp.f32 %v1820_v26  ;;  %v1823_v1 = vadd.f32 1.0, %v3223_v4 }
 0x1ee   : > { %v3227_v47 = vpop.eup %3226  ;;  %3242 = vrcp.f32 %v1884_v53  ;;  %v1887_v58 = vadd.f32 1.0, %v3225_v25 }
 0x1ef   : > { %v3229_v55 = vpop.eup %3228  ;;  %3244 = vrcp.f32 %v1823_v1  ;;  %v1821_v2 = vadd.f32 1.0, %v3227_v47 }
 0x1f0   : > { %3246 = vrcp.f32 %v1887_v58  ;;  %v1885_v19 = vadd.f32 1.0, %v3229_v55 }
 0x1f1   : > { %3248 = vrcp.f32 %v1821_v2 }
 0x1f2   : > { %v3231_v60 = vpop.eup %3230  ;;  %3250 = vrcp.f32 %v1885_v19 }
 0x1f3   : > { %v3233_v54 = vpop.eup %3232  ;;  %2268 = vst.msk [vmem:[%s3470_s26 + $0x3d8] sm:$0xff] %vm2144_vm1, %v3231_v60 }
 0x1f4   : > { %v3235_v62 = vpop.eup %3234  ;;  %2202 = vst.msk [vmem:[%s3470_s26 + $0x1c8] sm:$0xff] %vm2144_vm1, %v3233_v54 }
 0x1f5   : > { %v3237_v42 = vpop.eup %3236  ;;  %2266 = vst.msk [vmem:[%s3470_s26 + $0x3c8] sm:$0xff] %vm2144_vm1, %v3235_v62 }
 0x1f6   : > { %v3239_v35 = vpop.eup %3238  ;;  %2207 = vst.msk [vmem:[%s3470_s26 + $0x1f0] sm:$0xff] %vm2144_vm1, %v3237_v42 }
 0x1f7   : > { %v3241_v3 = vpop.eup %3240  ;;  %2271 = vst.msk [vmem:[%s3470_s26 + $0x3f0] sm:$0xff] %vm2144_vm1, %v3239_v35 }
 0x1f8   : > { %v3243_v63 = vpop.eup %3242  ;;  %2205 = vst.msk [vmem:[%s3470_s26 + $0x1e0] sm:$0xff] %vm2144_vm1, %v3241_v3 }
 0x1f9   : > { %v3245_v18 = vpop.eup %3244  ;;  %2269 = vst.msk [vmem:[%s3470_s26 + $0x3e0] sm:$0xff] %vm2144_vm1, %v3243_v63 }
 0x1fa   : > { %v3247_v59 = vpop.eup %3246  ;;  %2208 = vst.msk [vmem:[%s3470_s26 + $0x1f8] sm:$0xff] %vm2144_vm1, %v3245_v18 }
 0x1fb   : > { %v3249_v15 = vpop.eup %3248  ;;  %2272 = vst.msk [vmem:[%s3470_s26 + $0x3f8] sm:$0xff] %vm2144_vm1, %v3247_v59 }
 0x1fc   : > { %v3251_v29 = vpop.eup %3250  ;;  %2206 = vst.msk [vmem:[%s3470_s26 + $0x1e8] sm:$0xff] %vm2144_vm1, %v3249_v15 }
 0x1fd   : > { %2270 = vst.msk [vmem:[%s3470_s26 + $0x3e8] sm:$0xff] %vm2144_vm1, %v3251_v29 }
 0x1fe PF: > { %s13_s12 = sadd.s32 1, %s3260_s12  }
 0x1ff   : > { %p10_p4 = scmp.ge.s32.totalorder %s13_s12, 10  }
 0x201   :  { %12 = sbr.rel (!%p10_p4) target bundleno = 1 (0x1), region = 62 }

</bundles_post_ra>
